<compile_context>
chip_gen: v6e
topology: v6e:2x2x1
jax: 0.10.0
libtpu: 0.0.40
codegen_flags: <defaults>
</compile_context>

<pallas_src>
import jax
import jax.numpy as jnp
from jax.experimental import pallas as pl
from jax.experimental.pallas import tpu as pltpu

N = 2          # batch (small)
H = W = 14     # spatial, as in the original module
HW = H * W
C_IN1 = 32     # conv2d32 in-channels
C_MID = 512    # conv2d32 out / conv2d33 in
C_OUT = 128    # conv2d33 out / batchnorm channels
BN_EPS = 1e-3


def _fused_kernel(x104t_ref, w1_ref, b1_ref, x101_ref, w2_ref,
                  gamma_ref, beta_ref, o_ref):
    # --- squeeze-excite gate: 1x1 conv (32->512) + bias + sigmoid ------------
    # Computed channels-on-sublanes ([512, N]) so it broadcasts over the lane
    # (spatial) axis of the NCHW-layout x101 with no in-kernel transpose.
    s = jnp.dot(w1_ref[...], x104t_ref[...],
                preferred_element_type=jnp.float32) + b1_ref[...]        # [512, N]
    gate = jax.nn.sigmoid(s)

    w2 = w2_ref[...]                                                     # [128, 512]
    n = x101_ref.shape[0]
    hw = x101_ref.shape[2]

    # --- gate-multiply + 1x1 conv (512->128) per batch (static unroll) -------
    outs = []
    ssum = jnp.zeros((C_OUT, 1), jnp.float32)
    ssq = jnp.zeros((C_OUT, 1), jnp.float32)
    for b in range(n):
        x107_b = x101_ref[b] * gate[:, b:b + 1]                          # [512, HW]
        x108_b = jnp.dot(w2, x107_b,
                         preferred_element_type=jnp.float32)             # [128, HW]
        outs.append(x108_b)
        ssum = ssum + jnp.sum(x108_b, axis=1, keepdims=True)             # [128, 1]
        ssq = ssq + jnp.sum(x108_b * x108_b, axis=1, keepdims=True)      # [128, 1]

    # --- BatchNorm2d (training mode): biased batch stats, folded affine ------
    inv_cnt = 1.0 / float(n * hw)
    mean = ssum * inv_cnt                                                # [128, 1]
    var = ssq * inv_cnt - mean * mean                                    # [128, 1]
    a = gamma_ref[...] * jax.lax.rsqrt(var + BN_EPS)                     # [128, 1]
    bias = beta_ref[...] - mean * a                                      # [128, 1]
    for b in range(n):
        o_ref[b] = (outs[b] * a + bias).astype(o_ref.dtype)


def fused_forward(x104_nchw, x101_nchw, w1, b1, w2, gamma, beta):
    """x104_nchw: [N,32,1,1], x101_nchw: [N,512,H,W]  -> [N,128,H,W]"""
    n, _, h, w = x101_nchw.shape
    hw = h * w

    # All reshapes below are layout-free; the only transpose is the tiny x104 one.
    x104_t = x104_nchw.reshape(n, C_IN1).T              # [32, N]   (~256 B)
    x101 = x101_nchw.reshape(n, C_MID, hw)              # [N, 512, HW]  native NCHW
    w1_m = w1.reshape(C_MID, C_IN1)                     # [512, 32]     native weight layout
    w2_m = w2.reshape(C_OUT, C_MID)                     # [128, 512]    native weight layout
    b1_m = b1.reshape(C_MID, 1)
    gamma_m = gamma.reshape(C_OUT, 1)
    beta_m = beta.reshape(C_OUT, 1)

    out = pl.pallas_call(
        _fused_kernel,
        out_shape=jax.ShapeDtypeStruct((n, C_OUT, hw), jnp.float32),
        grid=(1,),
        in_specs=[
            pl.BlockSpec((C_IN1, n), lambda i: (0, 0)),
            pl.BlockSpec((C_MID, C_IN1), lambda i: (0, 0)),
            pl.BlockSpec((C_MID, 1), lambda i: (0, 0)),
            pl.BlockSpec((n, C_MID, hw), lambda i: (0, 0, 0)),
            pl.BlockSpec((C_OUT, C_MID), lambda i: (0, 0)),
            pl.BlockSpec((C_OUT, 1), lambda i: (0, 0)),
            pl.BlockSpec((C_OUT, 1), lambda i: (0, 0)),
        ],
        out_specs=pl.BlockSpec((n, C_OUT, hw), lambda i: (0, 0, 0)),
        compiler_params=pltpu.CompilerParams(
            dimension_semantics=("arbitrary",)),
    )(x104_t, w1_m, b1_m, x101, w2_m, gamma_m, beta_m)

    # [N,128,HW] -> [N,128,H,W] is a free reshape (already NCHW-ordered).
    return out.reshape(n, C_OUT, h, w)


def reference_forward(x104_nchw, x101_nchw, w1, b1, w2, gamma, beta):
    """Plain-JAX reference of the PyTorch forward (training-mode batchnorm)."""
    n, _, h, w = x101_nchw.shape
    x104 = x104_nchw.reshape(n, C_IN1)
    x105 = x104 @ w1.reshape(C_MID, C_IN1).T + b1                       # [N, 512]
    x106 = jax.nn.sigmoid(x105)[:, :, None, None]                       # [N,512,1,1]
    x107 = x106 * x101_nchw                                             # [N,512,H,W]
    x108 = jnp.einsum('nchw,kc->nkhw', x107, w2.reshape(C_OUT, C_MID))  # [N,128,H,W]
    mean = jnp.mean(x108, axis=(0, 2, 3), keepdims=True)
    var = jnp.mean((x108 - mean) ** 2, axis=(0, 2, 3), keepdims=True)
    x109 = (x108 - mean) / jnp.sqrt(var + BN_EPS)
    return x109 * gamma[None, :, None, None] + beta[None, :, None, None]


if __name__ == "__main__":
    key = jax.random.PRNGKey(0)
    k1, k2, k3, k4, k5, k6, k7 = jax.random.split(key, 7)

    # deterministic inputs
    x104 = jax.random.normal(k1, (N, C_IN1, 1, 1), dtype=jnp.float32)
    x101 = jax.random.normal(k2, (N, C_MID, H, W), dtype=jnp.float32)

    # deterministic parameters (shapes from module __init__)
    w1 = jax.random.normal(k3, (C_MID, C_IN1, 1, 1), dtype=jnp.float32) * 0.05
    b1 = jax.random.normal(k4, (C_MID,), dtype=jnp.float32) * 0.05
    w2 = jax.random.normal(k5, (C_OUT, C_MID, 1, 1), dtype=jnp.float32) * 0.02
    gamma = 1.0 + 0.1 * jax.random.normal(k6, (C_OUT,), dtype=jnp.float32)
    beta = 0.1 * jax.random.normal(k7, (C_OUT,), dtype=jnp.float32)

    out = fused_forward(x104, x101, w1, b1, w2, gamma, beta)
    out = jax.block_until_ready(out)

    ref = reference_forward(x104, x101, w1, b1, w2, gamma, beta)
    assert out.shape == (N, C_OUT, H, W)
    assert jnp.allclose(out, ref, rtol=1e-4, atol=1e-4), (
        f"max abs err {jnp.max(jnp.abs(out - ref))}")

    print("KERNEL_OK")
</pallas_src>

<mosaic_0001>
module attributes {stable_mosaic.version = 11 : i64} {
  func.func @_fused_kernel(%arg0: i32, %arg1: memref<32x2xf32, #tpu.memory_space<vmem>>, %arg2: memref<512x32xf32, #tpu.memory_space<vmem>>, %arg3: memref<512x1xf32, #tpu.memory_space<vmem>>, %arg4: memref<2x512x196xf32, #tpu.memory_space<vmem>>, %arg5: memref<128x512xf32, #tpu.memory_space<vmem>>, %arg6: memref<128x1xf32, #tpu.memory_space<vmem>>, %arg7: memref<128x1xf32, #tpu.memory_space<vmem>>, %arg8: memref<2x128x196xf32, #tpu.memory_space<vmem>>) attributes {dimension_semantics = [#tpu.dimension_semantics<arbitrary>], iteration_bounds = array<i64: 1>, scalar_prefetch = 0 : i64, scratch_operands = 0 : i64, tpu.core_type = #tpu.core_type<tc>, window_params = [{pipeline_mode = #tpu.pipeline_mode<synchronous>, transform_indices = @transform_0, window_bounds = array<i64: 32, 2>}, {pipeline_mode = #tpu.pipeline_mode<synchronous>, transform_indices = @transform_1, window_bounds = array<i64: 512, 32>}, {pipeline_mode = #tpu.pipeline_mode<synchronous>, transform_indices = @transform_2, window_bounds = array<i64: 512, 1>}, {pipeline_mode = #tpu.pipeline_mode<synchronous>, transform_indices = @transform_3, window_bounds = array<i64: 2, 512, 196>}, {pipeline_mode = #tpu.pipeline_mode<synchronous>, transform_indices = @transform_4, window_bounds = array<i64: 128, 512>}, {pipeline_mode = #tpu.pipeline_mode<synchronous>, transform_indices = @transform_5, window_bounds = array<i64: 128, 1>}, {pipeline_mode = #tpu.pipeline_mode<synchronous>, transform_indices = @transform_6, window_bounds = array<i64: 128, 1>}, {pipeline_mode = #tpu.pipeline_mode<synchronous>, transform_indices = @transform_7, window_bounds = array<i64: 2, 128, 196>}]} {
    %c0 = arith.constant 0 : index
    %c0_0 = arith.constant 0 : index
    %0 = vector.load %arg2[%c0, %c0_0] : memref<512x32xf32, #tpu.memory_space<vmem>>, vector<512x32xf32>
    %c0_1 = arith.constant 0 : index
    %c0_2 = arith.constant 0 : index
    %1 = vector.load %arg1[%c0_1, %c0_2] : memref<32x2xf32, #tpu.memory_space<vmem>>, vector<32x2xf32>
    %cst = arith.constant dense<0.000000e+00> : vector<512x2xf32>
    %2 = tpu.matmul %0, %1, %cst {dimension_numbers = #tpu.dot_dimension_numbers<[1], [0], [0], [1], [0, 0, 1, 1], [], []>} : vector<512x32xf32>, vector<32x2xf32>, vector<512x2xf32> -> vector<512x2xf32>
    %c0_3 = arith.constant 0 : index
    %c0_4 = arith.constant 0 : index
    %3 = vector.load %arg3[%c0_3, %c0_4] : memref<512x1xf32, #tpu.memory_space<vmem>>, vector<512x1xf32>
    %4 = vector.broadcast %3 : vector<512x1xf32> to vector<512x2xf32>
    %5 = arith.addf %2, %4 : vector<512x2xf32>
    %6 = arith.negf %5 : vector<512x2xf32>
    %7 = math.exp %6 : vector<512x2xf32>
    %cst_5 = arith.constant 1.000000e+00 : f32
    %8 = vector.broadcast %cst_5 : f32 to vector<512x2xf32>
    %9 = arith.addf %8, %7 : vector<512x2xf32>
    %10 = arith.divf %8, %9 : vector<512x2xf32>
    %c0_6 = arith.constant 0 : index
    %c0_7 = arith.constant 0 : index
    %11 = vector.load %arg5[%c0_6, %c0_7] : memref<128x512xf32, #tpu.memory_space<vmem>>, vector<128x512xf32>
    %cst_8 = arith.constant 0.000000e+00 : f32
    %12 = vector.broadcast %cst_8 : f32 to vector<128x1xf32>
    %cst_9 = arith.constant 0.000000e+00 : f32
    %13 = vector.broadcast %cst_9 : f32 to vector<128x1xf32>
    %c0_10 = arith.constant 0 : index
    %c0_11 = arith.constant 0 : index
    %c0_12 = arith.constant 0 : index
    %14 = vector.load %arg4[%c0_10, %c0_11, %c0_12] : memref<2x512x196xf32, #tpu.memory_space<vmem>>, vector<1x512x196xf32>
    %15 = vector.shape_cast %14 : vector<1x512x196xf32> to vector<512x196xf32>
    %16 = vector.extract_strided_slice %10 {offsets = [0, 0], sizes = [512, 1], strides = [1, 1]} : vector<512x2xf32> to vector<512x1xf32>
    %17 = vector.broadcast %16 : vector<512x1xf32> to vector<512x196xf32>
    %18 = arith.mulf %15, %17 : vector<512x196xf32>
    %cst_13 = arith.constant dense<0.000000e+00> : vector<128x196xf32>
    %19 = tpu.matmul %11, %18, %cst_13 {dimension_numbers = #tpu.dot_dimension_numbers<[1], [0], [0], [1], [0, 0, 1, 1], [], []>} : vector<128x512xf32>, vector<512x196xf32>, vector<128x196xf32> -> vector<128x196xf32>
    %cst_14 = arith.constant dense<0.000000e+00> : vector<128xf32>
    %20 = vector.multi_reduction <add>, %19, %cst_14 [1] : vector<128x196xf32> to vector<128xf32>
    %21 = vector.shape_cast %20 : vector<128xf32> to vector<128x1xf32>
    %22 = arith.addf %12, %21 : vector<128x1xf32>
    %23 = arith.mulf %19, %19 : vector<128x196xf32>
    %cst_15 = arith.constant dense<0.000000e+00> : vector<128xf32>
    %24 = vector.multi_reduction <add>, %23, %cst_15 [1] : vector<128x196xf32> to vector<128xf32>
    %25 = vector.shape_cast %24 : vector<128xf32> to vector<128x1xf32>
    %26 = arith.addf %13, %25 : vector<128x1xf32>
    %c1 = arith.constant 1 : index
    %c0_16 = arith.constant 0 : index
    %c0_17 = arith.constant 0 : index
    %27 = vector.load %arg4[%c1, %c0_16, %c0_17] : memref<2x512x196xf32, #tpu.memory_space<vmem>>, vector<1x512x196xf32>
    %28 = vector.shape_cast %27 : vector<1x512x196xf32> to vector<512x196xf32>
    %29 = vector.extract_strided_slice %10 {offsets = [0, 1], sizes = [512, 1], strides = [1, 1]} : vector<512x2xf32> to vector<512x1xf32>
    %30 = vector.broadcast %29 : vector<512x1xf32> to vector<512x196xf32>
    %31 = arith.mulf %28, %30 : vector<512x196xf32>
    %cst_18 = arith.constant dense<0.000000e+00> : vector<128x196xf32>
    %32 = tpu.matmul %11, %31, %cst_18 {dimension_numbers = #tpu.dot_dimension_numbers<[1], [0], [0], [1], [0, 0, 1, 1], [], []>} : vector<128x512xf32>, vector<512x196xf32>, vector<128x196xf32> -> vector<128x196xf32>
    %cst_19 = arith.constant dense<0.000000e+00> : vector<128xf32>
    %33 = vector.multi_reduction <add>, %32, %cst_19 [1] : vector<128x196xf32> to vector<128xf32>
    %34 = vector.shape_cast %33 : vector<128xf32> to vector<128x1xf32>
    %35 = arith.addf %22, %34 : vector<128x1xf32>
    %36 = arith.mulf %32, %32 : vector<128x196xf32>
    %cst_20 = arith.constant dense<0.000000e+00> : vector<128xf32>
    %37 = vector.multi_reduction <add>, %36, %cst_20 [1] : vector<128x196xf32> to vector<128xf32>
    %38 = vector.shape_cast %37 : vector<128xf32> to vector<128x1xf32>
    %39 = arith.addf %26, %38 : vector<128x1xf32>
    %cst_21 = arith.constant 0.00255102036 : f32
    %40 = vector.broadcast %cst_21 : f32 to vector<128x1xf32>
    %41 = arith.mulf %35, %40 : vector<128x1xf32>
    %cst_22 = arith.constant 0.00255102036 : f32
    %42 = vector.broadcast %cst_22 : f32 to vector<128x1xf32>
    %43 = arith.mulf %39, %42 : vector<128x1xf32>
    %44 = arith.mulf %41, %41 : vector<128x1xf32>
    %45 = arith.subf %43, %44 : vector<128x1xf32>
    %c0_23 = arith.constant 0 : index
    %c0_24 = arith.constant 0 : index
    %46 = vector.load %arg6[%c0_23, %c0_24] : memref<128x1xf32, #tpu.memory_space<vmem>>, vector<128x1xf32>
    %cst_25 = arith.constant 1.000000e-03 : f32
    %47 = vector.broadcast %cst_25 : f32 to vector<128x1xf32>
    %48 = arith.addf %45, %47 : vector<128x1xf32>
    %49 = math.rsqrt %48 : vector<128x1xf32>
    %50 = arith.mulf %46, %49 : vector<128x1xf32>
    %c0_26 = arith.constant 0 : index
    %c0_27 = arith.constant 0 : index
    %51 = vector.load %arg7[%c0_26, %c0_27] : memref<128x1xf32, #tpu.memory_space<vmem>>, vector<128x1xf32>
    %52 = arith.mulf %41, %50 : vector<128x1xf32>
    %53 = arith.subf %51, %52 : vector<128x1xf32>
    %54 = vector.broadcast %50 : vector<128x1xf32> to vector<128x196xf32>
    %55 = arith.mulf %19, %54 : vector<128x196xf32>
    %56 = vector.broadcast %53 : vector<128x1xf32> to vector<128x196xf32>
    %57 = arith.addf %55, %56 : vector<128x196xf32>
    %c0_28 = arith.constant 0 : index
    %c0_29 = arith.constant 0 : index
    %c0_30 = arith.constant 0 : index
    %58 = vector.load %arg8[%c0_28, %c0_29, %c0_30] : memref<2x128x196xf32, #tpu.memory_space<vmem>>, vector<1x128x196xf32>
    %59 = vector.shape_cast %58 : vector<1x128x196xf32> to vector<128x196xf32>
    %60 = vector.shape_cast %57 : vector<128x196xf32> to vector<1x128x196xf32>
    tpu.vector_store %arg8[%c0_28, %c0_29, %c0_30], %60 {strides = array<i32>} : memref<2x128x196xf32, #tpu.memory_space<vmem>>, vector<1x128x196xf32>,
    %61 = vector.broadcast %50 : vector<128x1xf32> to vector<128x196xf32>
    %62 = arith.mulf %32, %61 : vector<128x196xf32>
    %63 = vector.broadcast %53 : vector<128x1xf32> to vector<128x196xf32>
    %64 = arith.addf %62, %63 : vector<128x196xf32>
    %c1_31 = arith.constant 1 : index
    %c0_32 = arith.constant 0 : index
    %c0_33 = arith.constant 0 : index
    %65 = vector.load %arg8[%c1_31, %c0_32, %c0_33] : memref<2x128x196xf32, #tpu.memory_space<vmem>>, vector<1x128x196xf32>
    %66 = vector.shape_cast %65 : vector<1x128x196xf32> to vector<128x196xf32>
    %67 = vector.shape_cast %64 : vector<128x196xf32> to vector<1x128x196xf32>
    tpu.vector_store %arg8[%c1_31, %c0_32, %c0_33], %67 {strides = array<i32>} : memref<2x128x196xf32, #tpu.memory_space<vmem>>, vector<1x128x196xf32>,
    return
  }
  func.func @transform_0(%arg0: i32) -> (i32, i32) {
    %c0_i32 = arith.constant 0 : i32
    %c0_i32_0 = arith.constant 0 : i32
    %c0_i32_1 = arith.constant 0 : i32
    return %c0_i32, %c0_i32_0 : i32, i32
  }
  func.func @transform_1(%arg0: i32) -> (i32, i32) {
    %c0_i32 = arith.constant 0 : i32
    %c0_i32_0 = arith.constant 0 : i32
    %c0_i32_1 = arith.constant 0 : i32
    return %c0_i32, %c0_i32_0 : i32, i32
  }
  func.func @transform_2(%arg0: i32) -> (i32, i32) {
    %c0_i32 = arith.constant 0 : i32
    %c0_i32_0 = arith.constant 0 : i32
    %c0_i32_1 = arith.constant 0 : i32
    return %c0_i32, %c0_i32_0 : i32, i32
  }
  func.func @transform_3(%arg0: i32) -> (i32, i32, i32) {
    %c0_i32 = arith.constant 0 : i32
    %c0_i32_0 = arith.constant 0 : i32
    %c0_i32_1 = arith.constant 0 : i32
    %c0_i32_2 = arith.constant 0 : i32
    return %c0_i32, %c0_i32_0, %c0_i32_1 : i32, i32, i32
  }
  func.func @transform_4(%arg0: i32) -> (i32, i32) {
    %c0_i32 = arith.constant 0 : i32
    %c0_i32_0 = arith.constant 0 : i32
    %c0_i32_1 = arith.constant 0 : i32
    return %c0_i32, %c0_i32_0 : i32, i32
  }
  func.func @transform_5(%arg0: i32) -> (i32, i32) {
    %c0_i32 = arith.constant 0 : i32
    %c0_i32_0 = arith.constant 0 : i32
    %c0_i32_1 = arith.constant 0 : i32
    return %c0_i32, %c0_i32_0 : i32, i32
  }
  func.func @transform_6(%arg0: i32) -> (i32, i32) {
    %c0_i32 = arith.constant 0 : i32
    %c0_i32_0 = arith.constant 0 : i32
    %c0_i32_1 = arith.constant 0 : i32
    return %c0_i32, %c0_i32_0 : i32, i32
  }
  func.func @transform_7(%arg0: i32) -> (i32, i32, i32) {
    %c0_i32 = arith.constant 0 : i32
    %c0_i32_0 = arith.constant 0 : i32
    %c0_i32_1 = arith.constant 0 : i32
    %c0_i32_2 = arith.constant 0 : i32
    return %c0_i32, %c0_i32_0, %c0_i32_1 : i32, i32, i32
  }
}

</mosaic_0001>

<bundles_post_ra>
// kernel: tpu_custom_call.1
= control target key start
LH: loop header
LB: loop body
LE: loop exit
PB: predicated region body
PF: predicated region fallthrough
CT: control target
= control target key end

     0   :  { %v8656_v0 = vmov 0   ;;  %vm478_vm0 = vcmask 261120   ;;  %vm2402_vm1 = vcmask 556032   ;;  %s8648_s2 = inlined_call_operand.vmem [shape: f32[512,1], index: 2, kind: input, shape index: {}]   ;;  %s8649_s0 = inlined_call_operand.vmem [shape: f32[32,2], index: 0, kind: input, shape index: {}]   ;;  %s8650_s1 = inlined_call_operand.vmem [shape: f32[512,32], index: 1, kind: input, shape index: {}]   ;;  %s8651_s3 = inlined_call_operand.vmem [shape: f32[2,512,196], index: 3, kind: input, shape index: {}]   ;;  %s8652_s4 = inlined_call_operand.vmem [shape: f32[128,512], index: 4, kind: input, shape index: {}]   ;;  %s8653_s5 = inlined_call_operand.vmem [shape: f32[128,1], index: 5, kind: input, shape index: {}]   ;;  %s8654_s6 = inlined_call_operand.vmem [shape: f32[128,1], index: 6, kind: input, shape index: {}]   ;;  %s8655_s7 = inlined_call_operand.vmem [shape: f32[2,128,196], index: 7, kind: output, shape index: {}]  }
   0x1   :  { %4682 = vset.pattern.permute.xlu1 %v8656_v0  ;;  %v96_v1 = vld [vmem:[%s8648_s2 + $0x10] sm:$0xff]  ;;  %v93_v2 = vld [vmem:[%s8649_s0 + $0x18] sm:$0xff]  ;;  %4681 = vset.pattern.permute.xlu0 %v8656_v0  ;;  %v91_v5 = vld [vmem:[%s8649_s0 + $0x8] sm:$0xff] }
   0x2   :  { %v92_v3 = vld [vmem:[%s8649_s0 + $0x10] sm:$0xff]  ;;  %170 = vperm.xlu1 %4682, %v96_v1   ;;  %4511 = vmatprep.subr.mxu0 %v93_v2  ;;  %v97_v4 = vld [vmem:[%s8648_s2 + $0x18] sm:$0xff]  ;;  %v26_v6 = vld [vmem:[%s8650_s1] sm:$0xff] }
   0x3   :  { %4512 = vmatpush3.msra.mxu0 %v93_v2  ;;  %4519 = vmatprep.mubr.msk.f32.mxu0 %vm478_vm0, %v26_v6  ;;  %v90_v7 = vld [vmem:[%s8649_s0] sm:$0xff]  ;;  %v99_v9 = vld [vmem:[%s8648_s2 + $0x28] sm:$0xff]  ;;  %v28_v11 = vld [vmem:[%s8650_s1 + $0x10] sm:$0xff] }
   0x4   :  { %4513 = vmatprep.subr.mxu0 %v92_v3  ;;  %v94_v8 = vld [vmem:[%s8648_s2] sm:$0xff]  ;;  %v27_v10 = vld [vmem:[%s8650_s1 + $0x8] sm:$0xff]  ;;  %v101_v13 = vld [vmem:[%s8648_s2 + $0x38] sm:$0xff] }
   0x5   :  { %4514 = vmatpush3.msra.mxu0 %v92_v3  ;;  %160 = vperm.xlu0 %4681, %v94_v8   ;;  %v95_v12 = vld [vmem:[%s8648_s2 + $0x8] sm:$0xff]  ;;  %v29_v14 = vld [vmem:[%s8650_s1 + $0x18] sm:$0xff]  ;;  %v30_v15 = vld [vmem:[%s8650_s1 + $0x20] sm:$0xff] }
   0x6   :  { %175 = vperm.xlu1 %4682, %v97_v4   ;;  %4515 = vmatprep.subr.mxu0 %v91_v5  ;;  %v98_v16 = vld [vmem:[%s8648_s2 + $0x20] sm:$0xff]  ;;  %v103_v17 = vld [vmem:[%s8648_s2 + $0x48] sm:$0xff]  ;;  %v32_v19 = vld [vmem:[%s8650_s1 + $0x30] sm:$0xff] }
   0x7   :  { %4516 = vmatpush3.msra.mxu0 %v91_v5  ;;  %v31_v18 = vld [vmem:[%s8650_s1 + $0x28] sm:$0xff]  ;;  %v100_v20 = vld [vmem:[%s8648_s2 + $0x30] sm:$0xff]  ;;  %v105_v21 = vld [vmem:[%s8648_s2 + $0x58] sm:$0xff] }
   0x8   :  { %4517 = vmatprep.subr.mxu0 %v90_v7  ;;  %v33_v22 = vld [vmem:[%s8650_s1 + $0x38] sm:$0xff]  ;;  %v34_v23 = vld [vmem:[%s8650_s1 + $0x40] sm:$0xff]  ;;  %v107_v25 = vld [vmem:[%s8648_s2 + $0x68] sm:$0xff] }
   0x9   :  { %4518 = vmatpush3.msra.mxu0 %v90_v7  ;;  %165 = vperm.xlu0 %4681, %v95_v12   ;;  %v102_v24 = vld [vmem:[%s8648_s2 + $0x40] sm:$0xff]  ;;  %v35_v26 = vld [vmem:[%s8650_s1 + $0x48] sm:$0xff]  ;;  %v36_v27 = vld [vmem:[%s8650_s1 + $0x50] sm:$0xff] }
   0xa   :  { %185 = vperm.xlu1 %4682, %v99_v9   ;;  %4520 = vmatmul.mubr.msk.f32.vlgmr.msra.gmra.mxu0 %vm478_vm0, %v27_v10  ;;  %v104_v28 = vld [vmem:[%s8648_s2 + $0x50] sm:$0xff]  ;;  %v109_v29 = vld [vmem:[%s8648_s2 + $0x78] sm:$0xff]  ;;  %v38_v31 = vld [vmem:[%s8650_s1 + $0x60] sm:$0xff] }
   0xb   :  { %4522 = vmatprep.mubr.msk.f32.mxu0 %vm478_vm0, %v28_v11  ;;  %v37_v30 = vld [vmem:[%s8650_s1 + $0x58] sm:$0xff]  ;;  %v106_v32 = vld [vmem:[%s8648_s2 + $0x60] sm:$0xff]  ;;  %v111_v33 = vld [vmem:[%s8648_s2 + $0x88] sm:$0xff] }
   0xc   :  { %v39_v34 = vld [vmem:[%s8650_s1 + $0x68] sm:$0xff]  ;;  %v40_v35 = vld [vmem:[%s8650_s1 + $0x70] sm:$0xff]  ;;  %v113_v37 = vld [vmem:[%s8648_s2 + $0x98] sm:$0xff] }
   0xd   :  { %180 = vperm.xlu0 %4681, %v98_v16   ;;  %v108_v36 = vld [vmem:[%s8648_s2 + $0x70] sm:$0xff]  ;;  %v41_v38 = vld [vmem:[%s8650_s1 + $0x78] sm:$0xff]  ;;  %v42_v39 = vld [vmem:[%s8650_s1 + $0x80] sm:$0xff] }
   0xe   :  { %195 = vperm.xlu1 %4682, %v101_v13   ;;  %4523 = vmatmul.mubr.msk.f32.gmra.mxu0 %vm478_vm0, %v29_v14  ;;  %v110_v40 = vld [vmem:[%s8648_s2 + $0x80] sm:$0xff]  ;;  %v115_v41 = vld [vmem:[%s8648_s2 + $0xa8] sm:$0xff]  ;;  %v44_v43 = vld [vmem:[%s8650_s1 + $0x90] sm:$0xff] }
   0xf   :  { %4525 = vmatprep.mubr.msk.f32.mxu0 %vm478_vm0, %v30_v15  ;;  %v43_v42 = vld [vmem:[%s8650_s1 + $0x88] sm:$0xff]  ;;  %v112_v44 = vld [vmem:[%s8648_s2 + $0x90] sm:$0xff]  ;;  %v117_v45 = vld [vmem:[%s8648_s2 + $0xb8] sm:$0xff] }
  0x10   :  { %v45_v46 = vld [vmem:[%s8650_s1 + $0x98] sm:$0xff]  ;;  %v46_v47 = vld [vmem:[%s8650_s1 + $0xa0] sm:$0xff]  ;;  %v119_v49 = vld [vmem:[%s8648_s2 + $0xc8] sm:$0xff] }
  0x11   :  { %190 = vperm.xlu0 %4681, %v100_v20   ;;  %v114_v48 = vld [vmem:[%s8648_s2 + $0xa0] sm:$0xff]  ;;  %v47_v50 = vld [vmem:[%s8650_s1 + $0xa8] sm:$0xff]  ;;  %v48_v51 = vld [vmem:[%s8650_s1 + $0xb0] sm:$0xff] }
  0x12   :  { %205 = vperm.xlu1 %4682, %v103_v17   ;;  %4526 = vmatmul.mubr.msk.f32.gmra.mxu0 %vm478_vm0, %v31_v18  ;;  %v116_v52 = vld [vmem:[%s8648_s2 + $0xb0] sm:$0xff]  ;;  %v121_v53 = vld [vmem:[%s8648_s2 + $0xd8] sm:$0xff]  ;;  %v50_v55 = vld [vmem:[%s8650_s1 + $0xc0] sm:$0xff] }
  0x13   :  { %4528 = vmatprep.mubr.msk.f32.mxu0 %vm478_vm0, %v32_v19  ;;  %v49_v54 = vld [vmem:[%s8650_s1 + $0xb8] sm:$0xff]  ;;  %v118_v56 = vld [vmem:[%s8648_s2 + $0xc0] sm:$0xff]  ;;  %v123_v57 = vld [vmem:[%s8648_s2 + $0xe8] sm:$0xff] }
  0x14   :  { %v51_v58 = vld [vmem:[%s8650_s1 + $0xc8] sm:$0xff]  ;;  %v52_v59 = vld [vmem:[%s8650_s1 + $0xd0] sm:$0xff]  ;;  %v125_v61 = vld [vmem:[%s8648_s2 + $0xf8] sm:$0xff] }
  0x15   :  { %200 = vperm.xlu0 %4681, %v102_v24   ;;  %v120_v60 = vld [vmem:[%s8648_s2 + $0xd0] sm:$0xff]  ;;  %v53_v62 = vld [vmem:[%s8650_s1 + $0xd8] sm:$0xff]  ;;  %v54_v63 = vld [vmem:[%s8650_s1 + $0xe0] sm:$0xff] }
  0x16   :  { %215 = vperm.xlu1 %4682, %v105_v21   ;;  %4529 = vmatmul.mubr.msk.f32.gmra.mxu0 %vm478_vm0, %v33_v22  ;;  %v122_v1 = vld [vmem:[%s8648_s2 + $0xe0] sm:$0xff]  ;;  %v127_v2 = vld [vmem:[%s8648_s2 + $0x108] sm:$0xff]  ;;  %v56_v4 = vld [vmem:[%s8650_s1 + $0xf0] sm:$0xff] }
  0x17   :  { %4531 = vmatprep.mubr.msk.f32.mxu0 %vm478_vm0, %v34_v23  ;;  %v55_v3 = vld [vmem:[%s8650_s1 + $0xe8] sm:$0xff]  ;;  %v124_v5 = vld [vmem:[%s8648_s2 + $0xf0] sm:$0xff]  ;;  %v129_v6 = vld [vmem:[%s8648_s2 + $0x118] sm:$0xff] }
  0x18   :  { %v57_v7 = vld [vmem:[%s8650_s1 + $0xf8] sm:$0xff]  ;;  %v58_v8 = vld [vmem:[%s8650_s1 + $0x100] sm:$0xff]  ;;  %v131_v9 = vld [vmem:[%s8648_s2 + $0x128] sm:$0xff] }
  0x19   :  { %210 = vperm.xlu0 %4681, %v104_v28   ;;  %v59_v10 = vld [vmem:[%s8650_s1 + $0x108] sm:$0xff]  ;;  %v60_v11 = vld [vmem:[%s8650_s1 + $0x110] sm:$0xff]  ;;  %v133_v12 = vld [vmem:[%s8648_s2 + $0x138] sm:$0xff] }
  0x1a   :  { %225 = vperm.xlu1 %4682, %v107_v25   ;;  %4532 = vmatmul.mubr.msk.f32.gmra.mxu0 %vm478_vm0, %v35_v26  ;;  %v61_v13 = vld [vmem:[%s8650_s1 + $0x118] sm:$0xff]  ;;  %v62_v14 = vld [vmem:[%s8650_s1 + $0x120] sm:$0xff]  ;;  %v135_v15 = vld [vmem:[%s8648_s2 + $0x148] sm:$0xff] }
  0x1b   :  { %4534 = vmatprep.mubr.msk.f32.mxu0 %vm478_vm0, %v36_v27  ;;  %v63_v16 = vld [vmem:[%s8650_s1 + $0x128] sm:$0xff]  ;;  %v64_v17 = vld [vmem:[%s8650_s1 + $0x130] sm:$0xff]  ;;  %v137_v18 = vld [vmem:[%s8648_s2 + $0x158] sm:$0xff] }
  0x1c   :  { %v65_v19 = vld [vmem:[%s8650_s1 + $0x138] sm:$0xff]  ;;  %v66_v20 = vld [vmem:[%s8650_s1 + $0x140] sm:$0xff]  ;;  %v139_v21 = vld [vmem:[%s8648_s2 + $0x168] sm:$0xff] }
  0x1d   :  { %220 = vperm.xlu0 %4681, %v106_v32   ;;  %v67_v22 = vld [vmem:[%s8650_s1 + $0x148] sm:$0xff]  ;;  %v68_v23 = vld [vmem:[%s8650_s1 + $0x150] sm:$0xff]  ;;  %v141_v24 = vld [vmem:[%s8648_s2 + $0x178] sm:$0xff] }
  0x1e   :  { %235 = vperm.xlu1 %4682, %v109_v29   ;;  %4535 = vmatmul.mubr.msk.f32.gmra.mxu0 %vm478_vm0, %v37_v30  ;;  %v69_v25 = vld [vmem:[%s8650_s1 + $0x158] sm:$0xff]  ;;  %v70_v26 = vld [vmem:[%s8650_s1 + $0x160] sm:$0xff]  ;;  %v143_v27 = vld [vmem:[%s8648_s2 + $0x188] sm:$0xff] }
  0x1f   :  { %4537 = vmatprep.mubr.msk.f32.mxu0 %vm478_vm0, %v38_v31  ;;  %v71_v28 = vld [vmem:[%s8650_s1 + $0x168] sm:$0xff]  ;;  %v72_v29 = vld [vmem:[%s8650_s1 + $0x170] sm:$0xff]  ;;  %v145_v30 = vld [vmem:[%s8648_s2 + $0x198] sm:$0xff] }
  0x20   :  { %v73_v31 = vld [vmem:[%s8650_s1 + $0x178] sm:$0xff]  ;;  %v74_v32 = vld [vmem:[%s8650_s1 + $0x180] sm:$0xff] }
  0x21   :  { %230 = vperm.xlu0 %4681, %v108_v36   ;;  %v149_v36 = vld [vmem:[%s8648_s2 + $0x1b8] sm:$0xff] }
  0x22   :  { %245 = vperm.xlu1 %4682, %v111_v33   ;;  %4538 = vmatmul.mubr.msk.f32.gmra.mxu0 %vm478_vm0, %v39_v34  ;;  %v147_v33 = vld [vmem:[%s8648_s2 + $0x1a8] sm:$0xff] }
  0x23   :  { %4540 = vmatprep.mubr.msk.f32.mxu0 %vm478_vm0, %v40_v35  ;;  %v75_v34 = vld [vmem:[%s8650_s1 + $0x188] sm:$0xff]  ;;  %v76_v35 = vld [vmem:[%s8650_s1 + $0x190] sm:$0xff] }
  0x25   :  { %240 = vperm.xlu0 %4681, %v110_v40   ;;  %v151_v40 = vld [vmem:[%s8648_s2 + $0x1c8] sm:$0xff] }
  0x26   :  { %255 = vperm.xlu1 %4682, %v113_v37   ;;  %4541 = vmatmul.mubr.msk.f32.gmra.mxu0 %vm478_vm0, %v41_v38  ;;  %v77_v37 = vld [vmem:[%s8650_s1 + $0x198] sm:$0xff]  ;;  %v78_v38 = vld [vmem:[%s8650_s1 + $0x1a0] sm:$0xff] }
  0x27   :  { %4543 = vmatprep.mubr.msk.f32.mxu0 %vm478_vm0, %v42_v39  ;;  %v8658_v39 = vmov 1  }
  0x29   :  { %250 = vperm.xlu0 %4681, %v112_v44   ;;  %v81_v44 = vld [vmem:[%s8650_s1 + $0x1b8] sm:$0xff] }
  0x2a   :  { %265 = vperm.xlu1 %4682, %v115_v41   ;;  %4544 = vmatmul.mubr.msk.f32.gmra.mxu0 %vm478_vm0, %v43_v42  ;;  %v79_v41 = vld [vmem:[%s8650_s1 + $0x1a8] sm:$0xff]  ;;  %v80_v42 = vld [vmem:[%s8650_s1 + $0x1b0] sm:$0xff] }
  0x2b   :  { %4546 = vmatprep.mubr.msk.f32.mxu0 %vm478_vm0, %v44_v43  ;;  %v153_v43 = vld [vmem:[%s8648_s2 + $0x1d8] sm:$0xff] }
  0x2d   :  { %260 = vperm.xlu0 %4681, %v114_v48   ;;  %v84_v48 = vld [vmem:[%s8650_s1 + $0x1d0] sm:$0xff] }
  0x2e   :  { %275 = vperm.xlu1 %4682, %v117_v45   ;;  %4547 = vmatmul.mubr.msk.f32.gmra.mxu0 %vm478_vm0, %v45_v46  ;;  %v82_v45 = vld [vmem:[%s8650_s1 + $0x1c0] sm:$0xff]  ;;  %v155_v46 = vld [vmem:[%s8648_s2 + $0x1e8] sm:$0xff] }
  0x2f   :  { %4549 = vmatprep.mubr.msk.f32.mxu0 %vm478_vm0, %v46_v47  ;;  %v83_v47 = vld [vmem:[%s8650_s1 + $0x1c8] sm:$0xff] }
  0x31   :  { %270 = vperm.xlu0 %4681, %v116_v52   ;;  %v87_v52 = vld [vmem:[%s8650_s1 + $0x1e8] sm:$0xff] }
  0x32   :  { %285 = vperm.xlu1 %4682, %v119_v49   ;;  %4550 = vmatmul.mubr.msk.f32.gmra.mxu0 %vm478_vm0, %v47_v50  ;;  %v157_v49 = vld [vmem:[%s8648_s2 + $0x1f8] sm:$0xff] }
  0x33   :  { %4552 = vmatprep.mubr.msk.f32.mxu0 %vm478_vm0, %v48_v51  ;;  %v85_v50 = vld [vmem:[%s8650_s1 + $0x1d8] sm:$0xff]  ;;  %v86_v51 = vld [vmem:[%s8650_s1 + $0x1e0] sm:$0xff] }
  0x35   :  { %280 = vperm.xlu0 %4681, %v118_v56  }
  0x36   :  { %295 = vperm.xlu1 %4682, %v121_v53   ;;  %4553 = vmatmul.mubr.msk.f32.gmra.mxu0 %vm478_vm0, %v49_v54  ;;  %v88_v53 = vld [vmem:[%s8650_s1 + $0x1f0] sm:$0xff]  ;;  %v89_v54 = vld [vmem:[%s8650_s1 + $0x1f8] sm:$0xff] }
  0x37   :  { %4555 = vmatprep.mubr.msk.f32.mxu0 %vm478_vm0, %v50_v55 }
  0x39   :  { %290 = vperm.xlu0 %4681, %v120_v60  }
  0x3a   :  { %305 = vperm.xlu1 %4682, %v123_v57   ;;  %4556 = vmatmul.mubr.msk.f32.gmra.mxu0 %vm478_vm0, %v51_v58 }
  0x3b   :  { %4558 = vmatprep.mubr.msk.f32.mxu0 %vm478_vm0, %v52_v59 }
  0x3d   :  { %300 = vperm.xlu0 %4681, %v122_v1  }
  0x3e   :  { %315 = vperm.xlu1 %4682, %v125_v61   ;;  %4559 = vmatmul.mubr.msk.f32.gmra.mxu0 %vm478_vm0, %v53_v62 }
  0x3f   :  { %4561 = vmatprep.mubr.msk.f32.mxu0 %vm478_vm0, %v54_v63 }
  0x41   :  { %310 = vperm.xlu0 %4681, %v124_v5  }
  0x42   :  { %325 = vperm.xlu1 %4682, %v127_v2   ;;  %4562 = vmatmul.mubr.msk.f32.gmra.mxu0 %vm478_vm0, %v55_v3 }
  0x43   :  { %4564 = vmatprep.mubr.msk.f32.mxu0 %vm478_vm0, %v56_v4 }
  0x45   :  { %4683 = vset.pattern.permute.xlu0 %v8658_v39 }
  0x46   :  { %335 = vperm.xlu1 %4682, %v129_v6   ;;  %4565 = vmatmul.mubr.msk.f32.gmra.mxu0 %vm478_vm0, %v57_v7 }
  0x47   :  { %4567 = vmatprep.mubr.msk.f32.mxu0 %vm478_vm0, %v58_v8 }
  0x4a   :  { %345 = vperm.xlu1 %4682, %v131_v9   ;;  %4568 = vmatmul.mubr.msk.f32.gmra.mxu0 %vm478_vm0, %v59_v10 }
  0x4b   :  { %4570 = vmatprep.mubr.msk.f32.mxu0 %vm478_vm0, %v60_v11 }
  0x4e   :  { %355 = vperm.xlu1 %4682, %v133_v12   ;;  %4571 = vmatmul.mubr.msk.f32.gmra.mxu0 %vm478_vm0, %v61_v13 }
  0x4f   :  { %4573 = vmatprep.mubr.msk.f32.mxu0 %vm478_vm0, %v62_v14 }
  0x52   :  { %365 = vperm.xlu1 %4682, %v135_v15   ;;  %4574 = vmatmul.mubr.msk.f32.gmra.mxu0 %vm478_vm0, %v63_v16 }
  0x53   :  { %4576 = vmatprep.mubr.msk.f32.mxu0 %vm478_vm0, %v64_v17 }
  0x56   :  { %375 = vperm.xlu1 %4682, %v137_v18   ;;  %4577 = vmatmul.mubr.msk.f32.gmra.mxu0 %vm478_vm0, %v65_v19 }
  0x57   :  { %4579 = vmatprep.mubr.msk.f32.mxu0 %vm478_vm0, %v66_v20 }
  0x5a   :  { %385 = vperm.xlu1 %4682, %v139_v21   ;;  %4580 = vmatmul.mubr.msk.f32.gmra.mxu0 %vm478_vm0, %v67_v22 }
  0x5b   :  { %4582 = vmatprep.mubr.msk.f32.mxu0 %vm478_vm0, %v68_v23 }
  0x5e   :  { %395 = vperm.xlu1 %4682, %v141_v24   ;;  %4583 = vmatmul.mubr.msk.f32.gmra.mxu0 %vm478_vm0, %v69_v25 }
  0x5f   :  { %4585 = vmatprep.mubr.msk.f32.mxu0 %vm478_vm0, %v70_v26 }
  0x62   :  { %405 = vperm.xlu1 %4682, %v143_v27   ;;  %4586 = vmatmul.mubr.msk.f32.gmra.mxu0 %vm478_vm0, %v71_v28 }
  0x63   :  { %4588 = vmatprep.mubr.msk.f32.mxu0 %vm478_vm0, %v72_v29 }
  0x66   :  { %415 = vperm.xlu1 %4682, %v145_v30   ;;  %4589 = vmatmul.mubr.msk.f32.gmra.mxu0 %vm478_vm0, %v73_v31 }
  0x67   :  { %4591 = vmatprep.mubr.msk.f32.mxu0 %vm478_vm0, %v74_v32 }
  0x6a   :  { %425 = vperm.xlu1 %4682, %v147_v33   ;;  %4592 = vmatmul.mubr.msk.f32.gmra.mxu0 %vm478_vm0, %v75_v34 }
  0x6b   :  { %4594 = vmatprep.mubr.msk.f32.mxu0 %vm478_vm0, %v76_v35 }
  0x6e   :  { %435 = vperm.xlu1 %4682, %v149_v36   ;;  %4595 = vmatmul.mubr.msk.f32.gmra.mxu0 %vm478_vm0, %v77_v37 }
  0x6f   :  { %4597 = vmatprep.mubr.msk.f32.mxu0 %vm478_vm0, %v78_v38 }
  0x72   :  { %445 = vperm.xlu1 %4682, %v151_v40   ;;  %4598 = vmatmul.mubr.msk.f32.gmra.mxu0 %vm478_vm0, %v79_v41 }
  0x73   :  { %4600 = vmatprep.mubr.msk.f32.mxu0 %vm478_vm0, %v80_v42 }
  0x76   :  { %455 = vperm.xlu1 %4682, %v153_v43   ;;  %4601 = vmatmul.mubr.msk.f32.gmra.mxu0 %vm478_vm0, %v81_v44 }
  0x77   :  { %4603 = vmatprep.mubr.msk.f32.mxu0 %vm478_vm0, %v82_v45 }
  0x7a   :  { %465 = vperm.xlu1 %4682, %v155_v46   ;;  %4604 = vmatmul.mubr.msk.f32.gmra.mxu0 %vm478_vm0, %v83_v47 }
  0x7b   :  { %4606 = vmatprep.mubr.msk.f32.mxu0 %vm478_vm0, %v84_v48 }
  0x7d   :  { %v171_v55 = vpop.permute.xlu1 %170 }
  0x7e   :  { %475 = vperm.xlu1 %4682, %v157_v49   ;;  %4607 = vmatmul.mubr.msk.f32.gmra.mxu0 %vm478_vm0, %v85_v50 }
  0x7f   :  { %4609 = vmatprep.mubr.msk.f32.mxu0 %vm478_vm0, %v86_v51 }
  0x80   :  { %v161_v56 = vpop.permute.xlu0 %160 }
  0x81   :  { %v176_v57 = vpop.permute.xlu1 %175 }
  0x82   :  { %4610 = vmatmul.mubr.msk.f32.gmra.mxu0 %vm478_vm0, %v87_v52 }
  0x83   :  { %4612 = vmatprep.mubr.msk.f32.mxu0 %vm478_vm0, %v88_v53 }
  0x84   :  { %v166_v58 = vpop.permute.xlu0 %165 }
  0x85   :  { %v186_v59 = vpop.permute.xlu1 %185 }
  0x86   :  { %4613 = vmatmul.mubr.msk.f32.gmra.mxu0 %vm478_vm0, %v89_v54 }
  0x88   :  { %v181_v60 = vpop.permute.xlu0 %180 }
  0x89   :  { %v196_v61 = vpop.permute.xlu1 %195 }
  0x8c   :  { %v5466_v62 = vpop.permute.xlu0 %190 }
  0x8d   :  { %v206_v63 = vpop.permute.xlu1 %205 }
  0x90   :  { %v5468_v1 = vpop.permute.xlu0 %200 }
  0x91   :  { %v216_v2 = vpop.permute.xlu1 %215 }
  0x94   :  { %v5470_v5 = vpop.permute.xlu0 %210 }
  0x95   :  { %v5472_v9 = vpop.permute.xlu1 %225 }
  0x98   :  { %v5474_v15 = vpop.permute.xlu0 %220 }
  0x99   :  { %v5476_v18 = vpop.permute.xlu1 %235 }
  0x9c   :  { %v231_v24 = vpop.permute.xlu0 %230 }
  0x9d   :  { %v5478_v27 = vpop.permute.xlu1 %245 }
  0xa0   :  { %v5482_v36 = vpop.permute.xlu0 %240 }
  0xa1   :  { %v5484_v41 = vpop.permute.xlu1 %255 }
  0xa4   :  { %v5490_v48 = vpop.permute.xlu0 %250 }
  0xa5   :  { %v5494_v53 = vpop.permute.xlu1 %265 }
  0xca   :  { %v4521_v3 = vpop.f32.mrf.mxu0 }
  0xcb   :  { %v743_v4 = vadd.f32 %v4521_v3, %v166_v58 }
  0xcc   :  { %v737_v6 = vpop.f32.mrf.mxu0 }
  0xcd   :  { %v4220_v7 = vmul.f32 -1.442695, %v743_v4  ;;  %v738_v8 = vadd.f32 %v737_v6, %v161_v56  ;;  %v5503_v4 = vpop.permute.xlu1 %275 }
  0xce   :  { %v4524_v10 = vpop.f32.mrf.mxu0 }
  0xcf   :  { %4707 = vpow2.f32 %v4220_v7  ;;  %v4219_v11 = vmul.f32 -1.442695, %v738_v8  ;;  %v753_v12 = vadd.f32 %v4524_v10, %v176_v57 }
  0xd0   :  { %v747_v13 = vpop.f32.mrf.mxu0 }
  0xd1   :  { %4709 = vpow2.f32 %v4219_v11  ;;  %v4222_v14 = vmul.f32 -1.442695, %v753_v12  ;;  %v748_v21 = vadd.f32 %v747_v13, %v171_v55 }
  0xd2   :  { %v4527_v16 = vpop.f32.mrf.mxu0 }
  0xd3   :  { %v763_v17 = vadd.f32 %v4527_v16, %v186_v59  ;;  %4711 = vpow2.f32 %v4222_v14  ;;  %v4221_v28 = vmul.f32 -1.442695, %v748_v21 }
  0xd4   :  { %v757_v19 = vpop.f32.mrf.mxu0 }
  0xd5   :  { %v4224_v20 = vmul.f32 -1.442695, %v763_v17  ;;  %v758_v42 = vadd.f32 %v757_v19, %v181_v60  ;;  %v5499_v60 = vpop.permute.xlu0 %260  ;;  %v5516_v17 = vpop.permute.xlu1 %285 }
  0xd6   :  { %v4530_v22 = vpop.f32.mrf.mxu0 }
  0xd7   :  { %4713 = vpow2.f32 %v4224_v20  ;;  %v773_v23 = vadd.f32 %v4530_v22, %v196_v61  ;;  %v4223_v49 = vmul.f32 -1.442695, %v758_v42 }
  0xd8   :  { %v767_v25 = vpop.f32.mrf.mxu0 }
  0xd9   :  { %v4226_v26 = vmul.f32 -1.442695, %v773_v23  ;;  %v768_v58 = vadd.f32 %v767_v25, %v5466_v62  ;;  %v5511_v13 = vpop.permute.xlu0 %270 }
  0xda   :  { %v4533_v29 = vpop.f32.mrf.mxu0 }
  0xdb   :  { %4715 = vpow2.f32 %v4226_v26  ;;  %v783_v30 = vadd.f32 %v4533_v29, %v206_v63  ;;  %v4225_v8 = vmul.f32 -1.442695, %v768_v58 }
  0xdc   :  { %v4708_v31 = vpop.eup %4707  ;;  %v5480_v32 = vpop.f32.mrf.mxu0  ;;  %4717 = vpow2.f32 %v4221_v28 }
  0xdd   :  { %v1249_v33 = vadd.f32 1.0, %v4708_v31  ;;  %v4228_v34 = vmul.f32 -1.442695, %v783_v30  ;;  %v778_v21 = vadd.f32 %v5480_v32, %v5468_v1  ;;  %v5525_v26 = vpop.permute.xlu0 %280  ;;  %v5530_v31 = vpop.permute.xlu1 %295 }
  0xde   :  { %v4710_v35 = vpop.eup %4709  ;;  %v4536_v37 = vpop.f32.mrf.mxu0 }
  0xdf   :  { %4719 = vrcp.f32 %v1249_v33  ;;  %v1248_v38 = vadd.f32 1.0, %v4710_v35  ;;  %v793_v40 = vadd.f32 %v4536_v37, %v216_v2  ;;  %v4227_v29 = vmul.f32 -1.442695, %v778_v21 }
  0xe0   :  { %4721 = vpow2.f32 %v4228_v34  ;;  %v5486_v43 = vpop.f32.mrf.mxu0  ;;  %v4712_v45 = vpop.eup %4711 }
  0xe1   :  { %v4230_v44 = vmul.f32 -1.442695, %v793_v40  ;;  %4723 = vrcp.f32 %v1248_v38  ;;  %v1251_v51 = vadd.f32 1.0, %v4712_v45  ;;  %v5537_v35 = vpop.permute.xlu0 %290  ;;  %v788_v42 = vadd.f32 %v5486_v43, %v5470_v5  ;;  %v5545_v45 = vpop.permute.xlu1 %305 }
  0xe2   :  { %v5488_v46 = vpop.f32.mrf.mxu0 }
  0xe3   :  { %4725 = vpow2.f32 %v4230_v44  ;;  %v803_v43 = vadd.f32 %v5488_v46, %v5472_v9 }
  0xe4   :  { %v4714_v47 = vpop.eup %4713  ;;  %v5492_v50 = vpop.f32.mrf.mxu0 }
  0xe5   :  { %v1253_v52 = vadd.f32 1.0, %v4714_v47  ;;  %v5562_v58 = vpop.permute.xlu1 %315 }
  0xe6   :  { %v5496_v54 = vpop.f32.mrf.mxu0 }
  0xe7   :  { %4727 = vrcp.f32 %v1253_v52 }
  0xe8   :  { %v4716_v55 = vpop.eup %4715  ;;  %4729 = vpow2.f32 %v4223_v49  ;;  %v807_v56 = vpop.f32.mrf.mxu0 }
  0xe9   :  { %4731 = vrcp.f32 %v1251_v51  ;;  %v1255_v57 = vadd.f32 1.0, %v4716_v55  ;;  %v808_v59 = vadd.f32 %v807_v56, %v231_v24  ;;  %v4718_v63 = vpop.eup %4717  ;;  %v4229_v55 = vmul.f32 -1.442695, %v788_v42  ;;  %v301_v56 = vpop.permute.xlu0 %300 }
  0xea   :  { %v5501_v61 = vpop.f32.mrf.mxu0  ;;  %v1250_v10 = vadd.f32 1.0, %v4718_v63  ;;  %v5570_v9 = vpop.permute.xlu1 %325 }
  0xeb   :  { %4733 = vrcp.f32 %v1255_v57  ;;  %v4233_v2 = vmul.f32 -1.442695, %v808_v59 }
  0xec   :  { %v4720_v3 = vpop.eup %4719  ;;  %v5505_v6 = vpop.f32.mrf.mxu0 }
  0xed   :  { %v4722_v7 = vpop.eup %4721  ;;  %2729 = vperm.xlu0 %4683, %v4720_v3   ;;  %1639 = vperm.xlu1 %4682, %v4720_v3   ;;  %4735 = vpow2.f32 %v4233_v2  ;;  %v4232_v3 = vmul.f32 -1.442695, %v803_v43 }
  0xee   :  { %v1257_v11 = vadd.f32 1.0, %v4722_v7  ;;  %v5507_v62 = vpop.f32.mrf.mxu0  ;;  %v5509_v12 = vpop.eup %4723 }
  0xf0   :  { %4737 = vrcp.f32 %v1257_v11  ;;  %v5513_v14 = vpop.f32.mrf.mxu0  ;;  %v4726_v16 = vpop.eup %4725 }
  0xf1   :  { %4739 = vpow2.f32 %v4225_v8  ;;  %4684 = vset.pattern.permute.xlu1 %v8658_v39  ;;  %v1259_v19 = vadd.f32 1.0, %v4726_v16  ;;  %v311_v8 = vpop.permute.xlu0 %310 }
  0xf2   :  { %4741 = vrcp.f32 %v1250_v10  ;;  %v5518_v20 = vpop.f32.mrf.mxu0  ;;  %2725 = vperm.xlu1 %4684, %v5509_v12  }
  0xf3   :  { %4743 = vrcp.f32 %v1259_v19 }
  0xf4   :  { %v4728_v22 = vpop.eup %4727  ;;  %v5523_v23 = vpop.f32.mrf.mxu0  ;;  %4745 = vpow2.f32 %v4227_v29 }
  0xf5   :  { %v4730_v24 = vpop.eup %4729  ;;  %2745 = vperm.xlu0 %4683, %v4728_v22  }
  0xf6   :  { %v4732_v25 = vpop.eup %4731  ;;  %v5527_v28 = vpop.f32.mrf.mxu0  ;;  %4685 = vset.pattern.permute.xlu1 %v8656_v0  ;;  %v1252_v33 = vadd.f32 1.0, %v4730_v24 }
  0xf7   :  { %1649 = vperm.xlu1 %4685, %v4732_v25  }
  0xf8   :  { %v4734_v30 = vpop.eup %4733  ;;  %v5532_v1 = vpop.f32.mrf.mxu0  ;;  %4747 = vrcp.f32 %v1252_v33 }
  0xf9   :  { %2753 = vperm.xlu0 %4683, %v4734_v30   ;;  %v5583_v33 = vpop.permute.xlu1 %335 }
  0xfa   :  { %v5534_v32 = vpop.f32.mrf.mxu0  ;;  %v4736_v34 = vpop.eup %4735 }
  0xfb   :  { %4686 = vset.pattern.permute.xlu1 %v8658_v39  ;;  %v1262_v37 = vadd.f32 1.0, %v4736_v34 }
  0xfc   :  { %v5539_v38 = vpop.f32.mrf.mxu0  ;;  %2737 = vperm.xlu1 %4686, %v4732_v25   ;;  %v798_v25 = vadd.f32 %v5492_v50, %v5474_v15 }
  0xfd   :  { %v5541_v40 = vpop.eup %4737  ;;  %4749 = vrcp.f32 %v1262_v37  ;;  %v813_v37 = vadd.f32 %v5496_v54, %v5476_v18 }
  0xfe   :  { %v4740_v44 = vpop.eup %4739  ;;  %2761 = vperm.xlu0 %4683, %v5541_v40   ;;  %v5548_v47 = vpop.f32.mrf.mxu0  ;;  %4751 = vpow2.f32 %v4229_v55  ;;  %v4231_v34 = vmul.f32 -1.442695, %v798_v25 }
  0xff   :  { %v5550_v49 = vpop.eup %4741  ;;  %v1254_v57 = vadd.f32 1.0, %v4740_v44  ;;  %v4234_v50 = vmul.f32 -1.442695, %v813_v37  ;;  %v5593_v55 = vpop.permute.xlu1 %345  ;;  %v853_v37 = vadd.f32 %v5527_v28, %v5503_v4 }
 0x100   :  { %v5552_v51 = vpop.f32.mrf.mxu0  ;;  %2733 = vperm.xlu1 %4686, %v5550_v49   ;;  %v5555_v52 = vpop.eup %4743 }
 0x101   :  { %4753 = vrcp.f32 %v1254_v57  ;;  %v4746_v7 = vpop.eup %4745 }
 0x102   :  { %2769 = vperm.xlu0 %4683, %v5555_v52   ;;  %v5558_v5 = vpop.f32.mrf.mxu0  ;;  %4755 = vpow2.f32 %v4232_v3  ;;  %v1256_v24 = vadd.f32 1.0, %v4746_v7 }
 0x103   :  { %v5603_v3 = vpop.permute.xlu1 %355 }
 0x104   :  { %v877_v59 = vpop.f32.mrf.mxu0  ;;  %4687 = vset.pattern.permute.xlu1 %v8656_v0 }
 0x105   :  { %v878_v63 = vadd.f32 %v877_v59, %v301_v56  ;;  %1659 = vperm.xlu1 %4687, %v4728_v22   ;;  %v5567_v11 = vpop.eup %4747  ;;  %v823_v59 = vadd.f32 %v5501_v61, %v5478_v27 }
 0x106   :  { %v5565_v2 = vpop.f32.mrf.mxu0 }
 0x107   :  { %v4247_v16 = vmul.f32 -1.442695, %v878_v63  ;;  %v5613_v61 = vpop.permute.xlu1 %365 }
 0x108   :  { %v887_v10 = vpop.f32.mrf.mxu0 }
 0x109   :  { %v888_v19 = vadd.f32 %v887_v10, %v311_v8  ;;  %4688 = vset.pattern.permute.xlu1 %v8658_v39  ;;  %4757 = vpow2.f32 %v4247_v16  ;;  %v833_v10 = vadd.f32 %v5507_v62, %v5484_v41  ;;  %v4236_v16 = vmul.f32 -1.442695, %v823_v59 }
 0x10a   :  { %2741 = vperm.xlu1 %4688, %v5567_v11   ;;  %v5573_v46 = vpop.eup %4749  ;;  %v5575_v22 = vpop.f32.mrf.mxu0 }
 0x10b   :  { %v4249_v21 = vmul.f32 -1.442695, %v888_v19  ;;  %2781 = vperm.xlu0 %4683, %v5573_v46   ;;  %v4752_v42 = vpop.eup %4751 }
 0x10c   :  { %v5581_v29 = vpop.f32.mrf.mxu0 }
 0x10d   :  { %4759 = vpow2.f32 %v4249_v21  ;;  %v4238_v21 = vmul.f32 -1.442695, %v833_v10  ;;  %v126_v10 = vld [vmem:[%s8648_s2 + $0x100] sm:$0xff] }
 0x10e   :  { %4689 = vset.pattern.permute.xlu1 %v8656_v0  ;;  %4761 = vrcp.f32 %v1256_v24  ;;  %v5587_v44 = vpop.eup %4753  ;;  %v5589_v15 = vpop.f32.mrf.mxu0  ;;  %v843_v24 = vadd.f32 %v5518_v20, %v5494_v53 }
 0x10f   :  { %1669 = vperm.xlu1 %4689, %v4734_v30   ;;  %4763 = vpow2.f32 %v4231_v34  ;;  %v1258_v30 = vadd.f32 1.0, %v4752_v42  ;;  %v4756_v57 = vpop.eup %4755  ;;  %v5628_v53 = vpop.permute.xlu1 %375 }
 0x110   :  { %v5595_v56 = vpop.f32.mrf.mxu0  ;;  %4765 = vpow2.f32 %v4234_v50  ;;  %v1261_v43 = vadd.f32 1.0, %v4756_v57  ;;  %v4240_v34 = vmul.f32 -1.442695, %v843_v24 }
 0x111   :  { %4767 = vrcp.f32 %v1258_v30  ;;  %v863_v30 = vadd.f32 %v5534_v32, %v5516_v17 }
 0x112   :  { %v5601_v63 = vpop.f32.mrf.mxu0 }
 0x113   :  { %4690 = vset.pattern.permute.xlu1 %v8658_v39 }
 0x114   :  { %2749 = vperm.xlu1 %4690, %v5587_v44   ;;  %v5611_v19 = vpop.f32.mrf.mxu0 }
 0x116   :  { %v4758_v18 = vpop.eup %4757  ;;  %v5618_v41 = vpop.f32.mrf.mxu0 }
 0x118   :  { %4691 = vset.pattern.permute.xlu1 %v8656_v0  ;;  %v5625_v50 = vpop.f32.mrf.mxu0 }
 0x119   :  { %1679 = vperm.xlu1 %4691, %v5541_v40   ;;  %v1276_v40 = vadd.f32 1.0, %v4758_v18  ;;  %v5639_v18 = vpop.permute.xlu1 %385 }
 0x11a   :  { %v4760_v54 = vpop.eup %4759  ;;  %v5635_v4 = vpop.f32.mrf.mxu0 }
 0x11b   :  { %v1278_v7 = vadd.f32 1.0, %v4760_v54  ;;  %v5605_v8 = vpop.eup %4761  ;;  %v4244_v54 = vmul.f32 -1.442695, %v863_v30  ;;  %v130_v30 = vld [vmem:[%s8648_s2 + $0x120] sm:$0xff] }
 0x11c   :  { %v4764_v27 = vpop.eup %4763  ;;  %v5645_v17 = vpop.f32.mrf.mxu0 }
 0x11d   :  { %4692 = vset.pattern.permute.xlu1 %v8658_v39  ;;  %4769 = vrcp.f32 %v1278_v7  ;;  %v1260_v62 = vadd.f32 1.0, %v4764_v27  ;;  %v4766_v25 = vpop.eup %4765  ;;  %v5656_v27 = vpop.permute.xlu1 %395 }
 0x11e   :  { %2757 = vperm.xlu1 %4692, %v5605_v8   ;;  %4771 = vrcp.f32 %v1261_v43  ;;  %v5623_v42 = vpop.eup %4767  ;;  %v1263_v20 = vadd.f32 1.0, %v4766_v25  ;;  %v873_v43 = vadd.f32 %v5548_v47, %v5530_v31  ;;  %v883_v31 = vadd.f32 %v5558_v5, %v5545_v45  ;;  %v5654_v47 = vpop.f32.mrf.mxu0 }
 0x11f   :  { %4773 = vrcp.f32 %v1276_v40  ;;  %v893_v5 = vadd.f32 %v5565_v2, %v5562_v58  ;;  %v903_v58 = vadd.f32 %v5575_v22, %v5570_v9 }
 0x120   :  { %4775 = vpow2.f32 %v4236_v16  ;;  %v4246_v7 = vmul.f32 -1.442695, %v873_v43  ;;  %v4248_v45 = vmul.f32 -1.442695, %v883_v31  ;;  %v134_v31 = vld [vmem:[%s8648_s2 + $0x140] sm:$0xff] }
 0x121   :  { %4777 = vpow2.f32 %v4238_v21 }
 0x122   :  { %4693 = vset.pattern.permute.xlu1 %v8656_v0  ;;  %4779 = vrcp.f32 %v1260_v62  ;;  %v128_v62 = vld [vmem:[%s8648_s2 + $0x110] sm:$0xff] }
 0x123   :  { %1689 = vperm.xlu1 %4693, %v5555_v52   ;;  %4781 = vpow2.f32 %v4240_v34  ;;  %v4242_v52 = vmul.f32 -1.442695, %v853_v37  ;;  %v5667_v34 = vpop.f32.mrf.mxu0 }
 0x124   :  { %4783 = vrcp.f32 %v1263_v20  ;;  %v5669_v20 = vpop.permute.xlu1 %405 }
 0x125   :  { %4785 = vpow2.f32 %v4242_v52  ;;  %v5677_v2 = vpop.f32.mrf.mxu0 }
 0x126   :  { %4787 = vpow2.f32 %v4244_v54  ;;  %v4250_v54 = vmul.f32 -1.442695, %v893_v5 }
 0x127   :  { %4694 = vset.pattern.permute.xlu1 %v8658_v39  ;;  %4789 = vpow2.f32 %v4246_v7 }
 0x128   :  { %2765 = vperm.xlu1 %4694, %v5623_v42   ;;  %v5687_v9 = vpop.permute.xlu1 %415 }
 0x12a   :  { %v5633_v57 = vpop.eup %4769 }
 0x12b   :  { %v4772_v28 = vpop.eup %4771  ;;  %2845 = vperm.xlu0 %4683, %v5633_v57  }
 0x12c   :  { %4695 = vset.pattern.permute.xlu1 %v8656_v0  ;;  %v5643_v59 = vpop.eup %4773 }
 0x12d   :  { %1699 = vperm.xlu1 %4695, %v4772_v28   ;;  %v4776_v32 = vpop.eup %4775 }
 0x12e   :  { %v4778_v40 = vpop.eup %4777  ;;  %v1265_v16 = vadd.f32 1.0, %v4776_v32  ;;  %v132_v32 = vld [vmem:[%s8648_s2 + $0x130] sm:$0xff] }
 0x12f   :  { %2837 = vperm.xlu0 %4683, %v5643_v59   ;;  %v5659_v21 = vpop.eup %4779  ;;  %v1267_v24 = vadd.f32 1.0, %v4778_v40  ;;  %v913_v40 = vadd.f32 %v5589_v15, %v5583_v33  ;;  %v923_v33 = vadd.f32 %v5601_v63, %v5593_v55 }
 0x130   :  { %v4782_v25 = vpop.eup %4781  ;;  %4791 = vrcp.f32 %v1265_v16  ;;  %v5684_v16 = vpop.f32.mrf.mxu0 }
 0x131   :  { %4696 = vset.pattern.permute.xlu1 %v8658_v39  ;;  %v4784_v37 = vpop.eup %4783  ;;  %4793 = vrcp.f32 %v1267_v24  ;;  %v1269_v52 = vadd.f32 1.0, %v4782_v25  ;;  %v4256_v55 = vmul.f32 -1.442695, %v923_v33 }
 0x132   :  { %2777 = vperm.xlu1 %4696, %v4772_v28   ;;  %v4786_v28 = vpop.eup %4785  ;;  %4795 = vpow2.f32 %v4248_v45  ;;  %v4590_v15 = vpop.f32.mrf.mxu0 }
 0x133   :  { %4701 = vset.pattern.permute.xlu0 %v8656_v0  ;;  %4797 = vrcp.f32 %v1269_v52  ;;  %v1271_v43 = vadd.f32 1.0, %v4786_v28  ;;  %v4788_v7 = vpop.eup %4787  ;;  %v5698_v45 = vpop.permute.xlu1 %425  ;;  %v933_v28 = vadd.f32 %v5618_v41, %v5603_v3  ;;  %v943_v3 = vadd.f32 %v5635_v4, %v5613_v61  ;;  %v140_v41 = vld [vmem:[%s8648_s2 + $0x170] sm:$0xff]  ;;  %v142_v4 = vld [vmem:[%s8648_s2 + $0x180] sm:$0xff] }
 0x134   :  { %320 = vperm.xlu0 %4701, %v126_v10   ;;  %4799 = vpow2.f32 %v4250_v54  ;;  %v4252_v10 = vmul.f32 -1.442695, %v903_v58  ;;  %v1273_v22 = vadd.f32 1.0, %v4788_v7  ;;  %v4790_v24 = vpop.eup %4789  ;;  %v5705_v63 = vpop.f32.mrf.mxu0  ;;  %v138_v54 = vld [vmem:[%s8648_s2 + $0x160] sm:$0xff] }
 0x135   :  { %4801 = vrcp.f32 %v1271_v43  ;;  %v1275_v5 = vadd.f32 1.0, %v4790_v24  ;;  %v4260_v33 = vmul.f32 -1.442695, %v943_v3 }
 0x136   :  { %2773 = vperm.xlu1 %4696, %v5659_v21   ;;  %4803 = vpow2.f32 %v4252_v10 }
 0x137   :  { %4805 = vrcp.f32 %v1273_v22  ;;  %v5717_v10 = vpop.permute.xlu1 %435 }
 0x138   :  { %330 = vperm.xlu0 %4701, %v128_v62   ;;  %v4254_v62 = vmul.f32 -1.442695, %v913_v40  ;;  %v4258_v40 = vmul.f32 -1.442695, %v933_v28 }
 0x13a   :  { %4697 = vset.pattern.permute.xlu1 %v8656_v0  ;;  %4807 = vpow2.f32 %v4254_v62 }
 0x13b   :  { %1709 = vperm.xlu1 %4697, %v4784_v37   ;;  %4809 = vrcp.f32 %v1275_v5  ;;  %v953_v5 = vadd.f32 %v5654_v47, %v5628_v53  ;;  %v5732_v61 = vpop.permute.xlu1 %445  ;;  %v963_v53 = vadd.f32 %v5677_v2, %v5639_v18  ;;  %v144_v47 = vld [vmem:[%s8648_s2 + $0x190] sm:$0xff]  ;;  %v973_v18 = vadd.f32 %v4590_v15, %v5656_v27  ;;  %v146_v2 = vld [vmem:[%s8648_s2 + $0x1a0] sm:$0xff] }
 0x13c   :  { %340 = vperm.xlu0 %4701, %v130_v30   ;;  %4811 = vpow2.f32 %v4256_v55  ;;  %v148_v27 = vld [vmem:[%s8648_s2 + $0x1b0] sm:$0xff] }
 0x13d   :  { %v5694_v25 = vpop.eup %4791 }
 0x13e   :  { %v5703_v52 = vpop.eup %4793 }
 0x13f   :  { %4698 = vset.pattern.permute.xlu1 %v8658_v39  ;;  %v4796_v30 = vpop.eup %4795 }
 0x140   :  { %2785 = vperm.xlu1 %4698, %v4784_v37   ;;  %350 = vperm.xlu0 %4701, %v132_v32   ;;  %v136_v37 = vld [vmem:[%s8648_s2 + $0x150] sm:$0xff]  ;;  %v5713_v58 = vpop.eup %4797  ;;  %v1277_v43 = vadd.f32 1.0, %v4796_v30  ;;  %v5715_v32 = vpop.f32.mrf.mxu0 }
 0x141   :  { %v4800_v7 = vpop.eup %4799 }
 0x142   :  { %v5725_v22 = vpop.eup %4801  ;;  %4813 = vrcp.f32 %v1277_v43  ;;  %v5727_v24 = vpop.f32.mrf.mxu0 }
 0x143   :  { %v4804_v62 = vpop.eup %4803  ;;  %4815 = vpow2.f32 %v4258_v40 }
 0x144   :  { %4699 = vset.pattern.permute.xlu1 %v8656_v0  ;;  %360 = vperm.xlu0 %4701, %v134_v31   ;;  %v1279_v31 = vadd.f32 1.0, %v4800_v7  ;;  %v1281_v55 = vadd.f32 1.0, %v4804_v62  ;;  %v4596_v30 = vpop.f32.mrf.mxu0 }
 0x145   :  { %1719 = vperm.xlu1 %4699, %v5694_v25  }
 0x146   :  { %4817 = vrcp.f32 %v1279_v31  ;;  %v5747_v40 = vpop.f32.mrf.mxu0  ;;  %v4264_v31 = vmul.f32 -1.442695, %v963_v53 }
 0x147   :  { %4819 = vpow2.f32 %v4260_v33 }
 0x148   :  { %370 = vperm.xlu0 %4701, %v136_v37   ;;  %v5737_v37 = vpop.eup %4805  ;;  %4821 = vrcp.f32 %v1281_v55  ;;  %v4599_v33 = vpop.f32.mrf.mxu0 }
 0x149   :  { %1729 = vperm.xlu1 %4699, %v5703_v52   ;;  %v4808_v28 = vpop.eup %4807 }
 0x14a   :  { %v5745_v43 = vpop.eup %4809  ;;  %v1283_v7 = vadd.f32 1.0, %v4808_v28  ;;  %v5764_v15 = vpop.f32.mrf.mxu0 }
 0x14b   :  { %v4812_v3 = vpop.eup %4811  ;;  %8706 = vst [vmem:[#allocation2_spill] sm:$0xff] %v5764_v15 }
 0x14c   :  { %380 = vperm.xlu0 %4701, %v138_v54   ;;  %v4262_v54 = vmul.f32 -1.442695, %v953_v5  ;;  %v1285_v62 = vadd.f32 1.0, %v4812_v3  ;;  %v4602_v3 = vpop.f32.mrf.mxu0 }
 0x14d   :  { %1739 = vperm.xlu1 %4699, %v5713_v58  }
 0x14e   :  { %4823 = vpow2.f32 %v4262_v54  ;;  %v5784_v0 = vpop.f32.mrf.mxu0 }
 0x14f   :  { %4825 = vrcp.f32 %v1283_v7  ;;  %v5756_v5 = vpop.eup %4813  ;;  %v150_v7 = vld [vmem:[%s8648_s2 + $0x1c0] sm:$0xff] }
 0x150   :  { %390 = vperm.xlu0 %4701, %v140_v41   ;;  %v5749_v41 = vpop.permute.xlu1 %455  ;;  %4827 = vpow2.f32 %v4264_v31  ;;  %v4816_v55 = vpop.eup %4815 }
 0x151   :  { %1749 = vperm.xlu1 %4699, %v5725_v22   ;;  %4829 = vrcp.f32 %v1285_v62  ;;  %v1287_v53 = vadd.f32 1.0, %v4816_v55  ;;  %v983_v55 = vadd.f32 %v5715_v32, %v5669_v20  ;;  %v993_v32 = vadd.f32 %v4596_v30, %v5687_v9  ;;  %v156_v30 = vld [vmem:[%s8648_s2 + $0x1f0] sm:$0xff] }
 0x152   :  { %v1003_v9 = vadd.f32 %v4599_v33, %v5698_v45  ;;  %v1013_v45 = vadd.f32 %v4602_v3, %v5717_v10  ;;  %v848_v3 = vadd.f32 %v5532_v1, %v5511_v13  ;;  %v858_v13 = vadd.f32 %v5539_v38, %v5525_v26 }
 0x153   :  { %v5766_v54 = vpop.eup %4817  ;;  %v4268_v20 = vmul.f32 -1.442695, %v983_v55  ;;  %v868_v26 = vadd.f32 %v5552_v51, %v5537_v35 }
 0x154   :  { %400 = vperm.xlu0 %4701, %v142_v4   ;;  %v4266_v4 = vmul.f32 -1.442695, %v973_v18  ;;  %v5759_v28 = vpop.permute.xlu1 %465 }
 0x155   :  { %1759 = vperm.xlu1 %4699, %v5737_v37  }
 0x156   :  { %4831 = vpow2.f32 %v4266_v4  ;;  %v152_v4 = vld [vmem:[%s8648_s2 + $0x1d0] sm:$0xff] }
 0x157   :  { %4833 = vrcp.f32 %v1287_v53 }
 0x158   :  { %410 = vperm.xlu0 %4701, %v144_v47   ;;  %v4820_v47 = vpop.eup %4819  ;;  %v5774_v18 = vpop.permute.xlu1 %475 }
 0x159   :  { %1769 = vperm.xlu1 %4699, %v5745_v43   ;;  %v5772_v31 = vpop.eup %4821 }
 0x15a   :  { %8707 = vst [vmem:[#allocation3_spill] sm:$0xff] %v5772_v31 }
 0x15b   :  { %v4824_v62 = vpop.eup %4823 }
 0x15c   :  { %420 = vperm.xlu0 %4701, %v146_v2   ;;  %v1289_v2 = vadd.f32 1.0, %v4820_v47  ;;  %v5786_v39 = vpop.eup %4825  ;;  %v1291_v53 = vadd.f32 1.0, %v4824_v62 }
 0x15d   :  { %1779 = vperm.xlu1 %4699, %v5756_v5   ;;  %v4828_v15 = vpop.eup %4827 }
 0x15e   :  { %4835 = vrcp.f32 %v1289_v2  ;;  %v1293_v2 = vadd.f32 1.0, %v4828_v15 }
 0x15f   :  { %4837 = vrcp.f32 %v1291_v53 }
 0x160   :  { %430 = vperm.xlu0 %4701, %v148_v27   ;;  %v818_v27 = vadd.f32 %v5505_v6, %v5482_v36  ;;  %v4605_v6 = vpop.f32.mrf.mxu0  ;;  %4839 = vpow2.f32 %v4268_v20  ;;  %v4272_v20 = vmul.f32 -1.442695, %v1003_v9 }
 0x161   :  { %1789 = vperm.xlu1 %4699, %v5766_v54  }
 0x162   :  { %v4235_v36 = vmul.f32 -1.442695, %v818_v27  ;;  %v5806_v27 = vpop.f32.mrf.mxu0 }
 0x164   :  { %440 = vperm.xlu0 %4701, %v150_v7   ;;  %v154_v7 = vld [vmem:[%s8648_s2 + $0x1e0] sm:$0xff]  ;;  %4841 = vpow2.f32 %v4235_v36  ;;  %v1023_v36 = vadd.f32 %v4605_v6, %v5732_v61  ;;  %v4241_v6 = vmul.f32 -1.442695, %v848_v3 }
 0x165   :  { %1799 = vperm.xlu1 %4699, %v5772_v31   ;;  %v5795_v31 = vpop.eup %4829  ;;  %4843 = vrcp.f32 %v1293_v2 }
 0x166   :  { %v4832_v62 = vpop.eup %4831 }
 0x167   :  { %v1295_v15 = vadd.f32 1.0, %v4832_v62  ;;  %v5808_v53 = vpop.eup %4833  ;;  %v4276_v62 = vmul.f32 -1.442695, %v1023_v36 }
 0x168   :  { %v5788_v47 = vpop.permute.xlu1 %1639  ;;  %450 = vperm.xlu0 %4701, %v152_v4   ;;  %v828_v4 = vadd.f32 %v5513_v14, %v5490_v48  ;;  %v4608_v48 = vpop.f32.mrf.mxu0 }
 0x169   :  { %8708 = vst [vmem:[#allocation4_spill] sm:$0xff] %v5788_v47  ;;  %1809 = vperm.xlu1 %4699, %v5786_v39   ;;  %v4270_v47 = vmul.f32 -1.442695, %v993_v32  ;;  %v1033_v61 = vadd.f32 %v4608_v48, %v5749_v41 }
 0x16a   :  { %v4237_v32 = vmul.f32 -1.442695, %v828_v4  ;;  %v5823_v2 = vpop.f32.mrf.mxu0 }
 0x16b   :  { %4845 = vpow2.f32 %v4270_v47  ;;  %v5816_v14 = vpop.eup %4835  ;;  %v4274_v47 = vmul.f32 -1.442695, %v1013_v45  ;;  %v4243_v45 = vmul.f32 -1.442695, %v858_v13 }
 0x16c   :  { %460 = vperm.xlu0 %4701, %v154_v7   ;;  %v838_v7 = vadd.f32 %v5523_v23, %v5499_v60  ;;  %4847 = vrcp.f32 %v1295_v15  ;;  %v5827_v23 = vpop.eup %4837  ;;  %v4611_v1 = vpop.f32.mrf.mxu0 }
 0x16d   :  { %v5797_v55 = vpop.permute.xlu1 %2725  ;;  %1819 = vperm.xlu1 %4699, %v5795_v31   ;;  %4849 = vpow2.f32 %v4272_v20  ;;  %v4278_v20 = vmul.f32 -1.442695, %v1033_v61  ;;  %v1043_v41 = vadd.f32 %v4611_v1, %v5759_v28 }
 0x16e   :  { %4851 = vpow2.f32 %v4237_v32  ;;  %v4239_v10 = vmul.f32 -1.442695, %v838_v7 }
 0x16f   :  { %4853 = vpow2.f32 %v4274_v47  ;;  %v4245_v47 = vmul.f32 -1.442695, %v868_v26 }
 0x170   :  { %470 = vperm.xlu0 %4701, %v156_v30   ;;  %4855 = vpow2.f32 %v4239_v10  ;;  %v8713_v10 = vmov 1  }
 0x171   :  { %1829 = vperm.xlu1 %4699, %v5808_v53   ;;  %4857 = vpow2.f32 %v4276_v62  ;;  %v5854_v62 = vpop.permute.xlu0 %2729 }
 0x172   :  { %v5812_v33 = vpop.permute.xlu1 %1649  ;;  %4859 = vpow2.f32 %v4241_v6 }
 0x173   :  { %8709 = vst [vmem:[#allocation5_spill] sm:$0xff] %v5812_v33 }
 0x174   :  { %1634 = vperm.xlu0 %4701, %v5509_v12   ;;  %v4840_v12 = vpop.eup %4839 }
 0x175   :  { %1839 = vperm.xlu1 %4699, %v5816_v14   ;;  %v4842_v30 = vpop.eup %4841  ;;  %v1297_v15 = vadd.f32 1.0, %v4840_v12 }
 0x176   :  { %v5836_v4 = vpop.eup %4843  ;;  %v1264_v38 = vadd.f32 1.0, %v4842_v30  ;;  %v5860_v30 = vpop.permute.xlu0 %2745 }
 0x177   :  { %v5825_v60 = vpop.permute.xlu1 %2737  ;;  %8710 = vst [vmem:[#allocation6_spill] sm:$0xff] %v5836_v4  ;;  %4861 = vrcp.f32 %v1297_v15 }
 0x178   :  { %1644 = vperm.xlu0 %4701, %v5550_v49   ;;  %v4846_v49 = vpop.eup %4845  ;;  %4863 = vpow2.f32 %v4278_v20  ;;  %v8715_v20 = vmov 0  }
 0x179   :  { %1849 = vperm.xlu1 %4699, %v5827_v23   ;;  %v5845_v7 = vpop.eup %4847  ;;  %v1299_v48 = vadd.f32 1.0, %v4846_v49  ;;  %4865 = vpow2.f32 %v4243_v45 }
 0x17a   :  { %8712 = vst [vmem:[#allocation8_spill] sm:$0xff] %v5845_v7  ;;  %v4850_v28 = vpop.eup %4849  ;;  %4867 = vrcp.f32 %v1264_v38 }
 0x17b   :  { %v5834_v9 = vpop.permute.xlu1 %2733  ;;  %v4852_v36 = vpop.eup %4851  ;;  %4869 = vrcp.f32 %v1299_v48  ;;  %v1301_v51 = vadd.f32 1.0, %v4850_v28 }
 0x17c   :  { %1654 = vperm.xlu0 %4701, %v5567_v11   ;;  %v4280_v11 = vmul.f32 -1.442695, %v1043_v41  ;;  %v4854_v3 = vpop.eup %4853 }
 0x17d   :  { %1859 = vperm.xlu1 %4699, %v5836_v4   ;;  %v4856_v12 = vpop.eup %4855  ;;  %v1303_v61 = vadd.f32 1.0, %v4854_v3 }
 0x17e   :  { %4871 = vpow2.f32 %v4280_v11  ;;  %v1268_v13 = vadd.f32 1.0, %v4856_v12  ;;  %v5874_v11 = vpop.permute.xlu0 %2753 }
 0x17f   :  { %4873 = vpow2.f32 %v4245_v47 }
 0x180   :  { %v5843_v32 = vpop.permute.xlu1 %1659  ;;  %1664 = vperm.xlu0 %4701, %v5587_v44   ;;  %v1266_v44 = vadd.f32 1.0, %v4852_v36  ;;  %4875 = vrcp.f32 %v1301_v51 }
 0x181   :  { %8711 = vst [vmem:[#allocation7_spill] sm:$0xff] %v5843_v32  ;;  %1869 = vperm.xlu1 %4699, %v5845_v7  }
 0x182   :  { %4877 = vrcp.f32 %v1266_v44  ;;  %v5885_v44 = vpop.permute.xlu0 %2761 }
 0x183   :  { %4879 = vrcp.f32 %v1303_v61 }
 0x184   :  { %1674 = vperm.xlu0 %4701, %v5605_v8   ;;  %v4858_v8 = vpop.eup %4857  ;;  %4881 = vrcp.f32 %v1268_v13 }
 0x185   :  { %v5850_v35 = vpop.permute.xlu1 %2741  ;;  %4700 = vset.pattern.permute.xlu1 %v8713_v10  ;;  %v4860_v1 = vpop.eup %4859  ;;  %v1305_v15 = vadd.f32 1.0, %v4858_v8 }
 0x186   :  { %2849 = vperm.xlu1 %4700, %v5766_v54   ;;  %v5863_v54 = vpop.eup %4861 }
 0x187   :  { %v4864_v49 = vpop.eup %4863  ;;  %4883 = vrcp.f32 %v1305_v15  ;;  %v5900_v15 = vpop.permute.xlu0 %2769 }
 0x188   :  { %1684 = vperm.xlu0 %4701, %v5623_v42   ;;  %v1270_v42 = vadd.f32 1.0, %v4860_v1  ;;  %v4866_v45 = vpop.eup %4865 }
 0x189   :  { %v1272_v48 = vadd.f32 1.0, %v4866_v45 }
 0x18a   :  { %v5857_v6 = vpop.permute.xlu1 %1669  ;;  %2841 = vperm.xlu1 %4700, %v5756_v5   ;;  %v5869_v5 = vpop.eup %4867  ;;  %4885 = vrcp.f32 %v1270_v42 }
 0x18b   :  { %8714 = vst [vmem:[#allocation9_spill] sm:$0xff] %v5857_v6  ;;  %v5872_v26 = vpop.eup %4869  ;;  %v2782_v45 = vpop.permute.xlu0 %2781 }
 0x18c   :  { %1694 = vperm.xlu0 %4701, %v5659_v21   ;;  %v1307_v21 = vadd.f32 1.0, %v4864_v49  ;;  %v4872_v38 = vpop.eup %4871 }
 0x18d   :  { %v4874_v28 = vpop.eup %4873  ;;  %v1309_v36 = vadd.f32 1.0, %v4872_v38 }
 0x18e   :  { %4702 = vset.pattern.permute.xlu1 %v8715_v20  ;;  %4887 = vrcp.f32 %v1307_v21  ;;  %v5880_v51 = vpop.eup %4875 }
 0x18f   :  { %v5866_v41 = vpop.permute.xlu1 %2749  ;;  %1879 = vperm.xlu1 %4702, %v5863_v54   ;;  %4889 = vrcp.f32 %v1272_v48  ;;  %v5882_v3 = vpop.eup %4877 }
 0x190   :  { %1704 = vperm.xlu0 %4701, %v5573_v46   ;;  %v1274_v46 = vadd.f32 1.0, %v4874_v28  ;;  %4891 = vrcp.f32 %v1309_v36  ;;  %v5890_v61 = vpop.eup %4879 }
 0x191   :  { %v5892_v8 = vpop.eup %4881 }
 0x192   :  { %4893 = vrcp.f32 %v1274_v46  ;;  %8717 = vst [vmem:[#allocation11_spill] sm:$0xff] %v5892_v8 }
 0x193   :  { %1889 = vperm.xlu1 %4702, %v5872_v26  }
 0x194   :  { %v5877_v47 = vpop.permute.xlu1 %1679  ;;  %1714 = vperm.xlu0 %4701, %v5869_v5   ;;  %v5898_v1 = vpop.eup %4883 }
 0x195   :  { %8716 = vst [vmem:[#allocation10_spill] sm:$0xff] %v5877_v47 }
 0x197   :  { %1899 = vperm.xlu1 %4702, %v5880_v51   ;;  %v5902_v49 = vpop.eup %4885 }
 0x198   :  { %1724 = vperm.xlu0 %4701, %v5882_v3   ;;  %8718 = vst [vmem:[#allocation12_spill] sm:$0xff] %v5902_v49 }
 0x199   :  { %v5888_v12 = vpop.permute.xlu1 %2757 }
 0x19b   :  { %1909 = vperm.xlu1 %4702, %v5890_v61   ;;  %v5906_v42 = vpop.eup %4887 }
 0x19c   :  { %1734 = vperm.xlu0 %4701, %v5892_v8   ;;  %v5910_v38 = vpop.eup %4889 }
 0x19d   :  { %8719 = vst [vmem:[#allocation13_spill] sm:$0xff] %v5910_v38  ;;  %v5914_v48 = vpop.eup %4891 }
 0x19e   :  { %v5896_v13 = vpop.permute.xlu1 %1689 }
 0x19f   :  { %1919 = vperm.xlu1 %4702, %v5898_v1   ;;  %v5918_v36 = vpop.eup %4893 }
 0x1a0   :  { %1744 = vperm.xlu0 %4701, %v5902_v49   ;;  %8720 = vst [vmem:[#allocation14_spill] sm:$0xff] %v5918_v36 }
 0x1a3   :  { %v5908_v21 = vpop.permute.xlu1 %2765  ;;  %1929 = vperm.xlu1 %4702, %v5906_v42  }
 0x1a4   :  { %1754 = vperm.xlu0 %4701, %v5910_v38   ;;  %v5932_v38 = vpop.f32.mrf.mxu0 }
 0x1a6   :  { %v5916_v28 = vpop.permute.xlu0 %2845 }
 0x1a7   :  { %1939 = vperm.xlu1 %4702, %v5914_v48  }
 0x1a8   :  { %v5921_v46 = vpop.permute.xlu1 %1699  ;;  %1764 = vperm.xlu0 %4701, %v5918_v36   ;;  %v1535_v36 = vld [vmem:[%s8651_s3 + $0xf8] sm:$0xff] }
 0x1aa   :  { %v5924_v4 = vpop.permute.xlu0 %2837 }
 0x1ab   :  { %4703 = vset.pattern.permute.xlu1 %v8713_v10 }
 0x1ac   :  { %1774 = vperm.xlu0 %4701, %v5643_v59   ;;  %2833 = vperm.xlu1 %4703, %v5745_v43   ;;  %v1534_v59 = vld [vmem:[%s8651_s3 + $0xf0] sm:$0xff] }
 0x1ad   :  { %v2778_v7 = vpop.permute.xlu1 %2777 }
 0x1af   :  { %v321_v8 = vpop.permute.xlu0 %320 }
 0x1b0   :  { %v898_v33 = vadd.f32 %v5581_v29, %v321_v8  ;;  %1784 = vperm.xlu0 %4701, %v5633_v57   ;;  %2825 = vperm.xlu1 %4703, %v5737_v37   ;;  %v4614_v8 = vpop.f32.mrf.mxu0 }
 0x1b1   :  { %v2774_v49 = vpop.permute.xlu1 %2773 }
 0x1b2   :  { %v4251_v32 = vmul.f32 -1.442695, %v898_v33 }
 0x1b3   :  { %v331_v6 = vpop.permute.xlu0 %330 }
 0x1b4   :  { %4895 = vpow2.f32 %v4251_v32  ;;  %v908_v29 = vadd.f32 %v5595_v56, %v331_v6  ;;  %2817 = vperm.xlu1 %4703, %v5725_v22   ;;  %v4313_v32 = vld [vmem:[%s8651_s3 + $0x4f0] sm:$0xff]  ;;  %v4314_v56 = vld [vmem:[%s8651_s3 + $0x4f8] sm:$0xff]  ;;  %v1053_v22 = vadd.f32 %v4614_v8, %v5774_v18  ;;  %v4312_v6 = vld [vmem:[%s8651_s3 + $0x4e8] sm:$0xff] }
 0x1b5   :  { %v4308_v8 = vld [vmem:[%s8651_s3 + $0x4c8] sm:$0xff] }
 0x1b6   :  { %v1710_v57 = vpop.permute.xlu1 %1709  ;;  %v4253_v37 = vmul.f32 -1.442695, %v908_v29 }
 0x1b7   :  { %v1983_v43 = vmul.f32 %v1710_v57, %v1535_v36  ;;  %v1982_v33 = vmul.f32 %v1710_v57, %v1534_v59  ;;  %v341_v10 = vpop.permute.xlu0 %340  ;;  %v4310_v57 = vld [vmem:[%s8651_s3 + $0x4d8] sm:$0xff] }
 0x1b8   :  { %4897 = vpow2.f32 %v4253_v37  ;;  %v918_v47 = vadd.f32 %v5611_v19, %v341_v10  ;;  %2809 = vperm.xlu1 %4703, %v5713_v58   ;;  %v4311_v58 = vld [vmem:[%s8651_s3 + $0x4e0] sm:$0xff]  ;;  %v3009_v37 = vmul.f32 %v4312_v6, %v2782_v45 }
 0x1b9   :  { %2080 = vmatprep.subr.mxu1 %v1983_v43  ;;  %v4282_v43 = vmul.f32 -1.442695, %v1053_v22  ;;  %v4306_v22 = vld [vmem:[%s8651_s3 + $0x4b8] sm:$0xff] }
 0x1ba   :  { %2081 = vmatpush1.msra.mxu1 %v1982_v33  ;;  %v4255_v36 = vmul.f32 -1.442695, %v918_v47  ;;  %v4309_v47 = vld [vmem:[%s8651_s3 + $0x4d0] sm:$0xff]  ;;  %v3008_v33 = vmul.f32 %v4311_v58, %v2782_v45 }
 0x1bb   :  { %v2786_v19 = vpop.permute.xlu1 %2785  ;;  %v351_v10 = vpop.permute.xlu0 %350  ;;  %v3006_v45 = vmul.f32 %v4309_v47, %v2778_v7  ;;  %v4305_v58 = vld [vmem:[%s8651_s3 + $0x4b0] sm:$0xff]  ;;  %v4302_v47 = vld [vmem:[%s8651_s3 + $0x498] sm:$0xff] }
 0x1bc   :  { %v3010_v59 = vmul.f32 %v4313_v32, %v2786_v19  ;;  %v3011_v29 = vmul.f32 %v4314_v56, %v2786_v19  ;;  %4899 = vpow2.f32 %v4255_v36  ;;  %v928_v18 = vadd.f32 %v5625_v50, %v351_v10  ;;  %2801 = vperm.xlu1 %4703, %v5703_v52   ;;  %v4307_v50 = vld [vmem:[%s8651_s3 + $0x4c0] sm:$0xff] }
 0x1bd   :  { %v3007_v56 = vmul.f32 %v4310_v57, %v2778_v7  ;;  %v3005_v10 = vmul.f32 %v4308_v8, %v2774_v49  ;;  %v3004_v7 = vmul.f32 %v4307_v50, %v2774_v49  ;;  %v4301_v8 = vld [vmem:[%s8651_s3 + $0x490] sm:$0xff] }
 0x1be   :  { %3108 = vmatprep.subr.mxu0 %v3011_v29  ;;  %v4257_v32 = vmul.f32 -1.442695, %v928_v18 }
 0x1bf   :  { %3109 = vmatpush1.msra.mxu0 %v3010_v59  ;;  %v361_v52 = vpop.permute.xlu0 %360  ;;  %v4304_v59 = vld [vmem:[%s8651_s3 + $0x4a8] sm:$0xff] }
 0x1c0   :  { %3110 = vmatprep.subr.mxu0 %v3009_v37  ;;  %v5971_v6 = vpop.permute.xlu1 %1719  ;;  %4901 = vpow2.f32 %v4257_v32  ;;  %v938_v36 = vadd.f32 %v5645_v17, %v361_v52  ;;  %2797 = vperm.xlu1 %4703, %v5882_v3   ;;  %v3003_v17 = vmul.f32 %v4306_v22, %v5900_v15  ;;  %v4303_v3 = vld [vmem:[%s8651_s3 + $0x4a0] sm:$0xff]  ;;  %v3001_v32 = vmul.f32 %v4304_v59, %v5908_v21 }
 0x1c1   :  { %3111 = vmatpush1.msra.mxu0 %v3008_v33  ;;  %v4896_v19 = vpop.eup %4895  ;;  %4903 = vpow2.f32 %v4282_v43  ;;  %v3002_v43 = vmul.f32 %v4305_v58, %v5900_v15  ;;  %v3000_v15 = vmul.f32 %v4303_v3, %v5908_v21  ;;  %v4299_v52 = vld [vmem:[%s8651_s3 + $0x480] sm:$0xff] }
 0x1c2   :  { %3112 = vmatprep.subr.mxu0 %v3007_v56  ;;  %v1280_v29 = vadd.f32 1.0, %v4896_v19  ;;  %v4259_v57 = vmul.f32 -1.442695, %v938_v36  ;;  %v4300_v56 = vld [vmem:[%s8651_s3 + $0x488] sm:$0xff]  ;;  %v4298_v36 = vld [vmem:[%s8651_s3 + $0x478] sm:$0xff]  ;;  %v2998_v19 = vmul.f32 %v4301_v8, %v5885_v44 }
 0x1c3   :  { %3113 = vmatpush1.msra.mxu0 %v3006_v45  ;;  %v371_v18 = vpop.permute.xlu0 %370  ;;  %v2997_v59 = vmul.f32 %v4300_v56, %v5888_v12 }
 0x1c4   :  { %3114 = vmatprep.subr.mxu0 %v3005_v10  ;;  %v5988_v37 = vpop.permute.xlu1 %1729  ;;  %4905 = vrcp.f32 %v1280_v29  ;;  %v948_v49 = vadd.f32 %v5667_v34, %v371_v18  ;;  %2793 = vperm.xlu1 %4703, %v5694_v25   ;;  %v2999_v25 = vmul.f32 %v4302_v47, %v5885_v44  ;;  %v4297_v10 = vld [vmem:[%s8651_s3 + $0x470] sm:$0xff]  ;;  %v4296_v29 = vld [vmem:[%s8651_s3 + $0x468] sm:$0xff]  ;;  %v2996_v44 = vmul.f32 %v4299_v52, %v5888_v12  ;;  %v4294_v18 = vld [vmem:[%s8651_s3 + $0x458] sm:$0xff] }
 0x1c5   :  { %3115 = vmatpush1.msra.mxu0 %v3004_v7  ;;  %v4898_v33 = vpop.eup %4897  ;;  %4907 = vpow2.f32 %v4259_v57  ;;  %v4295_v57 = vld [vmem:[%s8651_s3 + $0x460] sm:$0xff]  ;;  %v2994_v47 = vmul.f32 %v4297_v10, %v5874_v11  ;;  %v2993_v8 = vmul.f32 %v4296_v29, %v5866_v41  ;;  %v4288_v10 = vld [vmem:[%s8651_s3 + $0x428] sm:$0xff] }
 0x1c6   :  { %3116 = vmatprep.subr.mxu0 %v3003_v17  ;;  %v1282_v50 = vadd.f32 1.0, %v4898_v33  ;;  %v4261_v34 = vmul.f32 -1.442695, %v948_v49  ;;  %v4293_v33 = vld [vmem:[%s8651_s3 + $0x450] sm:$0xff]  ;;  %v4287_v29 = vld [vmem:[%s8651_s3 + $0x420] sm:$0xff] }
 0x1c7   :  { %3117 = vmatpush1.msra.mxu0 %v3002_v43  ;;  %v381_v22 = vpop.permute.xlu0 %380  ;;  %v1441_v43 = vld [vmem:[%s8652_s4 + $0x8] sm:$0xff]  ;;  %v2990_v52 = vmul.f32 %v4293_v33, %v5860_v30 }
 0x1c8   :  { %3118 = vmatprep.subr.mxu0 %v3001_v32  ;;  %v6008_v45 = vpop.permute.xlu1 %1739  ;;  %4909 = vrcp.f32 %v1282_v50  ;;  %v958_v21 = vadd.f32 %v5684_v16, %v381_v22  ;;  %2789 = vperm.xlu1 %4703, %v5869_v5   ;;  %v2995_v5 = vmul.f32 %v4298_v36, %v5874_v11  ;;  %v4291_v50 = vld [vmem:[%s8651_s3 + $0x440] sm:$0xff] }
 0x1c9   :  { %3119 = vmatpush1.msra.mxu0 %v3000_v15  ;;  %v4900_v58 = vpop.eup %4899  ;;  %4911 = vpow2.f32 %v4261_v34  ;;  %2144 = vmatprep.mubr.f32.mxu1 %v1441_v43  ;;  %v2991_v15 = vmul.f32 %v4294_v18, %v5860_v30  ;;  %v4285_v18 = vld [vmem:[%s8651_s3 + $0x410] sm:$0xff] }
 0x1ca   :  { %3120 = vmatprep.subr.mxu0 %v2999_v25  ;;  %v1284_v7 = vadd.f32 1.0, %v4900_v58  ;;  %v4263_v16 = vmul.f32 -1.442695, %v958_v21  ;;  %3172 = vmatprep.mubr.f32.mxu0 %v1441_v43 }
 0x1cb   :  { %3121 = vmatpush1.msra.mxu0 %v2998_v19  ;;  %v391_v17 = vpop.permute.xlu0 %390  ;;  %v4289_v19 = vld [vmem:[%s8651_s3 + $0x430] sm:$0xff] }
 0x1cc   :  { %3122 = vmatprep.subr.mxu0 %v2997_v59  ;;  %v6028_v3 = vpop.permute.xlu1 %1749  ;;  %4913 = vrcp.f32 %v1284_v7  ;;  %v968_v12 = vadd.f32 %v5705_v63, %v391_v17  ;;  %2897 = vperm.xlu1 %4703, %v5827_v23   ;;  %v4292_v63 = vld [vmem:[%s8651_s3 + $0x448] sm:$0xff]  ;;  %v2992_v23 = vmul.f32 %v4295_v57, %v5866_v41  ;;  %v4290_v41 = vld [vmem:[%s8651_s3 + $0x438] sm:$0xff] }
 0x1cd   :  { %3123 = vmatpush1.msra.mxu0 %v2996_v44  ;;  %v4902_v49 = vpop.eup %4901  ;;  %4915 = vpow2.f32 %v4263_v16  ;;  %v2989_v21 = vmul.f32 %v4292_v63, %v5850_v35  ;;  %v2987_v59 = vmul.f32 %v4290_v41, %v5825_v60 }
 0x1ce   :  { %3124 = vmatprep.subr.mxu0 %v2995_v5  ;;  %v1286_v11 = vadd.f32 1.0, %v4902_v49  ;;  %v4265_v32 = vmul.f32 -1.442695, %v968_v12  ;;  %v4904_v56 = vpop.eup %4903  ;;  %v4286_v5 = vld [vmem:[%s8651_s3 + $0x418] sm:$0xff]  ;;  %v4283_v49 = vld [vmem:[%s8651_s3 + $0x400] sm:$0xff] }
 0x1cf   :  { %3125 = vmatpush1.msra.mxu0 %v2994_v47  ;;  %v401_v34 = vpop.permute.xlu0 %400  ;;  %v1311_v58 = vadd.f32 1.0, %v4904_v56  ;;  %v2985_v47 = vmul.f32 %v4288_v10, %v5834_v9  ;;  %v2983_v43 = vmul.f32 %v4286_v5, %v5854_v62 }
 0x1d0   :  { %3126 = vmatprep.subr.mxu0 %v2993_v8  ;;  %v6051_v25 = vpop.permute.xlu1 %1759  ;;  %4917 = vrcp.f32 %v1286_v11  ;;  %v978_v22 = vadd.f32 %v5727_v24, %v401_v34  ;;  %2889 = vperm.xlu1 %4703, %v5816_v14   ;;  %v2988_v24 = vmul.f32 %v4291_v50, %v5850_v35  ;;  %v2986_v35 = vmul.f32 %v4289_v19, %v5825_v60  ;;  %v4284_v60 = vld [vmem:[%s8651_s3 + $0x408] sm:$0xff]  ;;  %v8721_v11 = vld [vmem:[#allocation2_spill] sm:$0xff] }
 0x1d1   :  { %3127 = vmatpush1.msra.mxu0 %v2992_v23  ;;  %v6059_v36 = vpop.eup %4905  ;;  %4919 = vpow2.f32 %v4265_v32  ;;  %v2982_v23 = vmul.f32 %v4285_v18, %v5854_v62  ;;  %v2981_v56 = vmul.f32 %v4284_v60, %v5797_v55  ;;  %v2980_v50 = vmul.f32 %v4283_v49, %v5797_v55 }
 0x1d2   :  { %3128 = vmatprep.subr.mxu0 %v2991_v15  ;;  %v4908_v30 = vpop.eup %4907  ;;  %v4267_v14 = vmul.f32 -1.442695, %v978_v22  ;;  %1794 = vperm.xlu0 %4701, %v6059_v36  }
 0x1d3   :  { %3129 = vmatpush1.msra.mxu0 %v2990_v52  ;;  %v1288_v44 = vadd.f32 1.0, %v4908_v30  ;;  %v411_v7 = vpop.permute.xlu0 %410 }
 0x1d4   :  { %3130 = vmatprep.subr.mxu0 %v2989_v21  ;;  %v6074_v16 = vpop.permute.xlu1 %1769  ;;  %4921 = vpow2.f32 %v4267_v14  ;;  %v988_v57 = vadd.f32 %v5747_v40, %v411_v7  ;;  %2881 = vperm.xlu1 %4703, %v5808_v53   ;;  %v2984_v40 = vmul.f32 %v4287_v29, %v5834_v9 }
 0x1d5   :  { %3131 = vmatpush1.msra.mxu0 %v2988_v24  ;;  %v6082_v17 = vpop.eup %4909  ;;  %4923 = vrcp.f32 %v1288_v44  ;;  %v8722_v24 = vld [vmem:[#allocation3_spill] sm:$0xff] }
 0x1d6   :  { %3132 = vmatprep.subr.mxu0 %v2987_v59  ;;  %v4912_v12 = vpop.eup %4911  ;;  %4925 = vrcp.f32 %v1311_v58  ;;  %v4269_v53 = vmul.f32 -1.442695, %v988_v57  ;;  %1804 = vperm.xlu0 %4701, %v6082_v17  }
 0x1d7   :  { %3133 = vmatpush1.msra.mxu0 %v2986_v35  ;;  %v1290_v33 = vadd.f32 1.0, %v4912_v12  ;;  %v421_v8 = vpop.permute.xlu0 %420 }
 0x1d8   :  { %3134 = vmatprep.subr.mxu0 %v2985_v47  ;;  %v6097_v63 = vpop.permute.xlu1 %1779  ;;  %4927 = vpow2.f32 %v4269_v53  ;;  %v998_v9 = vadd.f32 %v8721_v11, %v421_v8  ;;  %2873 = vperm.xlu1 %4703, %v5795_v31  }
 0x1d9   :  { %3135 = vmatpush1.msra.mxu0 %v2984_v40  ;;  %v6102_v32 = vpop.eup %4913  ;;  %4929 = vrcp.f32 %v1290_v33  ;;  %v1047_v40 = vpop.f32.mrf.mxu0 }
 0x1da   :  { %3136 = vmatprep.subr.mxu0 %v2983_v43  ;;  %v4916_v15 = vpop.eup %4915  ;;  %v4271_v34 = vmul.f32 -1.442695, %v998_v9  ;;  %1814 = vperm.xlu0 %4701, %v6102_v32  }
 0x1db   :  { %3137 = vmatpush1.msra.mxu0 %v2982_v23  ;;  %v1292_v62 = vadd.f32 1.0, %v4916_v15  ;;  %v431_v52 = vpop.permute.xlu0 %430 }
 0x1dc   :  { %3138 = vmatprep.subr.mxu0 %v2981_v56  ;;  %v6107_v41 = vpop.permute.xlu1 %1789  ;;  %4931 = vpow2.f32 %v4271_v34  ;;  %v1008_v31 = vadd.f32 %v5784_v0, %v431_v52  ;;  %2865 = vperm.xlu1 %4703, %v5786_v39  }
 0x1dd   :  { %3139 = vmatpush1.msra.mxu0 %v2980_v50  ;;  %v6111_v22 = vpop.eup %4917  ;;  %4933 = vrcp.f32 %v1292_v62 }
 0x1de   :  { %v4920_v19 = vpop.eup %4919  ;;  %v4273_v55 = vmul.f32 -1.442695, %v1008_v31  ;;  %1824 = vperm.xlu0 %4701, %v6111_v22  }
 0x1df   :  { %v1294_v21 = vadd.f32 1.0, %v4920_v19  ;;  %v441_v30 = vpop.permute.xlu0 %440 }
 0x1e0   :  { %v6114_v58 = vpop.permute.xlu1 %1799  ;;  %4935 = vpow2.f32 %v4273_v55  ;;  %v1018_v10 = vadd.f32 %v5806_v27, %v441_v30  ;;  %2857 = vperm.xlu1 %4703, %v8722_v24  }
 0x1e1   :  { %v4922_v0 = vpop.eup %4921  ;;  %4937 = vrcp.f32 %v1294_v21 }
 0x1e2   :  { %v6118_v39 = vpop.eup %4923  ;;  %v1296_v14 = vadd.f32 1.0, %v4922_v0  ;;  %v4275_v59 = vmul.f32 -1.442695, %v1018_v10 }
 0x1e3   :  { %v6120_v29 = vpop.eup %4925  ;;  %1834 = vperm.xlu0 %4701, %v6118_v39   ;;  %v451_v44 = vpop.permute.xlu0 %450 }
 0x1e4   :  { %4939 = vrcp.f32 %v1296_v14  ;;  %v1028_v7 = vadd.f32 %v5823_v2, %v451_v44  ;;  %2977 = vperm.xlu1 %4703, %v6120_v29   ;;  %v6125_v5 = vpop.permute.xlu1 %1809  ;;  %v4345_v44 = vld [vmem:[%s8651_s3 + $0x5f0] sm:$0xff] }
 0x1e5   :  { %v4928_v27 = vpop.eup %4927  ;;  %4941 = vpow2.f32 %v4275_v59 }
 0x1e6   :  { %v6127_v35 = vpop.eup %4929  ;;  %v1298_v57 = vadd.f32 1.0, %v4928_v27  ;;  %v4277_v18 = vmul.f32 -1.442695, %v1028_v7  ;;  %v4346_v7 = vld [vmem:[%s8651_s3 + $0x5f8] sm:$0xff] }
 0x1e7   :  { %1844 = vperm.xlu0 %4701, %v6127_v35   ;;  %v461_v47 = vpop.permute.xlu0 %460 }
 0x1e8   :  { %4943 = vrcp.f32 %v1298_v57  ;;  %v1038_v12 = vadd.f32 %v5932_v38, %v461_v47  ;;  %2969 = vperm.xlu1 %4703, %v5914_v48   ;;  %v6132_v60 = vpop.permute.xlu1 %1819  ;;  %v4343_v47 = vld [vmem:[%s8651_s3 + $0x5e0] sm:$0xff] }
 0x1e9   :  { %v4932_v2 = vpop.eup %4931  ;;  %4945 = vpow2.f32 %v4277_v18 }
 0x1ea   :  { %v6134_v53 = vpop.eup %4933  ;;  %v1300_v43 = vadd.f32 1.0, %v4932_v2  ;;  %v4279_v49 = vmul.f32 -1.442695, %v1038_v12 }
 0x1eb   :  { %1854 = vperm.xlu0 %4701, %v6134_v53   ;;  %v471_v33 = vpop.permute.xlu0 %470 }
 0x1ec   :  { %4947 = vrcp.f32 %v1300_v43  ;;  %v1048_v8 = vadd.f32 %v1047_v40, %v471_v33  ;;  %2961 = vperm.xlu1 %4703, %v5906_v42   ;;  %v6138_v23 = vpop.permute.xlu1 %1829  ;;  %v4342_v43 = vld [vmem:[%s8651_s3 + $0x5d8] sm:$0xff]  ;;  %v3040_v33 = vmul.f32 %v4343_v47, %v5916_v28  ;;  %v1529_v47 = vld [vmem:[%s8651_s3 + $0xc8] sm:$0xff] }
 0x1ed   :  { %v4936_v38 = vpop.eup %4935  ;;  %4949 = vpow2.f32 %v4279_v49 }
 0x1ee   :  { %v6140_v48 = vpop.eup %4937  ;;  %v1302_v11 = vadd.f32 1.0, %v4936_v38  ;;  %v4281_v9 = vmul.f32 -1.442695, %v1048_v8  ;;  %v4340_v8 = vld [vmem:[%s8651_s3 + $0x5c8] sm:$0xff] }
 0x1ef   :  { %1864 = vperm.xlu0 %4701, %v6140_v48   ;;  %v6143_v56 = vpop.permute.xlu0 %1634 }
 0x1f0   :  { %4951 = vrcp.f32 %v1302_v11  ;;  %2953 = vperm.xlu1 %4703, %v5898_v1   ;;  %v6146_v15 = vpop.permute.xlu1 %1839 }
 0x1f1   :  { %v6148_v50 = vpop.eup %4939  ;;  %4953 = vpow2.f32 %v4281_v9  ;;  %v4339_v9 = vld [vmem:[%s8651_s3 + $0x5c0] sm:$0xff] }
 0x1f2   :  { %v4942_v42 = vpop.eup %4941 }
 0x1f3   :  { %v1304_v34 = vadd.f32 1.0, %v4942_v42  ;;  %1874 = vperm.xlu0 %4701, %v6148_v50   ;;  %v6151_v62 = vpop.permute.xlu0 %1644 }
 0x1f4   :  { %2945 = vperm.xlu1 %4703, %v5890_v61   ;;  %v6154_v52 = vpop.permute.xlu1 %1849 }
 0x1f5   :  { %v6156_v31 = vpop.eup %4943  ;;  %4955 = vrcp.f32 %v1304_v34 }
 0x1f6   :  { %v4946_v19 = vpop.eup %4945 }
 0x1f7   :  { %v1306_v1 = vadd.f32 1.0, %v4946_v19  ;;  %1884 = vperm.xlu0 %4701, %v6156_v31   ;;  %v6159_v55 = vpop.permute.xlu0 %1654 }
 0x1f8   :  { %2937 = vperm.xlu1 %4703, %v5880_v51   ;;  %v6162_v21 = vpop.permute.xlu1 %1859 }
 0x1f9   :  { %v6164_v30 = vpop.eup %4947  ;;  %4957 = vrcp.f32 %v1306_v1  ;;  %v3036_v1 = vmul.f32 %v4339_v9, %v5924_v4  ;;  %v1525_v9 = vld [vmem:[%s8651_s3 + $0xa8] sm:$0xff] }
 0x1fa   :  { %v4950_v10 = vpop.eup %4949 }
 0x1fb   :  { %v1308_v61 = vadd.f32 1.0, %v4950_v10  ;;  %1894 = vperm.xlu0 %4701, %v6164_v30   ;;  %v6167_v24 = vpop.permute.xlu0 %1664  ;;  %v1532_v10 = vld [vmem:[%s8651_s3 + $0xe0] sm:$0xff] }
 0x1fc   :  { %2929 = vperm.xlu1 %4703, %v5872_v26   ;;  %v6170_v0 = vpop.permute.xlu1 %1869  ;;  %v4344_v26 = vld [vmem:[%s8651_s3 + $0x5e8] sm:$0xff] }
 0x1fd   :  { %v6172_v14 = vpop.eup %4951  ;;  %4959 = vrcp.f32 %v1308_v61  ;;  %v3041_v49 = vmul.f32 %v4344_v26, %v5916_v28  ;;  %v3037_v28 = vmul.f32 %v4340_v8, %v5924_v4  ;;  %v1533_v61 = vld [vmem:[%s8651_s3 + $0xe8] sm:$0xff]  ;;  %v1530_v26 = vld [vmem:[%s8651_s3 + $0xd0] sm:$0xff] }
 0x1fe   :  { %v4954_v59 = vpop.eup %4953  ;;  %v1526_v8 = vld [vmem:[%s8651_s3 + $0xb0] sm:$0xff] }
 0x1ff   :  { %1904 = vperm.xlu0 %4701, %v6172_v14   ;;  %v6175_v51 = vpop.permute.xlu0 %1674  ;;  %v1310_v27 = vadd.f32 1.0, %v4954_v59 }
 0x200   :  { %2921 = vperm.xlu1 %4703, %v5863_v54   ;;  %v4341_v54 = vld [vmem:[%s8651_s3 + $0x5d0] sm:$0xff] }
 0x201   :  { %v2850_v57 = vpop.permute.xlu1 %2849  ;;  %4961 = vrcp.f32 %v1310_v27 }
 0x202   :  { %v6187_v18 = vpop.eup %4955  ;;  %v3042_v12 = vmul.f32 %v4345_v44, %v2850_v57  ;;  %v3043_v2 = vmul.f32 %v4346_v7, %v2850_v57  ;;  %v1531_v7 = vld [vmem:[%s8651_s3 + $0xd8] sm:$0xff] }
 0x203   :  { %1914 = vperm.xlu0 %4701, %v6187_v18   ;;  %v6193_v40 = vpop.permute.xlu0 %1684 }
 0x204   :  { %3140 = vmatprep.subr.mxu0 %v3043_v2  ;;  %4706 = vset.pattern.permute.xlu1 %v8715_v20  ;;  %v1528_v2 = vld [vmem:[%s8651_s3 + $0xc0] sm:$0xff] }
 0x205   :  { %3141 = vmatpush2.msra.mxu0 %v3042_v12  ;;  %v2842_v38 = vpop.permute.xlu1 %2841  ;;  %v1979_v12 = vmul.f32 %v5921_v46, %v1531_v7  ;;  %v1973_v7 = vmul.f32 %v6193_v40, %v1525_v9  ;;  %v1517_v9 = vld [vmem:[%s8651_s3 + $0x68] sm:$0xff] }
 0x206   :  { %v6207_v11 = vpop.eup %4957  ;;  %v3038_v42 = vmul.f32 %v4341_v54, %v2842_v38  ;;  %v3039_v34 = vmul.f32 %v4342_v43, %v2842_v38  ;;  %3142 = vmatprep.subr.mxu0 %v3041_v49  ;;  %v1527_v43 = vld [vmem:[%s8651_s3 + $0xb8] sm:$0xff]  ;;  %v1978_v49 = vmul.f32 %v5921_v46, %v1530_v26 }
 0x207   :  { %1924 = vperm.xlu0 %4701, %v6207_v11   ;;  %v1695_v19 = vpop.permute.xlu0 %1694  ;;  %3143 = vmatpush2.msra.mxu0 %v3040_v33  ;;  %v1975_v46 = vmul.f32 %v5896_v13, %v1527_v43  ;;  %v8724_v43 = vmov 1  }
 0x208   :  { %3144 = vmatprep.subr.mxu0 %v3039_v34  ;;  %v1977_v38 = vmul.f32 %v1695_v19, %v1529_v47 }
 0x209   :  { %3145 = vmatpush2.msra.mxu0 %v3038_v42  ;;  %v1976_v42 = vmul.f32 %v1695_v19, %v1528_v2 }
 0x20a   :  { %v6221_v59 = vpop.eup %4959  ;;  %3146 = vmatprep.subr.mxu0 %v3037_v28  ;;  %v6223_v44 = vpop.permute.xlu1 %1879 }
 0x20b   :  { %1934 = vperm.xlu0 %4701, %v6221_v59   ;;  %v1705_v4 = vpop.permute.xlu0 %1704  ;;  %3147 = vmatpush2.msra.mxu0 %v3036_v1  ;;  %v1523_v1 = vld [vmem:[%s8651_s3 + $0x98] sm:$0xff] }
 0x20c   :  { %v1980_v27 = vmul.f32 %v1705_v4, %v1532_v10  ;;  %v1981_v57 = vmul.f32 %v1705_v4, %v1533_v61  ;;  %v1974_v10 = vmul.f32 %v5896_v13, %v1526_v8  ;;  %v1522_v61 = vld [vmem:[%s8651_s3 + $0x90] sm:$0xff]  ;;  %v1521_v4 = vld [vmem:[%s8651_s3 + $0x88] sm:$0xff]  ;;  %v8723_v13 = vld [vmem:[#allocation10_spill] sm:$0xff] }
 0x20d   :  { %v1970_v2 = vmul.f32 %v8723_v13, %v1522_v61  ;;  %v1969_v8 = vmul.f32 %v6175_v51, %v1521_v4  ;;  %v1515_v61 = vld [vmem:[%s8651_s3 + $0x58] sm:$0xff] }
 0x20e   :  { %2082 = vmatprep.subr.mxu1 %v1981_v57  ;;  %v6239_v54 = vpop.permute.xlu1 %1889  ;;  %v6254_v34 = vpop.eup %4961  ;;  %v1520_v57 = vld [vmem:[%s8651_s3 + $0x80] sm:$0xff] }
 0x20f   :  { %1949 = vperm.xlu0 %4701, %v6120_v29   ;;  %v6246_v33 = vpop.permute.xlu0 %1714  ;;  %2083 = vmatpush1.msra.mxu1 %v1980_v27  ;;  %v1524_v29 = vld [vmem:[%s8651_s3 + $0xa0] sm:$0xff]  ;;  %v1971_v27 = vmul.f32 %v8723_v13, %v1523_v1  ;;  %v8727_v13 = vld [vmem:[#allocation13_spill] sm:$0xff] }
 0x210   :  { %2084 = vmatprep.subr.mxu1 %v1979_v12  ;;  %v1972_v26 = vmul.f32 %v6193_v40, %v1524_v29  ;;  %v1519_v12 = vld [vmem:[%s8651_s3 + $0x78] sm:$0xff]  ;;  %v1518_v40 = vld [vmem:[%s8651_s3 + $0x70] sm:$0xff]  ;;  %v1516_v1 = vld [vmem:[%s8651_s3 + $0x60] sm:$0xff] }
 0x211   :  { %2085 = vmatpush1.msra.mxu1 %v1978_v49 }
 0x212   :  { %2086 = vmatprep.subr.mxu1 %v1977_v38  ;;  %v6260_v28 = vpop.permute.xlu1 %1899  ;;  %v8725_v38 = vld [vmem:[#allocation14_spill] sm:$0xff] }
 0x213   :  { %1944 = vperm.xlu0 %4701, %v6254_v34   ;;  %v6267_v19 = vpop.permute.xlu0 %1724  ;;  %2087 = vmatpush1.msra.mxu1 %v1976_v42  ;;  %v1968_v42 = vmul.f32 %v6175_v51, %v1520_v57  ;;  %v1514_v51 = vld [vmem:[%s8651_s3 + $0x50] sm:$0xff]  ;;  %v1964_v57 = vmul.f32 %v6167_v24, %v1516_v1 }
 0x214   :  { %2088 = vmatprep.subr.mxu1 %v1975_v46  ;;  %v8726_v46 = vld [vmem:[#allocation9_spill] sm:$0xff] }
 0x215   :  { %2089 = vmatpush1.msra.mxu1 %v1974_v10  ;;  %v1967_v29 = vmul.f32 %v8726_v46, %v1519_v12  ;;  %v8728_v12 = vld [vmem:[#allocation7_spill] sm:$0xff] }
 0x216   :  { %2090 = vmatprep.subr.mxu1 %v1973_v7  ;;  %v6281_v47 = vpop.permute.xlu1 %1909  ;;  %v1966_v7 = vmul.f32 %v8726_v46, %v1518_v40  ;;  %v8729_v46 = vld [vmem:[#allocation12_spill] sm:$0xff] }
 0x217   :  { %4704 = vset.pattern.permute.xlu0 %v8724_v43  ;;  %v6288_v49 = vpop.permute.xlu0 %1734  ;;  %2091 = vmatpush1.msra.mxu1 %v1972_v26  ;;  %v1965_v26 = vmul.f32 %v6167_v24, %v1517_v9  ;;  %v1512_v43 = vld [vmem:[%s8651_s3 + $0x40] sm:$0xff]  ;;  %v1510_v24 = vld [vmem:[%s8651_s3 + $0x30] sm:$0xff] }
 0x218   :  { %2829 = vperm.xlu0 %4704, %v8725_v38   ;;  %2092 = vmatprep.subr.mxu1 %v1971_v27  ;;  %v1513_v27 = vld [vmem:[%s8651_s3 + $0x48] sm:$0xff]  ;;  %v1962_v38 = vmul.f32 %v8728_v12, %v1514_v51  ;;  %v1960_v1 = vmul.f32 %v6159_v55, %v1512_v43  ;;  %v1508_v51 = vld [vmem:[%s8651_s3 + $0x20] sm:$0xff] }
 0x219   :  { %2093 = vmatpush1.msra.mxu1 %v1970_v2  ;;  %v1963_v2 = vmul.f32 %v8728_v12, %v1515_v61  ;;  %v8730_v61 = vld [vmem:[#allocation5_spill] sm:$0xff]  ;;  %v8731_v12 = vld [vmem:[#allocation11_spill] sm:$0xff]  ;;  %v1956_v43 = vmul.f32 %v6151_v62, %v1508_v51  ;;  %v8733_v51 = vld [vmem:[#allocation8_spill] sm:$0xff] }
 0x21a   :  { %2094 = vmatprep.subr.mxu1 %v1969_v8  ;;  %v6303_v10 = vpop.permute.xlu1 %1919  ;;  %v1511_v8 = vld [vmem:[%s8651_s3 + $0x38] sm:$0xff] }
 0x21b   :  { %v6309_v4 = vpop.permute.xlu0 %1744  ;;  %2095 = vmatpush1.msra.mxu1 %v1968_v42  ;;  %v1961_v42 = vmul.f32 %v6159_v55, %v1513_v27 }
 0x21c   :  { %2821 = vperm.xlu0 %4704, %v8727_v13   ;;  %2096 = vmatprep.subr.mxu1 %v1967_v29  ;;  %v1509_v29 = vld [vmem:[%s8651_s3 + $0x28] sm:$0xff]  ;;  %v1958_v13 = vmul.f32 %v8730_v61, %v1510_v24 }
 0x21d   :  { %2097 = vmatpush1.msra.mxu1 %v1966_v7  ;;  %v1959_v7 = vmul.f32 %v8730_v61, %v1511_v8  ;;  %v1957_v55 = vmul.f32 %v6151_v62, %v1509_v29  ;;  %v4337_v8 = vld [vmem:[%s8651_s3 + $0x5b0] sm:$0xff]  ;;  %v1505_v24 = vld [vmem:[%s8651_s3 + $0x8] sm:$0xff]  ;;  %v1504_v62 = vld [vmem:[%s8651_s3] sm:$0xff] }
 0x21e   :  { %2098 = vmatprep.subr.mxu1 %v1965_v26  ;;  %v6324_v40 = vpop.permute.xlu1 %1929 }
 0x21f   :  { %v6330_v9 = vpop.permute.xlu0 %1754  ;;  %2099 = vmatpush1.msra.mxu1 %v1964_v57  ;;  %v1507_v57 = vld [vmem:[%s8651_s3 + $0x18] sm:$0xff] }
 0x220   :  { %2813 = vperm.xlu0 %4704, %v8729_v46   ;;  %2100 = vmatprep.subr.mxu1 %v1963_v2  ;;  %v1506_v2 = vld [vmem:[%s8651_s3 + $0x10] sm:$0xff] }
 0x221   :  { %2101 = vmatpush1.msra.mxu1 %v1962_v38  ;;  %v4338_v38 = vld [vmem:[%s8651_s3 + $0x5b8] sm:$0xff] }
 0x222   :  { %2102 = vmatprep.subr.mxu1 %v1961_v42  ;;  %v6345_v26 = vpop.permute.xlu1 %1939  ;;  %v8732_v42 = vld [vmem:[#allocation4_spill] sm:$0xff] }
 0x223   :  { %v6348_v27 = vpop.permute.xlu0 %1764  ;;  %2103 = vmatpush1.msra.mxu1 %v1960_v1  ;;  %v1955_v46 = vmul.f32 %v8732_v42, %v1507_v57  ;;  %v1954_v61 = vmul.f32 %v8732_v42, %v1506_v2  ;;  %v1566_v57 = vld [vmem:[%s8651_s3 + $0x1f0] sm:$0xff]  ;;  %v1565_v2 = vld [vmem:[%s8651_s3 + $0x1e8] sm:$0xff]  ;;  %v1952_v42 = vmul.f32 %v6143_v56, %v1504_v62 }
 0x224   :  { %2805 = vperm.xlu0 %4704, %v8731_v12   ;;  %2104 = vmatprep.subr.mxu1 %v1959_v7  ;;  %v1567_v7 = vld [vmem:[%s8651_s3 + $0x1f8] sm:$0xff]  ;;  %v1561_v62 = vld [vmem:[%s8651_s3 + $0x1c8] sm:$0xff] }
 0x225   :  { %2105 = vmatpush1.msra.mxu1 %v1958_v13 }
 0x226   :  { %2106 = vmatprep.subr.mxu1 %v1957_v55  ;;  %v1953_v55 = vmul.f32 %v6143_v56, %v1505_v24  ;;  %v1563_v24 = vld [vmem:[%s8651_s3 + $0x1d8] sm:$0xff]  ;;  %v1562_v56 = vld [vmem:[%s8651_s3 + $0x1d0] sm:$0xff] }
 0x227   :  { %v1775_v29 = vpop.permute.xlu0 %1774  ;;  %2107 = vmatpush1.msra.mxu1 %v1956_v43  ;;  %v2834_v1 = vpop.permute.xlu1 %2833  ;;  %v1564_v43 = vld [vmem:[%s8651_s3 + $0x1e0] sm:$0xff] }
 0x228   :  { %2913 = vperm.xlu0 %4704, %v8733_v51   ;;  %v3034_v13 = vmul.f32 %v4337_v8, %v2834_v1  ;;  %v3035_v12 = vmul.f32 %v4338_v38, %v2834_v1  ;;  %2108 = vmatprep.subr.mxu1 %v1955_v46  ;;  %v2015_v8 = vmul.f32 %v6107_v41, %v1567_v7 }
 0x229   :  { %2109 = vmatpush1.msra.mxu1 %v1954_v61  ;;  %v2014_v46 = vmul.f32 %v6107_v41, %v1566_v57  ;;  %v2011_v61 = vmul.f32 %v6097_v63, %v1563_v24  ;;  %v1560_v41 = vld [vmem:[%s8651_s3 + $0x1c0] sm:$0xff]  ;;  %v2010_v7 = vmul.f32 %v6097_v63, %v1562_v56  ;;  %v2009_v57 = vmul.f32 %v1775_v29, %v1561_v62  ;;  %v1553_v24 = vld [vmem:[%s8651_s3 + $0x188] sm:$0xff] }
 0x22a   :  { %3148 = vmatprep.subr.mxu0 %v3035_v12  ;;  %2110 = vmatprep.subr.mxu1 %v1953_v55  ;;  %v1558_v12 = vld [vmem:[%s8651_s3 + $0x1b0] sm:$0xff]  ;;  %v1557_v55 = vld [vmem:[%s8651_s3 + $0x1a8] sm:$0xff]  ;;  %v1556_v63 = vld [vmem:[%s8651_s3 + $0x1a0] sm:$0xff]  ;;  %v2001_v56 = vmul.f32 %v6330_v9, %v1553_v24 }
 0x22b   :  { %v1785_v38 = vpop.permute.xlu0 %1784  ;;  %3149 = vmatpush2.msra.mxu0 %v3034_v13  ;;  %2111 = vmatpush1.msra.mxu1 %v1952_v42  ;;  %v8734_v13 = vld [vmem:[#allocation6_spill] sm:$0xff]  ;;  %v1555_v42 = vld [vmem:[%s8651_s3 + $0x198] sm:$0xff]  ;;  %v1549_v62 = vld [vmem:[%s8651_s3 + $0x168] sm:$0xff] }
 0x22c   :  { %2909 = vperm.xlu0 %4704, %v6140_v48   ;;  %v2012_v1 = vmul.f32 %v1785_v38, %v1564_v43  ;;  %v2013_v51 = vmul.f32 %v1785_v38, %v1565_v2  ;;  %2112 = vmatprep.subr.mxu1 %v2015_v8  ;;  %v1559_v48 = vld [vmem:[%s8651_s3 + $0x1b8] sm:$0xff]  ;;  %v2008_v43 = vmul.f32 %v1775_v29, %v1560_v41  ;;  %v1554_v29 = vld [vmem:[%s8651_s3 + $0x190] sm:$0xff] }
 0x22d   :  { %2113 = vmatpush2.msra.mxu1 %v2014_v46  ;;  %v2007_v2 = vmul.f32 %v6074_v16, %v1559_v48  ;;  %v2006_v8 = vmul.f32 %v6074_v16, %v1558_v12  ;;  %v2005_v38 = vmul.f32 %v6348_v27, %v1557_v55  ;;  %v2004_v46 = vmul.f32 %v6348_v27, %v1556_v63  ;;  %v1552_v16 = vld [vmem:[%s8651_s3 + $0x180] sm:$0xff]  ;;  %v1550_v27 = vld [vmem:[%s8651_s3 + $0x170] sm:$0xff] }
 0x22e   :  { %2114 = vmatprep.subr.mxu1 %v2013_v51  ;;  %v2002_v51 = vmul.f32 %v6051_v25, %v1554_v29  ;;  %v1998_v48 = vmul.f32 %v6028_v3, %v1550_v27 }
 0x22f   :  { %2115 = vmatpush2.msra.mxu1 %v2012_v1  ;;  %v2003_v1 = vmul.f32 %v6051_v25, %v1555_v42  ;;  %v1548_v25 = vld [vmem:[%s8651_s3 + $0x160] sm:$0xff] }
 0x230   :  { %2905 = vperm.xlu0 %4704, %v8734_v13   ;;  %2116 = vmatprep.subr.mxu1 %v2011_v61  ;;  %v2000_v61 = vmul.f32 %v6330_v9, %v1552_v16  ;;  %v1546_v9 = vld [vmem:[%s8651_s3 + $0x150] sm:$0xff]  ;;  %v1545_v13 = vld [vmem:[%s8651_s3 + $0x148] sm:$0xff]  ;;  %v1996_v12 = vmul.f32 %v6309_v4, %v1548_v25 }
 0x231   :  { %2117 = vmatpush2.msra.mxu1 %v2010_v7  ;;  %v1997_v7 = vmul.f32 %v6309_v4, %v1549_v62  ;;  %v1994_v55 = vmul.f32 %v6008_v45, %v1546_v9  ;;  %v1542_v4 = vld [vmem:[%s8651_s3 + $0x130] sm:$0xff]  ;;  %v6549_v62 = vld [vmem:[%s8652_s4 + $0x40] sm:$0xff]  ;;  %v6569_v25 = vld [vmem:[%s8652_s4 + $0x88] sm:$0xff] }
 0x232   :  { %2118 = vmatprep.subr.mxu1 %v2009_v57  ;;  %v6594_v9 = vld [vmem:[%s8652_s4 + $0xa0] sm:$0xff] }
 0x233   :  { %2119 = vmatpush2.msra.mxu1 %v2008_v43  ;;  %v1993_v43 = vmul.f32 %v6288_v49, %v1545_v13  ;;  %v6607_v13 = vld [vmem:[%s8652_s4 + $0xc0] sm:$0xff] }
 0x234   :  { %2901 = vperm.xlu0 %4704, %v6134_v53   ;;  %2120 = vmatprep.subr.mxu1 %v2007_v2  ;;  %v1551_v53 = vld [vmem:[%s8651_s3 + $0x178] sm:$0xff]  ;;  %v1541_v2 = vld [vmem:[%s8651_s3 + $0x128] sm:$0xff] }
 0x235   :  { %2121 = vmatpush2.msra.mxu1 %v2006_v8  ;;  %v1999_v41 = vmul.f32 %v6028_v3, %v1551_v53  ;;  %v1544_v3 = vld [vmem:[%s8651_s3 + $0x140] sm:$0xff]  ;;  %v1990_v8 = vmul.f32 %v5988_v37, %v1542_v4  ;;  %v1989_v29 = vmul.f32 %v6267_v19, %v1541_v2 }
 0x236   :  { %2122 = vmatprep.subr.mxu1 %v2005_v38  ;;  %v1992_v63 = vmul.f32 %v6288_v49, %v1544_v3  ;;  %v1538_v49 = vld [vmem:[%s8651_s3 + $0x110] sm:$0xff]  ;;  %v1537_v38 = vld [vmem:[%s8651_s3 + $0x108] sm:$0xff] }
 0x237   :  { %2123 = vmatpush2.msra.mxu1 %v2004_v46  ;;  %v1985_v16 = vmul.f32 %v6246_v33, %v1537_v38  ;;  %v6625_v3 = vld [vmem:[%s8652_s4 + $0x108] sm:$0xff] }
 0x238   :  { %2893 = vperm.xlu0 %4704, %v6127_v35   ;;  %2124 = vmatprep.subr.mxu1 %v2003_v1  ;;  %v1547_v35 = vld [vmem:[%s8651_s3 + $0x158] sm:$0xff] }
 0x239   :  { %2125 = vmatpush2.msra.mxu1 %v2002_v51  ;;  %v1995_v57 = vmul.f32 %v6008_v45, %v1547_v35  ;;  %v1540_v45 = vld [vmem:[%s8651_s3 + $0x120] sm:$0xff]  ;;  %v1599_v1 = vld [vmem:[%s8651_s3 + $0x2f8] sm:$0xff] }
 0x23a   :  { %2126 = vmatprep.subr.mxu1 %v2001_v56  ;;  %v1988_v24 = vmul.f32 %v6267_v19, %v1540_v45  ;;  %v1598_v19 = vld [vmem:[%s8651_s3 + $0x2f0] sm:$0xff]  ;;  %v2047_v51 = vmul.f32 %v6170_v0, %v1599_v1  ;;  %v6534_v56 = vld [vmem:[%s8652_s4 + $0x20] sm:$0xff]  ;;  %v1593_v45 = vld [vmem:[%s8651_s3 + $0x2c8] sm:$0xff] }
 0x23b   :  { %2127 = vmatpush2.msra.mxu1 %v2000_v61  ;;  %v2046_v27 = vmul.f32 %v6170_v0, %v1598_v19  ;;  %v6539_v0 = vld [vmem:[%s8652_s4 + $0x48] sm:$0xff]  ;;  %v1588_v19 = vld [vmem:[%s8651_s3 + $0x2a0] sm:$0xff] }
 0x23c   :  { %2885 = vperm.xlu0 %4704, %v6118_v39   ;;  %2128 = vmatprep.subr.mxu1 %v1999_v41  ;;  %v1543_v39 = vld [vmem:[%s8651_s3 + $0x138] sm:$0xff]  ;;  %v6554_v61 = vld [vmem:[%s8652_s4 + $0x68] sm:$0xff] }
 0x23d   :  { %2129 = vmatpush2.msra.mxu1 %v1998_v48  ;;  %v1991_v42 = vmul.f32 %v5988_v37, %v1543_v39  ;;  %v1536_v37 = vld [vmem:[%s8651_s3 + $0x100] sm:$0xff]  ;;  %v6584_v48 = vld [vmem:[%s8652_s4 + $0xa8] sm:$0xff] }
 0x23e   :  { %2130 = vmatprep.subr.mxu1 %v1997_v7  ;;  %v1984_v53 = vmul.f32 %v6246_v33, %v1536_v37  ;;  %v6599_v7 = vld [vmem:[%s8652_s4 + $0xc8] sm:$0xff] }
 0x23f   :  { %2131 = vmatpush2.msra.mxu1 %v1996_v12  ;;  %v6612_v12 = vld [vmem:[%s8652_s4 + $0xe8] sm:$0xff] }
 0x240   :  { %2877 = vperm.xlu0 %4704, %v6111_v22   ;;  %2132 = vmatprep.subr.mxu1 %v1995_v57  ;;  %v1539_v22 = vld [vmem:[%s8651_s3 + $0x118] sm:$0xff]  ;;  %v6620_v57 = vld [vmem:[%s8652_s4 + $0xe0] sm:$0xff]  ;;  %v1597_v39 = vld [vmem:[%s8651_s3 + $0x2e8] sm:$0xff] }
 0x241   :  { %2133 = vmatpush2.msra.mxu1 %v1994_v55  ;;  %v1987_v46 = vmul.f32 %v5971_v6, %v1539_v22  ;;  %v1595_v55 = vld [vmem:[%s8651_s3 + $0x2d8] sm:$0xff]  ;;  %v1481_v37 = vld [vmem:[%s8652_s4 + $0x148] sm:$0xff] }
 0x242   :  { %2134 = vmatprep.subr.mxu1 %v1993_v43  ;;  %v1594_v43 = vld [vmem:[%s8651_s3 + $0x2d0] sm:$0xff]  ;;  %v2043_v22 = vmul.f32 %v6162_v21, %v1595_v55 }
 0x243   :  { %2135 = vmatpush2.msra.mxu1 %v1992_v63 }
 0x244   :  { %2869 = vperm.xlu0 %4704, %v6102_v32   ;;  %2136 = vmatprep.subr.mxu1 %v1991_v42  ;;  %v1986_v32 = vmul.f32 %v5971_v6, %v1538_v49  ;;  %v6517_v6 = vld [vmem:[%s8652_s4] sm:$0xff]  ;;  %v1477_v42 = vld [vmem:[%s8652_s4 + $0x128] sm:$0xff]  ;;  %v1591_v49 = vld [vmem:[%s8651_s3 + $0x2b8] sm:$0xff] }
 0x245   :  { %2137 = vmatpush2.msra.mxu1 %v1990_v8  ;;  %v1592_v8 = vld [vmem:[%s8651_s3 + $0x2c0] sm:$0xff]  ;;  %v2039_v1 = vmul.f32 %v6154_v52, %v1591_v49 }
 0x246   :  { %2138 = vmatprep.subr.mxu1 %v1989_v29  ;;  %v2042_v29 = vmul.f32 %v6162_v21, %v1594_v43  ;;  %v1589_v21 = vld [vmem:[%s8651_s3 + $0x2a8] sm:$0xff]  ;;  %v1583_v43 = vld [vmem:[%s8651_s3 + $0x278] sm:$0xff] }
 0x247   :  { %2139 = vmatpush2.msra.mxu1 %v1988_v24  ;;  %v1590_v24 = vld [vmem:[%s8651_s3 + $0x2b0] sm:$0xff]  ;;  %v2031_v49 = vmul.f32 %v6138_v23, %v1583_v43  ;;  %v6776_v43 = vpop.permute.xlu1 %2825 }
 0x248   :  { %2861 = vperm.xlu0 %4704, %v6082_v17   ;;  %2140 = vmatprep.subr.mxu1 %v1987_v46  ;;  %v6523_v17 = vld [vmem:[%s8652_s4 + $0x28] sm:$0xff] }
 0x249   :  { %2141 = vmatpush2.msra.mxu1 %v1986_v32 }
 0x24a   :  { %2142 = vmatprep.subr.mxu1 %v1985_v16  ;;  %v1587_v16 = vld [vmem:[%s8651_s3 + $0x298] sm:$0xff] }
 0x24b   :  { %2143 = vmatpush2.msra.mxu1 %v1984_v53  ;;  %v2038_v53 = vmul.f32 %v6154_v52, %v1590_v24  ;;  %v1585_v52 = vld [vmem:[%s8651_s3 + $0x288] sm:$0xff]  ;;  %v2035_v55 = vmul.f32 %v6146_v15, %v1587_v16  ;;  %v1579_v24 = vld [vmem:[%s8651_s3 + $0x258] sm:$0xff] }
 0x24c   :  { %2853 = vperm.xlu0 %4704, %v6059_v36   ;;  %2241 = vmatprep.subr.mxu1 %v2047_v51  ;;  %v2027_v16 = vmul.f32 %v6132_v60, %v1579_v24  ;;  %v1568_v24 = vld [vmem:[%s8651_s3 + $0x200] sm:$0xff] }
 0x24d   :  { %v6527_v33 = vpop.permute.xlu0 %1794  ;;  %2145 = vmatmul.mubr.f32.vlgmr.msra.gmra.mxu1 %v6517_v6 }
 0x24e   :  { %2242 = vmatpush1.msra.mxu1 %v2046_v27  ;;  %2150 = vmatprep.mubr.f32.mxu1 %v6523_v17  ;;  %v1586_v27 = vld [vmem:[%s8651_s3 + $0x290] sm:$0xff] }
 0x250   :  { %2973 = vperm.xlu0 %4704, %v6254_v34   ;;  %v6564_v34 = vld [vmem:[%s8652_s4 + $0x60] sm:$0xff] }
 0x251   :  { %v6542_v36 = vpop.permute.xlu0 %1804  ;;  %2151 = vmatmul.mubr.f32.gmra.mxu1 %v6534_v56 }
 0x252   :  { %2156 = vmatprep.mubr.f32.mxu1 %v6539_v0 }
 0x254   :  { %2965 = vperm.xlu0 %4704, %v6221_v59   ;;  %v6579_v59 = vld [vmem:[%s8652_s4 + $0x80] sm:$0xff] }
 0x255   :  { %v6557_v41 = vpop.permute.xlu0 %1814  ;;  %2157 = vmatmul.mubr.f32.gmra.mxu1 %v6549_v62 }
 0x256   :  { %2162 = vmatprep.mubr.f32.mxu1 %v6554_v61 }
 0x258   :  { %2957 = vperm.xlu0 %4704, %v6207_v11  }
 0x259   :  { %v6572_v35 = vpop.permute.xlu0 %1824  ;;  %2163 = vmatmul.mubr.f32.gmra.mxu1 %v6564_v34 }
 0x25a   :  { %2168 = vmatprep.mubr.f32.mxu1 %v6569_v25 }
 0x25c   :  { %2949 = vperm.xlu0 %4704, %v6187_v18  }
 0x25d   :  { %2169 = vmatmul.mubr.f32.gmra.mxu1 %v6579_v59 }
 0x25e   :  { %v6588_v11 = vpop.permute.xlu0 %1834  ;;  %2174 = vmatprep.mubr.f32.mxu1 %v6584_v48 }
 0x260   :  { %2941 = vperm.xlu0 %4704, %v6172_v14  }
 0x261   :  { %2175 = vmatmul.mubr.f32.gmra.mxu1 %v6594_v9 }
 0x262   :  { %v1845_v18 = vpop.permute.xlu0 %1844  ;;  %2180 = vmatprep.mubr.f32.mxu1 %v6599_v7 }
 0x264   :  { %2933 = vperm.xlu0 %4704, %v6164_v30   ;;  %v1596_v30 = vld [vmem:[%s8651_s3 + $0x2e0] sm:$0xff] }
 0x265   :  { %2181 = vmatmul.mubr.f32.gmra.mxu1 %v6607_v13 }
 0x266   :  { %v1855_v14 = vpop.permute.xlu0 %1854  ;;  %2186 = vmatprep.mubr.f32.mxu1 %v6612_v12 }
 0x267   :  { %v2041_v46 = vmul.f32 %v1855_v14, %v1593_v45  ;;  %v2040_v32 = vmul.f32 %v1855_v14, %v1592_v8  ;;  %v2037_v14 = vmul.f32 %v1845_v18, %v1589_v21  ;;  %v2033_v45 = vmul.f32 %v6588_v11, %v1585_v52  ;;  %v1578_v21 = vld [vmem:[%s8651_s3 + $0x250] sm:$0xff] }
 0x268   :  { %2925 = vperm.xlu0 %4704, %v6156_v31   ;;  %v6642_v31 = vld [vmem:[%s8652_s4 + $0x100] sm:$0xff] }
 0x269   :  { %2187 = vmatmul.mubr.f32.gmra.mxu1 %v6620_v57 }
 0x26a   :  { %v1865_v4 = vpop.permute.xlu0 %1864  ;;  %2192 = vmatprep.mubr.f32.mxu1 %v6625_v3 }
 0x26b   :  { %v2044_v2 = vmul.f32 %v1865_v4, %v1596_v30  ;;  %v2045_v63 = vmul.f32 %v1865_v4, %v1597_v39  ;;  %v1485_v30 = vld [vmem:[%s8652_s4 + $0x168] sm:$0xff]  ;;  %v2036_v39 = vmul.f32 %v1845_v18, %v1588_v19  ;;  %v1584_v4 = vld [vmem:[%s8651_s3 + $0x280] sm:$0xff] }
 0x26c   :  { %2917 = vperm.xlu0 %4704, %v6148_v50   ;;  %v6668_v50 = vld [vmem:[%s8652_s4 + $0x120] sm:$0xff]  ;;  %v2032_v8 = vmul.f32 %v6588_v11, %v1584_v4 }
 0x26d   :  { %2243 = vmatprep.subr.mxu1 %v2045_v63  ;;  %2193 = vmatmul.mubr.f32.gmra.mxu1 %v6642_v31  ;;  %v1484_v18 = vld [vmem:[%s8652_s4 + $0x160] sm:$0xff] }
 0x26e   :  { %v6663_v38 = vpop.permute.xlu0 %1874  ;;  %2244 = vmatpush1.msra.mxu1 %v2044_v2  ;;  %2198 = vmatprep.mubr.f32.mxu1 %v1477_v42  ;;  %v2034_v2 = vmul.f32 %v6146_v15, %v1586_v27  ;;  %v1582_v42 = vld [vmem:[%s8651_s3 + $0x270] sm:$0xff]  ;;  %v1581_v15 = vld [vmem:[%s8651_s3 + $0x268] sm:$0xff]  ;;  %v1488_v11 = vld [vmem:[%s8652_s4 + $0x180] sm:$0xff]  ;;  %v2026_v27 = vmul.f32 %v6132_v60, %v1578_v21 }
 0x26f   :  { %2245 = vmatprep.subr.mxu1 %v2043_v22  ;;  %v1489_v22 = vld [vmem:[%s8652_s4 + $0x188] sm:$0xff]  ;;  %v1500_v21 = vld [vmem:[%s8652_s4 + $0x1e0] sm:$0xff] }
 0x270   :  { %2246 = vmatpush1.msra.mxu1 %v2042_v29  ;;  %4705 = vset.pattern.permute.xlu0 %v8715_v20  ;;  %v1480_v20 = vld [vmem:[%s8652_s4 + $0x140] sm:$0xff]  ;;  %v1573_v60 = vld [vmem:[%s8651_s3 + $0x228] sm:$0xff] }
 0x271   :  { %2247 = vmatprep.subr.mxu1 %v2041_v46  ;;  %2199 = vmatmul.mubr.f32.gmra.mxu1 %v6668_v50  ;;  %v1580_v29 = vld [vmem:[%s8651_s3 + $0x260] sm:$0xff]  ;;  %v2030_v46 = vmul.f32 %v6138_v23, %v1582_v42  ;;  %v1577_v23 = vld [vmem:[%s8651_s3 + $0x248] sm:$0xff] }
 0x272   :  { %v6689_v51 = vpop.permute.xlu0 %1884  ;;  %2248 = vmatpush1.msra.mxu1 %v2040_v32  ;;  %2204 = vmatprep.mubr.f32.mxu1 %v1481_v37  ;;  %v2029_v32 = vmul.f32 %v6572_v35, %v1581_v15  ;;  %v2028_v19 = vmul.f32 %v6572_v35, %v1580_v29  ;;  %v1492_v35 = vld [vmem:[%s8652_s4 + $0x1a0] sm:$0xff]  ;;  %v2025_v52 = vmul.f32 %v6557_v41, %v1577_v23 }
 0x273   :  { %2249 = vmatprep.subr.mxu1 %v2039_v1  ;;  %v1493_v1 = vld [vmem:[%s8652_s4 + $0x1a8] sm:$0xff]  ;;  %v2021_v15 = vmul.f32 %v6542_v36, %v1573_v60  ;;  %v2016_v23 = vmul.f32 %v6527_v33, %v1568_v24 }
 0x274   :  { %2250 = vmatpush1.msra.mxu1 %v2038_v53  ;;  %v1576_v53 = vld [vmem:[%s8651_s3 + $0x240] sm:$0xff] }
 0x275   :  { %2251 = vmatprep.subr.mxu1 %v2037_v14  ;;  %2205 = vmatmul.mubr.f32.gmra.mxu1 %v1480_v20  ;;  %v1575_v20 = vld [vmem:[%s8651_s3 + $0x238] sm:$0xff] }
 0x276   :  { %v6711_v63 = vpop.permute.xlu0 %1894  ;;  %2252 = vmatpush1.msra.mxu1 %v2036_v39  ;;  %2210 = vmatprep.mubr.f32.mxu1 %v1485_v30  ;;  %v1574_v30 = vld [vmem:[%s8651_s3 + $0x230] sm:$0xff]  ;;  %v1497_v39 = vld [vmem:[%s8652_s4 + $0x1c8] sm:$0xff]  ;;  %v2023_v4 = vmul.f32 %v6125_v5, %v1575_v20 }
 0x277   :  { %2253 = vmatprep.subr.mxu1 %v2035_v55  ;;  %v2024_v55 = vmul.f32 %v6557_v41, %v1576_v53  ;;  %v2022_v42 = vmul.f32 %v6125_v5, %v1574_v30  ;;  %v1496_v41 = vld [vmem:[%s8652_s4 + $0x1c0] sm:$0xff]  ;;  %v1569_v5 = vld [vmem:[%s8651_s3 + $0x208] sm:$0xff]  ;;  %v1627_v30 = vld [vmem:[%s8651_s3 + $0x3d8] sm:$0xff] }
 0x278   :  { %2254 = vmatpush1.msra.mxu1 %v2034_v2  ;;  %v1572_v2 = vld [vmem:[%s8651_s3 + $0x220] sm:$0xff] }
 0x279   :  { %2255 = vmatprep.subr.mxu1 %v2033_v45  ;;  %2211 = vmatmul.mubr.f32.gmra.mxu1 %v1484_v18  ;;  %v1571_v18 = vld [vmem:[%s8651_s3 + $0x218] sm:$0xff] }
 0x27a   :  { %v6735_v37 = vpop.permute.xlu0 %1904  ;;  %2256 = vmatpush1.msra.mxu1 %v2032_v8  ;;  %2216 = vmatprep.mubr.f32.mxu1 %v1489_v22  ;;  %v1570_v22 = vld [vmem:[%s8651_s3 + $0x210] sm:$0xff]  ;;  %v1501_v8 = vld [vmem:[%s8652_s4 + $0x1e8] sm:$0xff]  ;;  %v2019_v29 = vmul.f32 %v6114_v58, %v1571_v18  ;;  %v1624_v18 = vld [vmem:[%s8651_s3 + $0x3c0] sm:$0xff] }
 0x27b   :  { %2257 = vmatprep.subr.mxu1 %v2031_v49  ;;  %v2020_v49 = vmul.f32 %v6542_v36, %v1572_v2  ;;  %v2017_v36 = vmul.f32 %v6527_v33, %v1569_v5  ;;  %v1628_v33 = vld [vmem:[%s8651_s3 + $0x3e0] sm:$0xff]  ;;  %v2075_v2 = vmul.f32 %v6345_v26, %v1627_v30  ;;  %v4334_v5 = vld [vmem:[%s8651_s3 + $0x598] sm:$0xff] }
 0x27c   :  { %2258 = vmatpush1.msra.mxu1 %v2030_v46  ;;  %v2018_v46 = vmul.f32 %v6114_v58, %v1570_v22  ;;  %v1630_v58 = vld [vmem:[%s8651_s3 + $0x3f0] sm:$0xff]  ;;  %v1623_v22 = vld [vmem:[%s8651_s3 + $0x3b8] sm:$0xff] }
 0x27d   :  { %2259 = vmatprep.subr.mxu1 %v2029_v32  ;;  %2217 = vmatmul.mubr.f32.gmra.mxu1 %v1488_v11  ;;  %v6809_v32 = vpop.permute.xlu1 %2817  ;;  %v4330_v30 = vld [vmem:[%s8651_s3 + $0x578] sm:$0xff] }
 0x27e   :  { %v6759_v14 = vpop.permute.xlu0 %1914  ;;  %2260 = vmatpush1.msra.mxu1 %v2028_v19  ;;  %2222 = vmatprep.mubr.f32.mxu1 %v1493_v1  ;;  %v1443_v1 = vld [vmem:[%s8652_s4 + $0x18] sm:$0xff] }
 0x27f   :  { %2261 = vmatprep.subr.mxu1 %v2027_v16  ;;  %v1631_v19 = vld [vmem:[%s8651_s3 + $0x3f8] sm:$0xff] }
 0x280   :  { %2262 = vmatpush1.msra.mxu1 %v2026_v27  ;;  %v1629_v27 = vld [vmem:[%s8651_s3 + $0x3e8] sm:$0xff] }
 0x281   :  { %2263 = vmatprep.subr.mxu1 %v2025_v52  ;;  %2223 = vmatmul.mubr.f32.gmra.mxu1 %v1492_v35  ;;  %v6828_v35 = vpop.permute.xlu1 %2809 }
 0x282   :  { %v6785_v45 = vpop.permute.xlu0 %1924  ;;  %2264 = vmatpush1.msra.mxu1 %v2024_v55  ;;  %2228 = vmatprep.mubr.f32.mxu1 %v1497_v39  ;;  %v1626_v39 = vld [vmem:[%s8651_s3 + $0x3d0] sm:$0xff] }
 0x283   :  { %2265 = vmatprep.subr.mxu1 %v2023_v4  ;;  %v1625_v4 = vld [vmem:[%s8651_s3 + $0x3c8] sm:$0xff] }
 0x284   :  { %2266 = vmatpush1.msra.mxu1 %v2022_v42  ;;  %v4335_v42 = vld [vmem:[%s8651_s3 + $0x5a0] sm:$0xff] }
 0x285   :  { %2267 = vmatprep.subr.mxu1 %v2021_v15  ;;  %2229 = vmatmul.mubr.f32.gmra.mxu1 %v1496_v41  ;;  %v4336_v41 = vld [vmem:[%s8651_s3 + $0x5a8] sm:$0xff]  ;;  %v2074_v15 = vmul.f32 %v6345_v26, %v1626_v39 }
 0x286   :  { %v1935_v11 = vpop.permute.xlu0 %1934  ;;  %2268 = vmatpush1.msra.mxu1 %v2020_v49  ;;  %2234 = vmatprep.mubr.f32.mxu1 %v1501_v8  ;;  %v1622_v8 = vld [vmem:[%s8651_s3 + $0x3b0] sm:$0xff]  ;;  %v6859_v49 = vpop.permute.xlu1 %2801  ;;  %v1621_v26 = vld [vmem:[%s8651_s3 + $0x3a8] sm:$0xff] }
 0x287   :  { %2269 = vmatprep.subr.mxu1 %v2019_v29  ;;  %v2073_v29 = vmul.f32 %v1935_v11, %v1625_v4 }
 0x288   :  { %2270 = vmatpush1.msra.mxu1 %v2018_v46  ;;  %v4333_v46 = vld [vmem:[%s8651_s3 + $0x590] sm:$0xff] }
 0x289   :  { %2271 = vmatprep.subr.mxu1 %v2017_v36  ;;  %2235 = vmatmul.mubr.f32.gmra.mxu1 %v1500_v21  ;;  %v2072_v21 = vmul.f32 %v1935_v11, %v1624_v18  ;;  %v1619_v11 = vld [vmem:[%s8651_s3 + $0x398] sm:$0xff] }
 0x28a   :  { %v1950_v16 = vpop.permute.xlu0 %1949  ;;  %2272 = vmatpush1.msra.mxu1 %v2016_v23  ;;  %2305 = vmatprep.mubr.f32.mxu1 %v1443_v1  ;;  %v2071_v23 = vmul.f32 %v6324_v40, %v1623_v22  ;;  %v6898_v18 = vpop.permute.xlu1 %2797  ;;  %v1615_v22 = vld [vmem:[%s8651_s3 + $0x378] sm:$0xff] }
 0x28b   :  { %v2078_v53 = vmul.f32 %v1950_v16, %v1630_v58  ;;  %v2079_v20 = vmul.f32 %v1950_v16, %v1631_v19  ;;  %v1620_v58 = vld [vmem:[%s8651_s3 + $0x3a0] sm:$0xff]  ;;  %v4332_v16 = vld [vmem:[%s8651_s3 + $0x588] sm:$0xff] }
 0x28c   :  { %v4331_v19 = vld [vmem:[%s8651_s3 + $0x580] sm:$0xff] }
 0x28d   :  { %2273 = vmatprep.subr.mxu1 %v2079_v20  ;;  %v3031_v20 = vmul.f32 %v4334_v5, %v6776_v43  ;;  %v1614_v5 = vld [vmem:[%s8651_s3 + $0x370] sm:$0xff] }
 0x28e   :  { %v1945_v52 = vpop.permute.xlu0 %1944  ;;  %2274 = vmatpush2.msra.mxu1 %v2078_v53  ;;  %v2070_v53 = vmul.f32 %v6324_v40, %v1622_v8  ;;  %v4329_v40 = vld [vmem:[%s8651_s3 + $0x570] sm:$0xff]  ;;  %v3027_v8 = vmul.f32 %v4330_v30, %v6809_v32  ;;  %v2794_v30 = vpop.permute.xlu1 %2793 }
 0x28f   :  { %v2076_v60 = vmul.f32 %v1945_v52, %v1628_v33  ;;  %v2077_v55 = vmul.f32 %v1945_v52, %v1629_v27  ;;  %v1618_v33 = vld [vmem:[%s8651_s3 + $0x390] sm:$0xff]  ;;  %v3030_v27 = vmul.f32 %v4333_v46, %v6776_v43  ;;  %v2069_v52 = vmul.f32 %v6785_v45, %v1621_v26 }
 0x291   :  { %2275 = vmatprep.subr.mxu1 %v2077_v55  ;;  %v2068_v55 = vmul.f32 %v6785_v45, %v1620_v58  ;;  %v4328_v45 = vld [vmem:[%s8651_s3 + $0x568] sm:$0xff]  ;;  %v1612_v58 = vld [vmem:[%s8651_s3 + $0x360] sm:$0xff] }
 0x292   :  { %2276 = vmatpush2.msra.mxu1 %v2076_v60  ;;  %v1617_v60 = vld [vmem:[%s8651_s3 + $0x388] sm:$0xff] }
 0x293   :  { %v2830_v24 = vpop.permute.xlu0 %2829  ;;  %2277 = vmatprep.subr.mxu1 %v2075_v2  ;;  %v2067_v2 = vmul.f32 %v6303_v10, %v1619_v11  ;;  %v2065_v46 = vmul.f32 %v6759_v14, %v1617_v60  ;;  %v2062_v11 = vmul.f32 %v6281_v47, %v1614_v5 }
 0x294   :  { %v3032_v36 = vmul.f32 %v4335_v42, %v2830_v24  ;;  %v3033_v1 = vmul.f32 %v4336_v41, %v2830_v24  ;;  %2278 = vmatpush2.msra.mxu1 %v2074_v15  ;;  %v1616_v42 = vld [vmem:[%s8651_s3 + $0x380] sm:$0xff]  ;;  %v2066_v15 = vmul.f32 %v6303_v10, %v1618_v33  ;;  %v4326_v24 = vld [vmem:[%s8651_s3 + $0x558] sm:$0xff]  ;;  %v4325_v10 = vld [vmem:[%s8651_s3 + $0x550] sm:$0xff] }
 0x295   :  { %2279 = vmatprep.subr.mxu1 %v2073_v29  ;;  %v4327_v41 = vld [vmem:[%s8651_s3 + $0x560] sm:$0xff]  ;;  %v3026_v29 = vmul.f32 %v4329_v40, %v6809_v32  ;;  %v3022_v33 = vmul.f32 %v4325_v10, %v6828_v35  ;;  %v1609_v40 = vld [vmem:[%s8651_s3 + $0x348] sm:$0xff] }
 0x296   :  { %2280 = vmatpush2.msra.mxu1 %v2072_v21  ;;  %3150 = vmatprep.subr.mxu0 %v3033_v1  ;;  %v1613_v21 = vld [vmem:[%s8651_s3 + $0x368] sm:$0xff] }
 0x297   :  { %v2822_v39 = vpop.permute.xlu0 %2821  ;;  %2281 = vmatprep.subr.mxu1 %v2071_v23  ;;  %3151 = vmatpush2.msra.mxu0 %v3032_v36  ;;  %v2064_v36 = vmul.f32 %v6759_v14, %v1616_v42  ;;  %v2063_v23 = vmul.f32 %v6281_v47, %v1615_v22  ;;  %v4324_v14 = vld [vmem:[%s8651_s3 + $0x548] sm:$0xff]  ;;  %v4321_v47 = vld [vmem:[%s8651_s3 + $0x530] sm:$0xff] }
 0x298   :  { %v3028_v43 = vmul.f32 %v4331_v19, %v2822_v39  ;;  %v3029_v4 = vmul.f32 %v4332_v16, %v2822_v39  ;;  %2282 = vmatpush2.msra.mxu1 %v2070_v53  ;;  %3152 = vmatprep.subr.mxu0 %v3031_v20  ;;  %v4323_v19 = vld [vmem:[%s8651_s3 + $0x540] sm:$0xff]  ;;  %v1611_v16 = vld [vmem:[%s8651_s3 + $0x358] sm:$0xff]  ;;  %v3023_v53 = vmul.f32 %v4326_v24, %v6828_v35  ;;  %v1610_v20 = vld [vmem:[%s8651_s3 + $0x350] sm:$0xff] }
 0x299   :  { %2283 = vmatprep.subr.mxu1 %v2069_v52  ;;  %3153 = vmatpush2.msra.mxu0 %v3030_v27  ;;  %v4322_v27 = vld [vmem:[%s8651_s3 + $0x538] sm:$0xff]  ;;  %v2061_v52 = vmul.f32 %v6735_v37, %v1613_v21  ;;  %v2060_v35 = vmul.f32 %v6735_v37, %v1612_v58  ;;  %v2058_v42 = vmul.f32 %v6260_v28, %v1610_v20  ;;  %v1606_v22 = vld [vmem:[%s8651_s3 + $0x330] sm:$0xff]  ;;  %v4316_v21 = vld [vmem:[%s8651_s3 + $0x508] sm:$0xff] }
 0x29a   :  { %2284 = vmatpush2.msra.mxu1 %v2068_v55  ;;  %3154 = vmatprep.subr.mxu0 %v3029_v4  ;;  %v4320_v4 = vld [vmem:[%s8651_s3 + $0x528] sm:$0xff]  ;;  %v1607_v37 = vld [vmem:[%s8651_s3 + $0x338] sm:$0xff]  ;;  %v4317_v24 = vld [vmem:[%s8651_s3 + $0x510] sm:$0xff] }
 0x29b   :  { %v2814_v26 = vpop.permute.xlu0 %2813  ;;  %2285 = vmatprep.subr.mxu1 %v2067_v2  ;;  %3155 = vmatpush2.msra.mxu0 %v3028_v43  ;;  %v2059_v43 = vmul.f32 %v6260_v28, %v1611_v16  ;;  %v1608_v2 = vld [vmem:[%s8651_s3 + $0x340] sm:$0xff]  ;;  %v2057_v28 = vmul.f32 %v6711_v63, %v1609_v40  ;;  %v1602_v58 = vld [vmem:[%s8651_s3 + $0x310] sm:$0xff]  ;;  %v4378_v20 = vld [vmem:[%s8651_s3 + $0x6f8] sm:$0xff] }
 0x29c   :  { %v3024_v32 = vmul.f32 %v4327_v41, %v2814_v26  ;;  %v3025_v1 = vmul.f32 %v4328_v45, %v2814_v26  ;;  %2286 = vmatpush2.msra.mxu1 %v2066_v15  ;;  %3156 = vmatprep.subr.mxu0 %v3027_v8  ;;  %v3019_v41 = vmul.f32 %v4322_v27, %v6859_v49  ;;  %v4319_v45 = vld [vmem:[%s8651_s3 + $0x520] sm:$0xff]  ;;  %v4318_v8 = vld [vmem:[%s8651_s3 + $0x518] sm:$0xff] }
 0x29d   :  { %2287 = vmatprep.subr.mxu1 %v2065_v46  ;;  %3157 = vmatpush2.msra.mxu0 %v3026_v29  ;;  %v3018_v15 = vmul.f32 %v4321_v47, %v6859_v49  ;;  %v3017_v29 = vmul.f32 %v4320_v4, %v6898_v18  ;;  %v1605_v46 = vld [vmem:[%s8651_s3 + $0x328] sm:$0xff]  ;;  %v2056_v49 = vmul.f32 %v6711_v63, %v1608_v2  ;;  %v1603_v63 = vld [vmem:[%s8651_s3 + $0x318] sm:$0xff] }
 0x29e   :  { %2288 = vmatpush2.msra.mxu1 %v2064_v36  ;;  %3158 = vmatprep.subr.mxu0 %v3025_v1  ;;  %v2055_v26 = vmul.f32 %v6239_v54, %v1607_v37  ;;  %v3016_v10 = vmul.f32 %v4319_v45, %v6898_v18  ;;  %v2790_v36 = vpop.permute.xlu1 %2789  ;;  %v2054_v1 = vmul.f32 %v6239_v54, %v1606_v22  ;;  %v4315_v18 = vld [vmem:[%s8651_s3 + $0x500] sm:$0xff]  ;;  %v1601_v54 = vld [vmem:[%s8651_s3 + $0x308] sm:$0xff]  ;;  %v4374_v2 = vld [vmem:[%s8651_s3 + $0x6d8] sm:$0xff] }
 0x29f   :  { %v2806_v39 = vpop.permute.xlu0 %2805  ;;  %2289 = vmatprep.subr.mxu1 %v2063_v23  ;;  %3159 = vmatpush2.msra.mxu0 %v3024_v32  ;;  %v1604_v32 = vld [vmem:[%s8651_s3 + $0x320] sm:$0xff]  ;;  %v3015_v23 = vmul.f32 %v4318_v8, %v2794_v30  ;;  %v3012_v27 = vmul.f32 %v4315_v18, %v2790_v36  ;;  %v2049_v47 = vmul.f32 %v6663_v38, %v1601_v54  ;;  %v7055_v8 = vld [vmem:[%s8652_s4 + $0x38] sm:$0xff]  ;;  %v7113_v54 = vld [vmem:[%s8652_s4 + $0x70] sm:$0xff] }
 0x2a0   :  { %v3020_v60 = vmul.f32 %v4323_v19, %v2806_v39  ;;  %v3021_v55 = vmul.f32 %v4324_v14, %v2806_v39  ;;  %2290 = vmatpush2.msra.mxu1 %v2062_v11  ;;  %3160 = vmatprep.subr.mxu0 %v3023_v53  ;;  %v3014_v19 = vmul.f32 %v4317_v24, %v2794_v30  ;;  %v1600_v30 = vld [vmem:[%s8651_s3 + $0x300] sm:$0xff]  ;;  %v4376_v39 = vld [vmem:[%s8651_s3 + $0x6e8] sm:$0xff]  ;;  %v4369_v24 = vld [vmem:[%s8651_s3 + $0x6b0] sm:$0xff] }
 0x2a1   :  { %2291 = vmatprep.subr.mxu1 %v2061_v52  ;;  %3161 = vmatpush2.msra.mxu0 %v3022_v33  ;;  %v2053_v14 = vmul.f32 %v6689_v51, %v1605_v46  ;;  %v3013_v11 = vmul.f32 %v4316_v21, %v2790_v36  ;;  %v2052_v53 = vmul.f32 %v6689_v51, %v1604_v32  ;;  %v4377_v52 = vld [vmem:[%s8651_s3 + $0x6f0] sm:$0xff]  ;;  %v4371_v45 = vld [vmem:[%s8651_s3 + $0x6c0] sm:$0xff]  ;;  %v7081_v36 = vld [vmem:[%s8652_s4 + $0x58] sm:$0xff] }
 0x2a2   :  { %2292 = vmatpush2.msra.mxu1 %v2060_v35  ;;  %3162 = vmatprep.subr.mxu0 %v3021_v55  ;;  %v2051_v33 = vmul.f32 %v6223_v44, %v1603_v63  ;;  %v2050_v51 = vmul.f32 %v6223_v44, %v1602_v58  ;;  %v7036_v44 = vld [vmem:[%s8652_s4 + $0x10] sm:$0xff] }
 0x2a3   :  { %v2914_v5 = vpop.permute.xlu0 %2913  ;;  %2293 = vmatprep.subr.mxu1 %v2059_v43  ;;  %3163 = vmatpush2.msra.mxu0 %v3020_v60  ;;  %v2048_v60 = vmul.f32 %v6663_v38, %v1600_v30  ;;  %v4375_v43 = vld [vmem:[%s8651_s3 + $0x6e0] sm:$0xff]  ;;  %v4373_v38 = vld [vmem:[%s8651_s3 + $0x6d0] sm:$0xff] }
 0x2a4   :  { %2294 = vmatpush2.msra.mxu1 %v2058_v42  ;;  %3164 = vmatprep.subr.mxu0 %v3019_v41  ;;  %v3075_v40 = vmul.f32 %v4378_v20, %v2914_v5  ;;  %v3074_v55 = vmul.f32 %v4377_v52, %v2914_v5  ;;  %v2898_v5 = vpop.permute.xlu1 %2897  ;;  %v7087_v32 = vld [vmem:[%s8652_s4 + $0x50] sm:$0xff]  ;;  %v4359_v52 = vld [vmem:[%s8651_s3 + $0x660] sm:$0xff] }
 0x2a5   :  { %2295 = vmatprep.subr.mxu1 %v2057_v28  ;;  %3165 = vmatpush2.msra.mxu0 %v3018_v15  ;;  %v7061_v28 = vld [vmem:[%s8652_s4 + $0x30] sm:$0xff] }
 0x2a6   :  { %2296 = vmatpush2.msra.mxu1 %v2056_v49  ;;  %3166 = vmatprep.subr.mxu0 %v3017_v29 }
 0x2a7   :  { %v2910_v16 = vpop.permute.xlu0 %2909  ;;  %2297 = vmatprep.subr.mxu1 %v2055_v26  ;;  %3167 = vmatpush2.msra.mxu0 %v3016_v10  ;;  %v4367_v26 = vld [vmem:[%s8651_s3 + $0x6a0] sm:$0xff]  ;;  %v3066_v10 = vmul.f32 %v4369_v24, %v2898_v5 }
 0x2a8   :  { %2298 = vmatpush2.msra.mxu1 %v2054_v1  ;;  %3168 = vmatprep.subr.mxu0 %v3015_v23  ;;  %v3073_v4 = vmul.f32 %v4376_v39, %v2910_v16  ;;  %v3072_v37 = vmul.f32 %v4375_v43, %v2910_v16  ;;  %v2890_v63 = vpop.permute.xlu1 %2889  ;;  %v4365_v23 = vld [vmem:[%s8651_s3 + $0x690] sm:$0xff] }
 0x2a9   :  { %2299 = vmatprep.subr.mxu1 %v2053_v14  ;;  %3169 = vmatpush2.msra.mxu0 %v3014_v19  ;;  %v4363_v19 = vld [vmem:[%s8651_s3 + $0x680] sm:$0xff]  ;;  %v3062_v14 = vmul.f32 %v4365_v23, %v2890_v63 }
 0x2aa   :  { %2300 = vmatpush2.msra.mxu1 %v2052_v53  ;;  %3170 = vmatprep.subr.mxu0 %v3013_v11  ;;  %v7107_v11 = vld [vmem:[%s8652_s4 + $0x78] sm:$0xff] }
 0x2ab   :  { %v2906_v35 = vpop.permute.xlu0 %2905  ;;  %2301 = vmatprep.subr.mxu1 %v2051_v33  ;;  %3171 = vmatpush2.msra.mxu0 %v3012_v27  ;;  %v4361_v33 = vld [vmem:[%s8651_s3 + $0x670] sm:$0xff] }
 0x2ac   :  { %2302 = vmatpush2.msra.mxu1 %v2050_v51  ;;  %3173 = vmatmul.mubr.f32.vlgmr.msra.gmra.mxu0 %v6517_v6  ;;  %v4372_v6 = vld [vmem:[%s8651_s3 + $0x6c8] sm:$0xff]  ;;  %v3071_v41 = vmul.f32 %v4374_v2, %v2906_v35  ;;  %v3070_v22 = vmul.f32 %v4373_v38, %v2906_v35  ;;  %v2882_v53 = vpop.permute.xlu1 %2881  ;;  %v4355_v2 = vld [vmem:[%s8651_s3 + $0x640] sm:$0xff] }
 0x2ad   :  { %3269 = vmatprep.subr.mxu0 %v3075_v40  ;;  %2303 = vmatprep.subr.mxu1 %v2049_v47  ;;  %v3058_v51 = vmul.f32 %v4361_v33, %v2882_v53  ;;  %v7133_v47 = vld [vmem:[%s8652_s4 + $0x98] sm:$0xff] }
 0x2ae   :  { %3270 = vmatpush1.msra.mxu0 %v3074_v55  ;;  %2304 = vmatpush2.msra.mxu1 %v2048_v60 }
 0x2af   :  { %3271 = vmatprep.subr.mxu0 %v3073_v4  ;;  %v2902_v42 = vpop.permute.xlu0 %2901  ;;  %2306 = vmatmul.mubr.f32.vlgmr.msra.gmra.mxu1 %v7036_v44 }
 0x2b0   :  { %3178 = vmatprep.mubr.f32.mxu0 %v6523_v17  ;;  %4615 = vmatprep.subr.mxu1 %v3075_v40  ;;  %v3069_v15 = vmul.f32 %v4372_v6, %v2902_v42  ;;  %v4370_v17 = vld [vmem:[%s8651_s3 + $0x6b8] sm:$0xff]  ;;  %v3068_v29 = vmul.f32 %v4371_v45, %v2902_v42  ;;  %v7139_v40 = vld [vmem:[%s8652_s4 + $0x90] sm:$0xff]  ;;  %v2874_v35 = vpop.permute.xlu1 %2873 }
 0x2b1   :  { %3272 = vmatpush1.msra.mxu0 %v3072_v37  ;;  %4647 = vmatpush1.msra.mxu1 %v3074_v55  ;;  %v3067_v49 = vmul.f32 %v4370_v17, %v2898_v5  ;;  %v4357_v55 = vld [vmem:[%s8651_s3 + $0x650] sm:$0xff]  ;;  %v4351_v5 = vld [vmem:[%s8651_s3 + $0x620] sm:$0xff] }
 0x2b2   :  { %3179 = vmatmul.mubr.f32.gmra.mxu0 %v6534_v56  ;;  %3273 = vmatprep.subr.mxu0 %v3071_v41  ;;  %v4368_v56 = vld [vmem:[%s8651_s3 + $0x6a8] sm:$0xff]  ;;  %v3054_v38 = vmul.f32 %v4357_v55, %v2874_v35  ;;  %v7165_v42 = vld [vmem:[%s8652_s4 + $0xb0] sm:$0xff] }
 0x2b3   :  { %4616 = vmatprep.subr.mxu1 %v3073_v4  ;;  %3274 = vmatpush1.msra.mxu0 %v3070_v22  ;;  %v2894_v46 = vpop.permute.xlu0 %2893 }
 0x2b4   :  { %2311 = vmatprep.mubr.f32.mxu1 %v7055_v8  ;;  %4648 = vmatpush1.msra.mxu1 %v3072_v37  ;;  %v3065_v21 = vmul.f32 %v4368_v56, %v2894_v46  ;;  %v3064_v1 = vmul.f32 %v4367_v26, %v2894_v46  ;;  %v7159_v37 = vld [vmem:[%s8652_s4 + $0xb8] sm:$0xff]  ;;  %v7191_v46 = vld [vmem:[%s8652_s4 + $0xd0] sm:$0xff] }
 0x2b5   :  { %3275 = vmatprep.subr.mxu0 %v3069_v15  ;;  %2312 = vmatmul.mubr.f32.gmra.mxu1 %v7061_v28  ;;  %v7185_v56 = vld [vmem:[%s8652_s4 + $0xd8] sm:$0xff] }
 0x2b6   :  { %3184 = vmatprep.mubr.f32.mxu0 %v6539_v0  ;;  %4617 = vmatprep.subr.mxu1 %v3071_v41  ;;  %v4366_v0 = vld [vmem:[%s8651_s3 + $0x698] sm:$0xff]  ;;  %v2866_v41 = vpop.permute.xlu1 %2865 }
 0x2b7   :  { %3276 = vmatpush1.msra.mxu0 %v3068_v29  ;;  %4649 = vmatpush1.msra.mxu1 %v3070_v22  ;;  %v2886_v18 = vpop.permute.xlu0 %2885  ;;  %v3063_v58 = vmul.f32 %v4366_v0, %v2890_v63  ;;  %v4353_v22 = vld [vmem:[%s8651_s3 + $0x630] sm:$0xff]  ;;  %v4347_v63 = vld [vmem:[%s8651_s3 + $0x600] sm:$0xff] }
 0x2b8   :  { %3185 = vmatmul.mubr.f32.gmra.mxu0 %v6549_v62  ;;  %3277 = vmatprep.subr.mxu0 %v3067_v49  ;;  %v4364_v62 = vld [vmem:[%s8651_s3 + $0x688] sm:$0xff]  ;;  %v3060_v20 = vmul.f32 %v4363_v19, %v2886_v18 }
 0x2b9   :  { %4618 = vmatprep.subr.mxu1 %v3069_v15  ;;  %3278 = vmatpush1.msra.mxu0 %v3066_v10  ;;  %v3061_v16 = vmul.f32 %v4364_v62, %v2886_v18  ;;  %v7211_v62 = vld [vmem:[%s8652_s4 + $0xf8] sm:$0xff]  ;;  %v7217_v18 = vld [vmem:[%s8652_s4 + $0xf0] sm:$0xff] }
 0x2ba   :  { %2317 = vmatprep.mubr.f32.mxu1 %v7081_v36  ;;  %4650 = vmatpush1.msra.mxu1 %v3068_v29  ;;  %v3050_v29 = vmul.f32 %v4353_v22, %v2866_v41  ;;  %v4399_v22 = vld [vmem:[%s8651_s3 + $0x7a0] sm:$0xff] }
 0x2bb   :  { %3279 = vmatprep.subr.mxu0 %v3065_v21  ;;  %2318 = vmatmul.mubr.f32.gmra.mxu1 %v7087_v32  ;;  %v2878_v27 = vpop.permute.xlu0 %2877 }
 0x2bc   :  { %3190 = vmatprep.mubr.f32.mxu0 %v6554_v61  ;;  %4619 = vmatprep.subr.mxu1 %v3067_v49  ;;  %v4362_v61 = vld [vmem:[%s8651_s3 + $0x678] sm:$0xff]  ;;  %v3056_v60 = vmul.f32 %v4359_v52, %v2878_v27  ;;  %v2858_v49 = vpop.permute.xlu1 %2857 }
 0x2bd   :  { %3280 = vmatpush1.msra.mxu0 %v3064_v1  ;;  %4651 = vmatpush1.msra.mxu1 %v3066_v10  ;;  %v3059_v30 = vmul.f32 %v4362_v61, %v2882_v53  ;;  %v4349_v10 = vld [vmem:[%s8651_s3 + $0x610] sm:$0xff]  ;;  %v4407_v53 = vld [vmem:[%s8651_s3 + $0x7e0] sm:$0xff] }
 0x2be   :  { %3191 = vmatmul.mubr.f32.gmra.mxu0 %v6564_v34  ;;  %3281 = vmatprep.subr.mxu0 %v3063_v58  ;;  %v4360_v34 = vld [vmem:[%s8651_s3 + $0x668] sm:$0xff] }
 0x2bf   :  { %4620 = vmatprep.subr.mxu1 %v3065_v21  ;;  %3282 = vmatpush1.msra.mxu0 %v3062_v14  ;;  %v3057_v39 = vmul.f32 %v4360_v34, %v2878_v27  ;;  %v2870_v43 = vpop.permute.xlu0 %2869  ;;  %v7237_v34 = vld [vmem:[%s8652_s4 + $0x118] sm:$0xff]  ;;  %v7243_v27 = vld [vmem:[%s8652_s4 + $0x110] sm:$0xff] }
 0x2c0   :  { %2323 = vmatprep.mubr.f32.mxu1 %v7107_v11  ;;  %4652 = vmatpush1.msra.mxu1 %v3064_v1  ;;  %v3052_v45 = vmul.f32 %v4355_v2, %v2870_v43  ;;  %v3046_v1 = vmul.f32 %v4349_v10, %v2858_v49  ;;  %v4402_v2 = vld [vmem:[%s8651_s3 + $0x7b8] sm:$0xff]  ;;  %v4397_v10 = vld [vmem:[%s8651_s3 + $0x790] sm:$0xff] }
 0x2c1   :  { %3283 = vmatprep.subr.mxu0 %v3061_v16  ;;  %2324 = vmatmul.mubr.f32.gmra.mxu1 %v7113_v54 }
 0x2c2   :  { %3196 = vmatprep.mubr.f32.mxu0 %v6569_v25  ;;  %4621 = vmatprep.subr.mxu1 %v3063_v58  ;;  %v4358_v25 = vld [vmem:[%s8651_s3 + $0x658] sm:$0xff]  ;;  %v2978_v58 = vpop.permute.xlu1 %2977 }
 0x2c3   :  { %3284 = vmatpush1.msra.mxu0 %v3060_v20  ;;  %4653 = vmatpush1.msra.mxu1 %v3062_v14  ;;  %v3055_v4 = vmul.f32 %v4358_v25, %v2874_v35  ;;  %v2862_v15 = vpop.permute.xlu0 %2861  ;;  %v4409_v14 = vld [vmem:[%s8651_s3 + $0x7f0] sm:$0xff]  ;;  %v4403_v35 = vld [vmem:[%s8651_s3 + $0x7c0] sm:$0xff] }
 0x2c4   :  { %3197 = vmatmul.mubr.f32.gmra.mxu0 %v6579_v59  ;;  %3285 = vmatprep.subr.mxu0 %v3059_v30  ;;  %v4356_v59 = vld [vmem:[%s8651_s3 + $0x648] sm:$0xff]  ;;  %v3048_v26 = vmul.f32 %v4351_v5, %v2862_v15  ;;  %v7293_v5 = vld [vmem:[%s8652_s4 + $0x158] sm:$0xff] }
 0x2c5   :  { %4622 = vmatprep.subr.mxu1 %v3061_v16  ;;  %3286 = vmatpush1.msra.mxu0 %v3058_v51  ;;  %v3053_v6 = vmul.f32 %v4356_v59, %v2870_v43  ;;  %v7265_v43 = vld [vmem:[%s8652_s4 + $0x138] sm:$0xff] }
 0x2c6   :  { %2329 = vmatprep.mubr.f32.mxu1 %v7133_v47  ;;  %4654 = vmatpush1.msra.mxu1 %v3060_v20  ;;  %v3106_v20 = vmul.f32 %v4409_v14, %v2978_v58  ;;  %v7331_v14 = vld [vmem:[%s8652_s4 + $0x170] sm:$0xff] }
 0x2c7   :  { %3287 = vmatprep.subr.mxu0 %v3057_v39  ;;  %2330 = vmatmul.mubr.f32.gmra.mxu1 %v7139_v40  ;;  %v2854_v21 = vpop.permute.xlu0 %2853 }
 0x2c8   :  { %3202 = vmatprep.mubr.f32.mxu0 %v6584_v48  ;;  %4623 = vmatprep.subr.mxu1 %v3059_v30  ;;  %v4354_v48 = vld [vmem:[%s8651_s3 + $0x638] sm:$0xff]  ;;  %v3044_v19 = vmul.f32 %v4347_v63, %v2854_v21  ;;  %v2970_v30 = vpop.permute.xlu1 %2969  ;;  %v4395_v63 = vld [vmem:[%s8651_s3 + $0x780] sm:$0xff] }
 0x2c9   :  { %3288 = vmatpush1.msra.mxu0 %v3056_v60  ;;  %4655 = vmatpush1.msra.mxu1 %v3058_v51  ;;  %v3051_v17 = vmul.f32 %v4354_v48, %v2866_v41  ;;  %v4405_v51 = vld [vmem:[%s8651_s3 + $0x7d0] sm:$0xff] }
 0x2ca   :  { %3203 = vmatmul.mubr.f32.gmra.mxu0 %v6594_v9  ;;  %3289 = vmatprep.subr.mxu0 %v3055_v4  ;;  %v4352_v9 = vld [vmem:[%s8651_s3 + $0x628] sm:$0xff]  ;;  %v3102_v55 = vmul.f32 %v4405_v51, %v2970_v30  ;;  %v4401_v48 = vld [vmem:[%s8651_s3 + $0x7b0] sm:$0xff] }
 0x2cb   :  { %4624 = vmatprep.subr.mxu1 %v3057_v39  ;;  %3290 = vmatpush1.msra.mxu0 %v3054_v38  ;;  %v3049_v24 = vmul.f32 %v4352_v9, %v2862_v15  ;;  %v2974_v16 = vpop.permute.xlu0 %2973  ;;  %v4996_v9 = vld [vmem:[%s8652_s4 + $0x148] sm:$0xff] }
 0x2cc   :  { %2335 = vmatprep.mubr.f32.mxu1 %v7159_v37  ;;  %4656 = vmatpush1.msra.mxu1 %v3056_v60  ;;  %v3104_v52 = vmul.f32 %v4407_v53, %v2974_v16  ;;  %v4995_v60 = vld [vmem:[%s8652_s4 + $0x128] sm:$0xff]  ;;  %v4393_v53 = vld [vmem:[%s8651_s3 + $0x770] sm:$0xff] }
 0x2cd   :  { %3291 = vmatprep.subr.mxu0 %v3053_v6  ;;  %2336 = vmatmul.mubr.f32.gmra.mxu1 %v7165_v42 }
 0x2ce   :  { %3208 = vmatprep.mubr.f32.mxu0 %v6599_v7  ;;  %4625 = vmatprep.subr.mxu1 %v3055_v4  ;;  %v4350_v7 = vld [vmem:[%s8651_s3 + $0x618] sm:$0xff]  ;;  %v7271_v4 = vld [vmem:[%s8652_s4 + $0x130] sm:$0xff] }
 0x2cf   :  { %3292 = vmatpush1.msra.mxu0 %v3052_v45  ;;  %4657 = vmatpush1.msra.mxu1 %v3054_v38  ;;  %v3047_v0 = vmul.f32 %v4350_v7, %v2858_v49  ;;  %v2966_v39 = vpop.permute.xlu0 %2965  ;;  %v2962_v38 = vpop.permute.xlu1 %2961  ;;  %v4398_v7 = vld [vmem:[%s8651_s3 + $0x798] sm:$0xff] }
 0x2d0   :  { %3209 = vmatmul.mubr.f32.gmra.mxu0 %v6607_v13  ;;  %3293 = vmatprep.subr.mxu0 %v3051_v17  ;;  %v4348_v13 = vld [vmem:[%s8651_s3 + $0x608] sm:$0xff]  ;;  %v3098_v15 = vmul.f32 %v4401_v48, %v2962_v38 }
 0x2d1   :  { %4626 = vmatprep.subr.mxu1 %v3053_v6  ;;  %3294 = vmatpush1.msra.mxu0 %v3050_v29  ;;  %v3045_v23 = vmul.f32 %v4348_v13, %v2854_v21  ;;  %v3100_v6 = vmul.f32 %v4403_v35, %v2966_v39  ;;  %v4396_v13 = vld [vmem:[%s8651_s3 + $0x788] sm:$0xff]  ;;  %v7361_v35 = vld [vmem:[%s8652_s4 + $0x190] sm:$0xff] }
 0x2d2   :  { %2341 = vmatprep.mubr.f32.mxu1 %v7185_v56  ;;  %4658 = vmatpush1.msra.mxu1 %v3052_v45  ;;  %v3099_v45 = vmul.f32 %v4402_v2, %v2962_v38  ;;  %v4389_v2 = vld [vmem:[%s8651_s3 + $0x750] sm:$0xff]  ;;  %v4388_v38 = vld [vmem:[%s8651_s3 + $0x748] sm:$0xff] }
 0x2d3   :  { %3295 = vmatprep.subr.mxu0 %v3049_v24  ;;  %2342 = vmatmul.mubr.f32.gmra.mxu1 %v7191_v46  ;;  %v2958_v41 = vpop.permute.xlu0 %2957  ;;  %v2954_v49 = vpop.permute.xlu1 %2953 }
 0x2d4   :  { %3214 = vmatprep.mubr.f32.mxu0 %v6612_v12  ;;  %4627 = vmatprep.subr.mxu1 %v3051_v17  ;;  %v4410_v12 = vld [vmem:[%s8651_s3 + $0x7f8] sm:$0xff] }
 0x2d5   :  { %3296 = vmatpush1.msra.mxu0 %v3048_v26  ;;  %4659 = vmatpush1.msra.mxu1 %v3050_v29  ;;  %v3107_v61 = vmul.f32 %v4410_v12, %v2978_v58  ;;  %v4997_v29 = vld [vmem:[%s8652_s4 + $0x140] sm:$0xff]  ;;  %v7323_v58 = vld [vmem:[%s8652_s4 + $0x178] sm:$0xff] }
 0x2d6   :  { %3215 = vmatmul.mubr.f32.gmra.mxu0 %v6620_v57  ;;  %3297 = vmatprep.subr.mxu0 %v3047_v0  ;;  %v4408_v57 = vld [vmem:[%s8651_s3 + $0x7e8] sm:$0xff] }
 0x2d7   :  { %4628 = vmatprep.subr.mxu1 %v3049_v24  ;;  %3298 = vmatpush1.msra.mxu0 %v3046_v1  ;;  %v3105_v33 = vmul.f32 %v4408_v57, %v2974_v16  ;;  %v7301_v24 = vld [vmem:[%s8652_s4 + $0x150] sm:$0xff]  ;;  %v2950_v21 = vpop.permute.xlu0 %2949  ;;  %v4394_v57 = vld [vmem:[%s8651_s3 + $0x778] sm:$0xff]  ;;  %v2946_v16 = vpop.permute.xlu1 %2945 }
 0x2d8   :  { %2347 = vmatprep.mubr.f32.mxu1 %v7211_v62  ;;  %4660 = vmatpush1.msra.mxu1 %v3048_v26  ;;  %v3096_v26 = vmul.f32 %v4399_v22, %v2958_v41  ;;  %v3093_v12 = vmul.f32 %v4396_v13, %v2950_v21  ;;  %v3090_v51 = vmul.f32 %v4393_v53, %v2946_v16 }
 0x2d9   :  { %3299 = vmatprep.subr.mxu0 %v3045_v23  ;;  %2348 = vmatmul.mubr.f32.gmra.mxu1 %v7217_v18 }
 0x2da   :  { %3220 = vmatprep.mubr.f32.mxu0 %v6625_v3  ;;  %4629 = vmatprep.subr.mxu1 %v3047_v0  ;;  %v4406_v3 = vld [vmem:[%s8651_s3 + $0x7d8] sm:$0xff]  ;;  %v3095_v0 = vmul.f32 %v4398_v7, %v2954_v49 }
 0x2db   :  { %3300 = vmatpush1.msra.mxu0 %v3044_v19  ;;  %4661 = vmatpush1.msra.mxu1 %v3046_v1  ;;  %v3103_v25 = vmul.f32 %v4406_v3, %v2970_v30  ;;  %v4998_v1 = vld [vmem:[%s8652_s4 + $0x168] sm:$0xff]  ;;  %v3091_v3 = vmul.f32 %v4394_v57, %v2946_v16  ;;  %v4391_v30 = vld [vmem:[%s8651_s3 + $0x760] sm:$0xff]  ;;  %v7421_v57 = vld [vmem:[%s8652_s4 + $0x1d0] sm:$0xff] }
 0x2dc   :  { %3221 = vmatmul.mubr.f32.gmra.mxu0 %v6642_v31  ;;  %3301 = vmatprep.subr.mxu0 %v3107_v61  ;;  %v4404_v31 = vld [vmem:[%s8651_s3 + $0x7c8] sm:$0xff]  ;;  %v4382_v16 = vld [vmem:[%s8651_s3 + $0x718] sm:$0xff] }
 0x2dd   :  { %4630 = vmatprep.subr.mxu1 %v3045_v23  ;;  %3302 = vmatpush2.msra.mxu0 %v3106_v20  ;;  %v3101_v59 = vmul.f32 %v4404_v31, %v2966_v39  ;;  %v3094_v23 = vmul.f32 %v4397_v10, %v2954_v49  ;;  %v7353_v39 = vld [vmem:[%s8652_s4 + $0x198] sm:$0xff]  ;;  %v4384_v10 = vld [vmem:[%s8651_s3 + $0x728] sm:$0xff] }
 0x2de   :  { %2353 = vmatprep.mubr.f32.mxu1 %v7237_v34  ;;  %4662 = vmatpush1.msra.mxu1 %v3044_v19  ;;  %v4999_v19 = vld [vmem:[%s8652_s4 + $0x160] sm:$0xff] }
 0x2df   :  { %3303 = vmatprep.subr.mxu0 %v3105_v33  ;;  %2354 = vmatmul.mubr.f32.gmra.mxu1 %v7243_v27 }
 0x2e0   :  { %3226 = vmatprep.mubr.f32.mxu0 %v4995_v60  ;;  %4631 = vmatprep.subr.mxu1 %v3107_v61  ;;  %v3092_v61 = vmul.f32 %v4395_v63, %v2950_v21  ;;  %v4390_v60 = vld [vmem:[%s8651_s3 + $0x758] sm:$0xff]  ;;  %v5004_v63 = vld [vmem:[%s8652_s4 + $0x1c8] sm:$0xff] }
 0x2e1   :  { %3304 = vmatpush2.msra.mxu0 %v3104_v52  ;;  %4663 = vmatpush2.msra.mxu1 %v3106_v20  ;;  %v4392_v20 = vld [vmem:[%s8651_s3 + $0x768] sm:$0xff] }
 0x2e2   :  { %3227 = vmatmul.mubr.f32.gmra.mxu0 %v6668_v50  ;;  %3305 = vmatprep.subr.mxu0 %v3103_v25  ;;  %v4400_v50 = vld [vmem:[%s8651_s3 + $0x7a8] sm:$0xff] }
 0x2e3   :  { %4632 = vmatprep.subr.mxu1 %v3105_v33  ;;  %3306 = vmatpush2.msra.mxu0 %v3102_v55  ;;  %v3097_v17 = vmul.f32 %v4400_v50, %v2958_v41  ;;  %v2942_v33 = vpop.permute.xlu0 %2941  ;;  %v4387_v50 = vld [vmem:[%s8651_s3 + $0x740] sm:$0xff]  ;;  %v5002_v41 = vld [vmem:[%s8652_s4 + $0x1a8] sm:$0xff] }
 0x2e4   :  { %2359 = vmatprep.mubr.f32.mxu1 %v7265_v43  ;;  %4664 = vmatpush2.msra.mxu1 %v3104_v52  ;;  %v5000_v52 = vld [vmem:[%s8652_s4 + $0x188] sm:$0xff]  ;;  %v3089_v31 = vmul.f32 %v4392_v20, %v2942_v33  ;;  %v4381_v20 = vld [vmem:[%s8651_s3 + $0x710] sm:$0xff] }
 0x2e5   :  { %3307 = vmatprep.subr.mxu0 %v3101_v59  ;;  %2360 = vmatmul.mubr.f32.gmra.mxu1 %v7271_v4 }
 0x2e6   :  { %3232 = vmatprep.mubr.f32.mxu0 %v4996_v9  ;;  %4633 = vmatprep.subr.mxu1 %v3103_v25  ;;  %v5001_v25 = vld [vmem:[%s8652_s4 + $0x180] sm:$0xff]  ;;  %v7383_v9 = vld [vmem:[%s8652_s4 + $0x1b8] sm:$0xff] }
 0x2e7   :  { %3308 = vmatpush2.msra.mxu0 %v3100_v6  ;;  %4665 = vmatpush2.msra.mxu1 %v3102_v55  ;;  %v2938_v55 = vpop.permute.xlu1 %2937 }
 0x2e8   :  { %3233 = vmatmul.mubr.f32.gmra.mxu0 %v4997_v29  ;;  %3309 = vmatprep.subr.mxu0 %v3099_v45  ;;  %v3087_v48 = vmul.f32 %v4390_v60, %v2938_v55  ;;  %v4386_v29 = vld [vmem:[%s8651_s3 + $0x738] sm:$0xff] }
 0x2e9   :  { %4634 = vmatprep.subr.mxu1 %v3101_v59  ;;  %3310 = vmatpush2.msra.mxu0 %v3098_v15  ;;  %v3088_v59 = vmul.f32 %v4391_v30, %v2942_v33  ;;  %v4380_v33 = vld [vmem:[%s8651_s3 + $0x708] sm:$0xff]  ;;  %v4379_v30 = vld [vmem:[%s8651_s3 + $0x700] sm:$0xff]  ;;  %v1503_v60 = vld [vmem:[%s8652_s4 + $0x1f8] sm:$0xff] }
 0x2ea   :  { %2365 = vmatprep.mubr.f32.mxu1 %v7293_v5  ;;  %4666 = vmatpush2.msra.mxu1 %v3100_v6  ;;  %v2934_v6 = vpop.permute.xlu0 %2933 }
 0x2eb   :  { %3311 = vmatprep.subr.mxu0 %v3097_v17  ;;  %2366 = vmatmul.mubr.f32.gmra.mxu1 %v7301_v24  ;;  %v3085_v22 = vmul.f32 %v4388_v38, %v2934_v6  ;;  %v2930_v7 = vpop.permute.xlu1 %2929  ;;  %v3084_v49 = vmul.f32 %v4387_v50, %v2934_v6  ;;  %v5008_v38 = vld [vmem:[%s8652_s4 + $0x18] sm:$0xff] }
 0x2ec   :  { %3238 = vmatprep.mubr.f32.mxu0 %v4998_v1  ;;  %4635 = vmatprep.subr.mxu1 %v3099_v45  ;;  %v3086_v45 = vmul.f32 %v4389_v2, %v2938_v55  ;;  %v3083_v21 = vmul.f32 %v4386_v29, %v2930_v7  ;;  %v1502_v2 = vld [vmem:[%s8652_s4 + $0x1f0] sm:$0xff] }
 0x2ed   :  { %3312 = vmatpush2.msra.mxu0 %v3096_v26  ;;  %4667 = vmatpush2.msra.mxu1 %v3098_v15  ;;  %v5003_v15 = vld [vmem:[%s8652_s4 + $0x1a0] sm:$0xff] }
 0x2ee   :  { %3239 = vmatmul.mubr.f32.gmra.mxu0 %v4999_v19  ;;  %3313 = vmatprep.subr.mxu0 %v3095_v0  ;;  %v2926_v13 = vpop.permute.xlu0 %2925  ;;  %v5005_v19 = vld [vmem:[%s8652_s4 + $0x1c0] sm:$0xff] }
 0x2ef   :  { %4636 = vmatprep.subr.mxu1 %v3097_v17  ;;  %3314 = vmatpush2.msra.mxu0 %v3094_v23  ;;  %v7391_v17 = vld [vmem:[%s8652_s4 + $0x1b0] sm:$0xff] }
 0x2f0   :  { %2371 = vmatprep.mubr.f32.mxu1 %v7323_v58  ;;  %4668 = vmatpush2.msra.mxu1 %v3096_v26  ;;  %v4385_v26 = vld [vmem:[%s8651_s3 + $0x730] sm:$0xff] }
 0x2f1   :  { %3315 = vmatprep.subr.mxu0 %v3093_v12  ;;  %2372 = vmatmul.mubr.f32.gmra.mxu1 %v7331_v14  ;;  %v3082_v1 = vmul.f32 %v4385_v26, %v2930_v7 }
 0x2f2   :  { %3244 = vmatprep.mubr.f32.mxu0 %v5000_v52  ;;  %4637 = vmatprep.subr.mxu1 %v3095_v0  ;;  %v4383_v0 = vld [vmem:[%s8651_s3 + $0x720] sm:$0xff] }
 0x2f3   :  { %3316 = vmatpush2.msra.mxu0 %v3092_v61  ;;  %4669 = vmatpush2.msra.mxu1 %v3094_v23  ;;  %v3081_v23 = vmul.f32 %v4384_v10, %v2926_v13  ;;  %v3080_v53 = vmul.f32 %v4383_v0, %v2926_v13 }
 0x2f4   :  { %3245 = vmatmul.mubr.f32.gmra.mxu0 %v5001_v25  ;;  %3317 = vmatprep.subr.mxu0 %v3091_v3 }
 0x2f5   :  { %4638 = vmatprep.subr.mxu1 %v3093_v12  ;;  %3318 = vmatpush2.msra.mxu0 %v3090_v51  ;;  %v7413_v12 = vld [vmem:[%s8652_s4 + $0x1d8] sm:$0xff] }
 0x2f6   :  { %2377 = vmatprep.mubr.f32.mxu1 %v7353_v39  ;;  %4670 = vmatpush2.msra.mxu1 %v3092_v61  ;;  %v2922_v61 = vpop.permute.xlu1 %2921 }
 0x2f7   :  { %3319 = vmatprep.subr.mxu0 %v3089_v31  ;;  %2378 = vmatmul.mubr.f32.gmra.mxu1 %v7361_v35  ;;  %v3079_v52 = vmul.f32 %v4382_v16, %v2922_v61 }
 0x2f8   :  { %3250 = vmatprep.mubr.f32.mxu0 %v5002_v41  ;;  %4639 = vmatprep.subr.mxu1 %v3091_v3  ;;  %v2918_v3 = vpop.permute.xlu0 %2917 }
 0x2f9   :  { %3320 = vmatpush2.msra.mxu0 %v3088_v59  ;;  %4671 = vmatpush2.msra.mxu1 %v3090_v51  ;;  %v5006_v51 = vld [vmem:[%s8652_s4 + $0x1e8] sm:$0xff]  ;;  %v3077_v25 = vmul.f32 %v4380_v33, %v2918_v3  ;;  %v3076_v55 = vmul.f32 %v4379_v30, %v2918_v3 }
 0x2fa   :  { %3251 = vmatmul.mubr.f32.gmra.mxu0 %v5003_v15  ;;  %3321 = vmatprep.subr.mxu0 %v3087_v48 }
 0x2fb   :  { %4640 = vmatprep.subr.mxu1 %v3089_v31  ;;  %3322 = vmatpush2.msra.mxu0 %v3086_v45  ;;  %v3078_v31 = vmul.f32 %v4381_v20, %v2922_v61 }
 0x2fc   :  { %2383 = vmatprep.mubr.f32.mxu1 %v7383_v9  ;;  %4672 = vmatpush2.msra.mxu1 %v3088_v59  ;;  %v5007_v59 = vld [vmem:[%s8652_s4 + $0x1e0] sm:$0xff] }
 0x2fd   :  { %3323 = vmatprep.subr.mxu0 %v3085_v22  ;;  %2384 = vmatmul.mubr.f32.gmra.mxu1 %v7391_v17 }
 0x2fe   :  { %3256 = vmatprep.mubr.f32.mxu0 %v5004_v63  ;;  %4641 = vmatprep.subr.mxu1 %v3087_v48 }
 0x2ff   :  { %3324 = vmatpush2.msra.mxu0 %v3084_v49  ;;  %4673 = vmatpush2.msra.mxu1 %v3086_v45 }
 0x300   :  { %3257 = vmatmul.mubr.f32.gmra.mxu0 %v5005_v19  ;;  %3325 = vmatprep.subr.mxu0 %v3083_v21 }
 0x301   :  { %4642 = vmatprep.subr.mxu1 %v3085_v22  ;;  %3326 = vmatpush2.msra.mxu0 %v3082_v1 }
 0x302   :  { %2389 = vmatprep.mubr.f32.mxu1 %v7413_v12  ;;  %4674 = vmatpush2.msra.mxu1 %v3084_v49 }
 0x303   :  { %3327 = vmatprep.subr.mxu0 %v3081_v23  ;;  %2390 = vmatmul.mubr.f32.gmra.mxu1 %v7421_v57 }
 0x304   :  { %3262 = vmatprep.mubr.f32.mxu0 %v5006_v51  ;;  %4643 = vmatprep.subr.mxu1 %v3083_v21 }
 0x305   :  { %3328 = vmatpush2.msra.mxu0 %v3080_v53  ;;  %4675 = vmatpush2.msra.mxu1 %v3082_v1 }
 0x306   :  { %3263 = vmatmul.mubr.f32.gmra.mxu0 %v5007_v59  ;;  %3329 = vmatprep.subr.mxu0 %v3079_v52 }
 0x307   :  { %4644 = vmatprep.subr.mxu1 %v3081_v23  ;;  %3330 = vmatpush2.msra.mxu0 %v3078_v31 }
 0x308   :  { %2395 = vmatprep.mubr.f32.mxu1 %v1503_v60  ;;  %4676 = vmatpush2.msra.mxu1 %v3080_v53 }
 0x309   :  { %3331 = vmatprep.subr.mxu0 %v3077_v25  ;;  %2396 = vmatmul.mubr.f32.gmra.mxu1 %v1502_v2 }
 0x30a   :  { %4645 = vmatprep.subr.mxu1 %v3079_v52  ;;  %3332 = vmatpush2.msra.mxu0 %v3076_v55 }
 0x30b   :  { %3333 = vmatprep.mubr.f32.mxu0 %v5008_v38  ;;  %4677 = vmatpush2.msra.mxu1 %v3078_v31 }
 0x30c   :  { %3334 = vmatmul.mubr.f32.vlgmr.msra.gmra.mxu0 %v7036_v44  ;;  %4646 = vmatprep.subr.mxu1 %v3077_v25 }
 0x30d   :  { %4678 = vmatpush2.msra.mxu1 %v3076_v55  ;;  %3375 = vmatprep.mubr.f32.mxu1 %v7211_v62  ;;  %v7454_v6 = vpop.f32.mrf.mxu1 }
 0x30e   :  { %3339 = vmatprep.mubr.f32.mxu0 %v7055_v8  ;;  %3376 = vmatmul.mubr.f32.vlgmr.msra.gmra.mxu1 %v7217_v18 }
 0x30f   :  { %3381 = vmatprep.mubr.f32.mxu1 %v7237_v34  ;;  %v7459_v48 = vpop.f32.mrf.mxu1 }
 0x310   :  { %3340 = vmatmul.mubr.f32.gmra.mxu0 %v7061_v28 }
 0x311   :  { %3345 = vmatprep.mubr.f32.mxu0 %v7081_v36  ;;  %v7463_v50 = vpop.f32.mrf.mxu1 }
 0x312   :  { %3382 = vmatmul.mubr.f32.gmra.mxu1 %v7243_v27 }
 0x313   :  { %3387 = vmatprep.mubr.f32.mxu1 %v7265_v43  ;;  %v7467_v44 = vpop.f32.mrf.mxu1 }
 0x314   :  { %3346 = vmatmul.mubr.f32.gmra.mxu0 %v7087_v32 }
 0x315   :  { %3351 = vmatprep.mubr.f32.mxu0 %v7107_v11  ;;  %v7471_v8 = vpop.f32.mrf.mxu1 }
 0x316   :  { %3388 = vmatmul.mubr.f32.gmra.mxu1 %v7271_v4 }
 0x317   :  { %3393 = vmatprep.mubr.f32.mxu1 %v7293_v5  ;;  %v7475_v28 = vpop.f32.mrf.mxu1 }
 0x318   :  { %3352 = vmatmul.mubr.f32.gmra.mxu0 %v7113_v54 }
 0x319   :  { %3357 = vmatprep.mubr.f32.mxu0 %v7133_v47  ;;  %v7479_v36 = vpop.f32.mrf.mxu1 }
 0x31a   :  { %3394 = vmatmul.mubr.f32.gmra.mxu1 %v7301_v24 }
 0x31b   :  { %3399 = vmatprep.mubr.f32.mxu1 %v7323_v58  ;;  %v7483_v32 = vpop.f32.mrf.mxu1 }
 0x31c   :  { %3358 = vmatmul.mubr.f32.gmra.mxu0 %v7139_v40 }
 0x31d   :  { %3363 = vmatprep.mubr.f32.mxu0 %v7159_v37  ;;  %v7487_v11 = vpop.f32.mrf.mxu1 }
 0x31e   :  { %3400 = vmatmul.mubr.f32.gmra.mxu1 %v7331_v14 }
 0x31f   :  { %3405 = vmatprep.mubr.f32.mxu1 %v7353_v39  ;;  %v7491_v54 = vpop.f32.mrf.mxu1 }
 0x320   :  { %3364 = vmatmul.mubr.f32.gmra.mxu0 %v7165_v42 }
 0x321   :  { %3369 = vmatprep.mubr.f32.mxu0 %v7185_v56  ;;  %v7495_v47 = vpop.f32.mrf.mxu1 }
 0x322   :  { %3406 = vmatmul.mubr.f32.gmra.mxu1 %v7361_v35 }
 0x323   :  { %3411 = vmatprep.mubr.f32.mxu1 %v7383_v9  ;;  %v7499_v40 = vpop.f32.mrf.mxu1 }
 0x324   :  { %3370 = vmatmul.mubr.f32.gmra.mxu0 %v7191_v46 }
 0x325   :  { %v7502_v37 = vpop.f32.mrf.mxu1 }
 0x326   :  { %3412 = vmatmul.mubr.f32.gmra.mxu1 %v7391_v17 }
 0x327   :  { %3417 = vmatprep.mubr.f32.mxu1 %v7413_v12  ;;  %v7506_v62 = vpop.f32.mrf.mxu1 }
 0x329   :  { %v7508_v42 = vpop.f32.mrf.mxu1 }
 0x32a   :  { %3418 = vmatmul.mubr.f32.gmra.mxu1 %v7421_v57 }
 0x32b   :  { %3423 = vmatprep.mubr.f32.mxu1 %v1503_v60  ;;  %v7511_v56 = vpop.f32.mrf.mxu1 }
 0x32d   :  { %v7513_v18 = vpop.f32.mrf.mxu1 }
 0x32e   :  { %3424 = vmatmul.mubr.f32.gmra.mxu1 %v1502_v2 }
 0x32f   :  { %v7515_v34 = vpop.f32.mrf.mxu1 }
 0x331   :  { %v7517_v46 = vpop.f32.mrf.mxu1 }
 0x333   :  { %v7519_v27 = vpop.f32.mrf.mxu1 }
 0x335   :  { %v7521_v43 = vpop.f32.mrf.mxu1 }
 0x336   :  { %8735 = vst [vmem:[#allocation2_spill] sm:$0xff] %v7521_v43 }
 0x337   :  { %v7523_v4 = vpop.f32.mrf.mxu1 }
 0x338   :  { %8736 = vst [vmem:[#allocation3_spill] sm:$0xff] %v7523_v4 }
 0x339   :  { %v7525_v5 = vpop.f32.mrf.mxu1 }
 0x33a   :  { %8737 = vst [vmem:[#allocation10_spill] sm:$0xff] %v7525_v5 }
 0x33b   :  { %v7527_v24 = vpop.f32.mrf.mxu1 }
 0x33d   :  { %v7529_v58 = vpop.f32.mrf.mxu1 }
 0x33e   :  { %8738 = vst [vmem:[#allocation14_spill] sm:$0xff] %v7529_v58 }
 0x33f   :  { %v7531_v14 = vpop.f32.mrf.mxu1 }
 0x340   :  { %8739 = vst [vmem:[#allocation9_spill] sm:$0xff] %v7531_v14 }
 0x341   :  { %v7533_v39 = vpop.f32.mrf.mxu1 }
 0x342   :  { %8740 = vst [vmem:[#allocation13_spill] sm:$0xff] %v7533_v39 }
 0x343   :  { %v7535_v35 = vpop.f32.mrf.mxu1 }
 0x344   :  { %8741 = vst [vmem:[#allocation7_spill] sm:$0xff] %v7535_v35 }
 0x345   :  { %v7537_v41 = vpop.f32.mrf.mxu1 }
 0x346   :  { %8742 = vst [vmem:[#allocation12_spill] sm:$0xff] %v7537_v41 }
 0x347   :  { %v7539_v45 = vpop.f32.mrf.mxu1 }
 0x348   :  { %8743 = vst [vmem:[#allocation5_spill] sm:$0xff] %v7539_v45 }
 0x349   :  { %v7541_v22 = vpop.f32.mrf.mxu1 }
 0x34a   :  { %8744 = vst [vmem:[#allocation11_spill] sm:$0xff] %v7541_v22 }
 0x34b   :  { %v7543_v9 = vpop.f32.mrf.mxu1 }
 0x34c   :  { %8745 = vst [vmem:[#allocation4_spill] sm:$0xff] %v7543_v9 }
 0x36c   :  { %v7545_v15 = vpop.f32.mrf.mxu0 }
 0x36e   :  { %v3176_v17 = vpop.f32.mrf.mxu0 }
 0x36f   :  { %v2307_v29 = vpop.f32.mrf.mxu1 }
 0x370   :  { %v7553_v10 = vadd.f32 %v2307_v29, %v7454_v6 }
 0x371   :  { %v2309_v7 = vpop.f32.mrf.mxu1 }
 0x372   :  { %v7547_v49 = vpop.f32.mrf.mxu0  ;;  %v7550_v26 = vadd.f32 %v2309_v7, %v7459_v48  ;;  %8747 = vst [vmem:[#allocation6_spill] sm:$0xff] %v7553_v10 }
 0x374   :  { %8746 = vst [vmem:[#allocation8_spill] sm:$0xff] %v7550_v26  ;;  %v3182_v13 = vpop.f32.mrf.mxu0  ;;  %v2403_v21 = vsel %vm2402_vm1, %v7550_v26, 0.0 }
 0x375   :  { %v2404_v0 = vadd.f32 %v2403_v21, %v7553_v10  ;;  %v2313_v57 = vpop.f32.mrf.mxu1 }
 0x377   :  { %2405 = vadd.xlane.f32.xlu1 %v2404_v0  ;;  %v2315_v61 = vpop.f32.mrf.mxu1 }
 0x378   :  { %v7558_v63 = vpop.f32.mrf.mxu0 }
 0x37a   :  { %v7560_v1 = vpop.f32.mrf.mxu0 }
 0x37b   :  { %v7574_v33 = vpop.f32.mrf.mxu1 }
 0x37d   :  { %v7578_v30 = vpop.f32.mrf.mxu1 }
 0x37e   :  { %v7562_v23 = vpop.f32.mrf.mxu0 }
 0x380   :  { %v7564_v12 = vpop.f32.mrf.mxu0 }
 0x381   :  { %v7582_v51 = vpop.f32.mrf.mxu1 }
 0x383   :  { %v7588_v60 = vpop.f32.mrf.mxu1 }
 0x384   :  { %v7566_v19 = vpop.f32.mrf.mxu0 }
 0x386   :  { %v7568_v16 = vpop.f32.mrf.mxu0 }
 0x387   :  { %v7592_v59 = vpop.f32.mrf.mxu1 }
 0x389   :  { %v7596_v38 = vpop.f32.mrf.mxu1 }
 0x38a   :  { %v7570_v53 = vpop.f32.mrf.mxu0 }
 0x38c   :  { %v7572_v20 = vpop.f32.mrf.mxu0 }
 0x38d   :  { %v7602_v29 = vpop.f32.mrf.mxu1 }
 0x38f   :  { %v7606_v21 = vpop.f32.mrf.mxu1 }
 0x390   :  { %v7576_v3 = vpop.f32.mrf.mxu0 }
 0x392   :  { %v7580_v52 = vpop.f32.mrf.mxu0 }
 0x396   :  { %v7584_v31 = vpop.f32.mrf.mxu0 }
 0x397   :  { %8748 = vst [vmem:[#allocation15_spill] sm:$0xff] %v7584_v31  ;;  %v7610_v31 = vpop.f32.mrf.mxu1 }
 0x398   :  { %v7586_v25 = vpop.f32.mrf.mxu0 }
 0x399   :  { %8749 = vst [vmem:[#allocation16_spill] sm:$0xff] %v7586_v25 }
 0x39c   :  { %v7590_v55 = vpop.f32.mrf.mxu0 }
 0x39d   :  { %8750 = vst [vmem:[#allocation17_spill] sm:$0xff] %v7590_v55 }
 0x39e   :  { %v7594_v2 = vpop.f32.mrf.mxu0 }
 0x39f   :  { %8751 = vst [vmem:[#allocation18_spill] sm:$0xff] %v7594_v2  ;;  %v7616_v2 = vpop.f32.mrf.mxu1 }
 0x3a2   :  { %v7598_v6 = vpop.f32.mrf.mxu0 }
 0x3a3   :  { %8752 = vst [vmem:[#allocation19_spill] sm:$0xff] %v7598_v6  ;;  %v7620_v6 = vpop.f32.mrf.mxu1 }
 0x3a4   :  { %v7600_v48 = vpop.f32.mrf.mxu0 }
 0x3a5   :  { %8753 = vst [vmem:[#allocation20_spill] sm:$0xff] %v7600_v48  ;;  %v7624_v45 = vpop.f32.mrf.mxu1 }
 0x3a8   :  { %v7604_v7 = vpop.f32.mrf.mxu0 }
 0x3a9   :  { %8754 = vst [vmem:[#allocation21_spill] sm:$0xff] %v7604_v7 }
 0x3aa   :  { %v7608_v0 = vpop.f32.mrf.mxu0 }
 0x3ab   :  { %8755 = vst [vmem:[#allocation22_spill] sm:$0xff] %v7608_v0  ;;  %v7630_v0 = vpop.f32.mrf.mxu1 }
 0x3ac   :  { %8762 = vst [vmem:[#allocation29_spill] sm:$0xff] %v7630_v0 }
 0x3ae   :  { %v7612_v55 = vpop.f32.mrf.mxu0 }
 0x3af   :  { %8756 = vst [vmem:[#allocation23_spill] sm:$0xff] %v7612_v55  ;;  %v7634_v55 = vpop.f32.mrf.mxu1 }
 0x3b0   :  { %v7614_v41 = vpop.f32.mrf.mxu0 }
 0x3b1   :  { %8757 = vst [vmem:[#allocation24_spill] sm:$0xff] %v7614_v41  ;;  %v7638_v9 = vpop.f32.mrf.mxu1 }
 0x3b4   :  { %v7618_v25 = vpop.f32.mrf.mxu0 }
 0x3b5   :  { %8758 = vst [vmem:[#allocation25_spill] sm:$0xff] %v7618_v25 }
 0x3b6   :  { %v7622_v48 = vpop.f32.mrf.mxu0 }
 0x3b7   :  { %8759 = vst [vmem:[#allocation26_spill] sm:$0xff] %v7622_v48  ;;  %v7644_v48 = vpop.f32.mrf.mxu1 }
 0x3ba   :  { %v7626_v7 = vpop.f32.mrf.mxu0 }
 0x3bb   :  { %8760 = vst [vmem:[#allocation27_spill] sm:$0xff] %v7626_v7  ;;  %v7646_v7 = vpop.f32.mrf.mxu1 }
 0x3bc   :  { %v7628_v22 = vpop.f32.mrf.mxu0  ;;  %8767 = vst [vmem:[#allocation34_spill] sm:$0xff] %v7646_v7 }
 0x3bd   :  { %8761 = vst [vmem:[#allocation28_spill] sm:$0xff] %v7628_v22  ;;  %v7655_v4 = vpop.f32.mrf.mxu1 }
 0x3be   :  { %8769 = vst [vmem:[#allocation36_spill] sm:$0xff] %v7655_v4 }
 0x3bf   :  { %v7675_v4 = vpop.f32.mrf.mxu1 }
 0x3c0   :  { %v7632_v58 = vpop.f32.mrf.mxu0  ;;  %8771 = vst [vmem:[#allocation38_spill] sm:$0xff] %v7675_v4 }
 0x3c1   :  { %8763 = vst [vmem:[#allocation30_spill] sm:$0xff] %v7632_v58  ;;  %v2484_v58 = vmul.f32 %v7550_v26, %v7550_v26 }
 0x3c2   :  { %v7636_v41 = vpop.f32.mrf.mxu0 }
 0x3c3   :  { %8764 = vst [vmem:[#allocation31_spill] sm:$0xff] %v7636_v41  ;;  %v7653_v41 = vadd.f32 %v2315_v61, %v7467_v44  ;;  %v2515_v61 = vsel %vm2402_vm1, %v2484_v58, 0.0 }
 0x3c5   :  { %v2486_v26 = vmul.f32 %v7653_v41, %v7653_v41 }
 0x3c6   :  { %v7640_v25 = vpop.f32.mrf.mxu0 }
 0x3c7   :  { %8765 = vst [vmem:[#allocation32_spill] sm:$0xff] %v7640_v25 }
 0x3c8   :  { %v7642_v14 = vpop.f32.mrf.mxu0 }
 0x3c9   :  { %8766 = vst [vmem:[#allocation33_spill] sm:$0xff] %v7642_v14 }
 0x3cc   :  { %v3335_v39 = vpop.f32.mrf.mxu0 }
 0x3cd   :  { %v7658_v25 = vadd.f32 %v3335_v39, %v7545_v15  ;;  %v2483_v39 = vmul.f32 %v7553_v10, %v7553_v10  ;;  %v7673_v15 = vadd.f32 %v2313_v57, %v7463_v50  ;;  %v2519_v10 = vsel %vm2402_vm1, %v2486_v26, 0.0 }
 0x3ce   :  { %v3337_v22 = vpop.f32.mrf.mxu0  ;;  %v7699_v26 = vadd.f32 %v7588_v60, %v7483_v32 }
 0x3cf   :  { %v7648_v43 = vadd.f32 %v3337_v22, %v3176_v17  ;;  %v2516_v0 = vadd.f32 %v2515_v61, %v2483_v39  ;;  %v2485_v57 = vmul.f32 %v7673_v15, %v7673_v15  ;;  %v7695_v39 = vadd.f32 %v7578_v30, %v7475_v28 }
 0x3d0   :  { %v3341_v35 = vpop.f32.mrf.mxu0  ;;  %v2415_v60 = vsel %vm2402_vm1, %v7699_v26, 0.0 }
 0x3d1   :  { %8768 = vst [vmem:[#allocation35_spill] sm:$0xff] %v7648_v43  ;;  %v3430_v5 = vsel %vm2402_vm1, %v7648_v43, 0.0  ;;  %v3511_v44 = vmul.f32 %v7648_v43, %v7648_v43 }
 0x3d2   :  { %v3343_v14 = vpop.f32.mrf.mxu0  ;;  %v3431_v17 = vadd.f32 %v3430_v5, %v7658_v25 }
 0x3d3   :  { %v7662_v7 = vadd.f32 %v3343_v14, %v3182_v13  ;;  %v7678_v14 = vadd.f32 %v3341_v35, %v7547_v49  ;;  %v3542_v50 = vsel %vm2402_vm1, %v3511_v44, 0.0  ;;  %v7689_v35 = vpop.f32.mrf.mxu1  ;;  %v3510_v49 = vmul.f32 %v7658_v25, %v7658_v25 }
 0x3d4   :  { %v3347_v22 = vpop.f32.mrf.mxu0  ;;  %3432 = vadd.xlane.f32.xlu0 %v3431_v17 }
 0x3d5   :  { %8770 = vst [vmem:[#allocation37_spill] sm:$0xff] %v7662_v7  ;;  %v3434_v13 = vsel %vm2402_vm1, %v7662_v7, 0.0  ;;  %v3513_v58 = vmul.f32 %v7662_v7, %v7662_v7  ;;  %v3543_v61 = vadd.f32 %v3542_v50, %v3510_v49  ;;  %v2407_v7 = vsel %vm2402_vm1, %v7653_v41, 0.0  ;;  %v7704_v4 = vpop.f32.mrf.mxu1 }
 0x3d6   :  { %v3349_v5 = vpop.f32.mrf.mxu0  ;;  %v3435_v43 = vadd.f32 %v3434_v13, %v7678_v14  ;;  %v2520_v13 = vadd.f32 %v2519_v10, %v2485_v57  ;;  %v2408_v28 = vadd.f32 %v2407_v7, %v7673_v15  ;;  %v7721_v50 = vadd.f32 %v7574_v33, %v7471_v8 }
 0x3d7   :  { %v3546_v44 = vsel %vm2402_vm1, %v3513_v58, 0.0  ;;  %v7710_v30 = vadd.f32 %v3349_v5, %v7560_v1  ;;  %v2411_v58 = vsel %vm2402_vm1, %v7695_v39, 0.0  ;;  %v7725_v57 = vadd.f32 %v7582_v51, %v7479_v36  ;;  %v7727_v7 = vpop.f32.mrf.mxu1 }
 0x3d8   :  { %v3353_v17 = vpop.f32.mrf.mxu0  ;;  %3436 = vadd.xlane.f32.xlu1 %v3435_v43  ;;  %2517 = vadd.xlane.f32.xlu0 %v2516_v0  ;;  %v3512_v43 = vmul.f32 %v7678_v14, %v7678_v14  ;;  %v2412_v5 = vadd.f32 %v2411_v58, %v7721_v50  ;;  %v2488_v49 = vmul.f32 %v7695_v39, %v7695_v39 }
 0x3d9   :  { %8772 = vst [vmem:[#allocation39_spill] sm:$0xff] %v7710_v30  ;;  %v2490_v8 = vmul.f32 %v7699_v26, %v7699_v26  ;;  %v3438_v36 = vsel %vm2402_vm1, %v7710_v30, 0.0  ;;  %v7739_v51 = vpop.f32.mrf.mxu1 }
 0x3da   :  { %v3355_v10 = vpop.f32.mrf.mxu0  ;;  %v3547_v0 = vadd.f32 %v3546_v44, %v3512_v43 }
 0x3db   :  { %v7713_v32 = vadd.f32 %v3355_v10, %v7564_v12  ;;  %v2416_v12 = vadd.f32 %v2415_v60, %v7725_v57  ;;  %v2527_v60 = vsel %vm2402_vm1, %v2490_v8, 0.0 }
 0x3dc   :  { %2521 = vadd.xlane.f32.xlu1 %v2520_v13  ;;  %3544 = vadd.xlane.f32.xlu0 %v3543_v61  ;;  %v3359_v1 = vpop.f32.mrf.mxu0  ;;  %v7742_v13 = vadd.f32 %v3347_v22, %v7558_v63  ;;  %v7745_v61 = vadd.f32 %v3353_v17, %v7562_v23  ;;  %v2523_v63 = vsel %vm2402_vm1, %v2488_v49, 0.0  ;;  %v2487_v23 = vmul.f32 %v7721_v50, %v7721_v50  ;;  %v7759_v17 = vpop.f32.mrf.mxu1 }
 0x3dd   :  { %v3442_v33 = vsel %vm2402_vm1, %v7713_v32, 0.0  ;;  %v2489_v22 = vmul.f32 %v7725_v57, %v7725_v57  ;;  %v7767_v49 = vadd.f32 %v7606_v21, %v7499_v40 }
 0x3de   :  { %v3361_v44 = vpop.f32.mrf.mxu0  ;;  %v3443_v43 = vadd.f32 %v3442_v33, %v7745_v61  ;;  %v3439_v10 = vadd.f32 %v3438_v36, %v7742_v13  ;;  %v7763_v33 = vadd.f32 %v7596_v38, %v7491_v54 }
 0x3df   :  { %v7778_v40 = vadd.f32 %v3361_v44, %v7568_v16 }
 0x3e0   :  { %3548 = vadd.xlane.f32.xlu1 %v3547_v0  ;;  %2409 = vadd.xlane.f32.xlu0 %v2408_v28  ;;  %v3515_v0 = vmul.f32 %v7710_v30, %v7710_v30  ;;  %v3517_v28 = vmul.f32 %v7713_v32, %v7713_v32  ;;  %v3365_v58 = vpop.f32.mrf.mxu0  ;;  %v7771_v30 = vpop.f32.mrf.mxu1  ;;  %v2492_v44 = vmul.f32 %v7763_v33, %v7763_v33 }
 0x3e2   :  { %v3554_v8 = vsel %vm2402_vm1, %v3517_v28, 0.0  ;;  %v3550_v36 = vsel %vm2402_vm1, %v3515_v0, 0.0  ;;  %v2423_v0 = vsel %vm2402_vm1, %v7767_v49, 0.0  ;;  %v2419_v28 = vsel %vm2402_vm1, %v7763_v33, 0.0 }
 0x3e4   :  { %2417 = vadd.xlane.f32.xlu1 %v2416_v12  ;;  %2413 = vadd.xlane.f32.xlu0 %v2412_v5  ;;  %v2528_v12 = vadd.f32 %v2527_v60, %v2489_v22  ;;  %v2524_v5 = vadd.f32 %v2523_v63, %v2487_v23  ;;  %v3367_v60 = vpop.f32.mrf.mxu0  ;;  %v7789_v63 = vadd.f32 %v7592_v59, %v7487_v11  ;;  %v7795_v22 = vpop.f32.mrf.mxu1 }
 0x3e5   :  { %v7781_v21 = vadd.f32 %v3367_v60, %v7572_v20  ;;  %v7793_v23 = vadd.f32 %v7602_v29, %v7495_v47  ;;  %v3446_v47 = vsel %vm2402_vm1, %v7778_v40, 0.0  ;;  %v7810_v29 = vadd.f32 %v3359_v1, %v7566_v19 }
 0x3e6   :  { %v2420_v20 = vadd.f32 %v2419_v28, %v7789_v63  ;;  %v7807_v59 = vpop.f32.mrf.mxu1  ;;  %v2531_v19 = vsel %vm2402_vm1, %v2492_v44, 0.0  ;;  %v7831_v28 = vadd.f32 %v7616_v2, %v7506_v62 }
 0x3e7   :  { %v2424_v16 = vadd.f32 %v2423_v0, %v7793_v23  ;;  %v3450_v11 = vsel %vm2402_vm1, %v7781_v21, 0.0  ;;  %v2493_v1 = vmul.f32 %v7793_v23, %v7793_v23 }
 0x3e8   :  { %3444 = vadd.xlane.f32.xlu1 %v3443_v43  ;;  %3440 = vadd.xlane.f32.xlu0 %v3439_v10  ;;  %v3514_v43 = vmul.f32 %v7742_v13, %v7742_v13  ;;  %v3516_v10 = vmul.f32 %v7745_v61, %v7745_v61 }
 0x3ea   :  { %v3555_v54 = vadd.f32 %v3554_v8, %v3516_v10  ;;  %v3551_v38 = vadd.f32 %v3550_v36, %v3514_v43  ;;  %v3447_v36 = vadd.f32 %v3446_v47, %v7810_v29  ;;  %v3519_v43 = vmul.f32 %v7778_v40, %v7778_v40 }
 0x3eb   :  { %v3521_v10 = vmul.f32 %v7781_v21, %v7781_v21 }
 0x3ec   :  { %2529 = vadd.xlane.f32.xlu1 %v2528_v12  ;;  %2525 = vadd.xlane.f32.xlu0 %v2524_v5  ;;  %v2494_v12 = vmul.f32 %v7767_v49, %v7767_v49  ;;  %v7813_v5 = vadd.f32 %v3365_v58, %v7570_v53  ;;  %v2491_v53 = vmul.f32 %v7789_v63, %v7789_v63  ;;  %v7827_v58 = vpop.f32.mrf.mxu1  ;;  %v3558_v44 = vsel %vm2402_vm1, %v3519_v43, 0.0 }
 0x3ed   :  { %v2427_v43 = vsel %vm2402_vm1, %v7831_v28, 0.0 }
 0x3ee   :  { %v3451_v8 = vadd.f32 %v3450_v11, %v7813_v5  ;;  %v2535_v60 = vsel %vm2402_vm1, %v2494_v12, 0.0  ;;  %v2532_v0 = vadd.f32 %v2531_v19, %v2491_v53  ;;  %v7839_v12 = vpop.f32.mrf.mxu1  ;;  %v3518_v11 = vmul.f32 %v7810_v29, %v7810_v29 }
 0x3ef   :  { %v3520_v47 = vmul.f32 %v7813_v5, %v7813_v5 }
 0x3f0   :  { %3556 = vadd.xlane.f32.xlu1 %v3555_v54  ;;  %3552 = vadd.xlane.f32.xlu0 %v3551_v38  ;;  %v3371_v54 = vpop.f32.mrf.mxu0  ;;  %v2536_v38 = vadd.f32 %v2535_v60, %v2493_v1  ;;  %v3559_v2 = vadd.f32 %v3558_v44, %v3518_v11  ;;  %v7860_v60 = vadd.f32 %v7620_v6, %v7508_v42  ;;  %v7862_v19 = vpop.f32.mrf.mxu1 }
 0x3f1   :  { %v2496_v1 = vmul.f32 %v7831_v28, %v7831_v28 }
 0x3f2   :  { %v7877_v6 = vpop.f32.mrf.mxu1 }
 0x3f4   :  { %2425 = vadd.xlane.f32.xlu1 %v2424_v16  ;;  %2421 = vadd.xlane.f32.xlu0 %v2420_v20  ;;  %v7835_v16 = vadd.f32 %v7624_v45, %v7511_v56  ;;  %v3562_v20 = vsel %vm2402_vm1, %v3521_v10, 0.0  ;;  %v7856_v10 = vadd.f32 %v7610_v31, %v7502_v37  ;;  %v2497_v31 = vmul.f32 %v7860_v60, %v7860_v60 }
 0x3f5   :  { %v3563_v62 = vadd.f32 %v3562_v20, %v3520_v47  ;;  %v2539_v47 = vsel %vm2402_vm1, %v2496_v1, 0.0 }
 0x3f6   :  { %v2498_v56 = vmul.f32 %v7835_v16, %v7835_v16  ;;  %v2428_v53 = vadd.f32 %v2427_v43, %v7856_v10 }
 0x3f8   :  { %3452 = vadd.xlane.f32.xlu1 %v3451_v8  ;;  %3448 = vadd.xlane.f32.xlu0 %v3447_v36  ;;  %v3373_v8 = vpop.f32.mrf.mxu0  ;;  %v2431_v36 = vsel %vm2402_vm1, %v7835_v16, 0.0  ;;  %v2543_v37 = vsel %vm2402_vm1, %v2498_v56, 0.0  ;;  %v7901_v56 = vadd.f32 %v7634_v55, %v7515_v34 }
 0x3f9   :  { %v7848_v45 = vadd.f32 %v3373_v8, %v7580_v52  ;;  %v2432_v52 = vadd.f32 %v2431_v36, %v7860_v60  ;;  %v2544_v20 = vadd.f32 %v2543_v37, %v2497_v31  ;;  %v7896_v8 = vpop.f32.mrf.mxu1  ;;  %v7905_v36 = vadd.f32 %v7689_v35, %v7527_v24 }
 0x3fa   :  { %8773 = vst [vmem:[#allocation40_spill] sm:$0xff] %v7901_v56  ;;  %v2500_v24 = vmul.f32 %v7901_v56, %v7901_v56  ;;  %v2435_v37 = vsel %vm2402_vm1, %v7901_v56, 0.0 }
 0x3fb   :  { %v3454_v42 = vsel %vm2402_vm1, %v7848_v45, 0.0  ;;  %8774 = vst [vmem:[#allocation41_spill] sm:$0xff] %v7905_v36  ;;  %v2506_v35 = vmul.f32 %v7905_v36, %v7905_v36  ;;  %v2447_v1 = vsel %vm2402_vm1, %v7905_v36, 0.0 }
 0x3fc   :  { %2537 = vadd.xlane.f32.xlu1 %v2536_v38  ;;  %2533 = vadd.xlane.f32.xlu0 %v2532_v0  ;;  %v7870_v38 = vadd.f32 %v7644_v48, %v7519_v27  ;;  %v7880_v0 = vadd.f32 %v3371_v54, %v7576_v3  ;;  %v3523_v48 = vmul.f32 %v7848_v45, %v7848_v45 }
 0x3fd   :  { %v2495_v3 = vmul.f32 %v7856_v10, %v7856_v10  ;;  %v7894_v54 = vadd.f32 %v7638_v9, %v7517_v46 }
 0x3fe   :  { %v3455_v44 = vadd.f32 %v3454_v42, %v7880_v0  ;;  %v2502_v27 = vmul.f32 %v7870_v38, %v7870_v38  ;;  %v2439_v11 = vsel %vm2402_vm1, %v7870_v38, 0.0  ;;  %v3566_v46 = vsel %vm2402_vm1, %v3523_v48, 0.0  ;;  %v8775_v42 = vld [vmem:[#allocation29_spill] sm:$0xff] }
 0x3ff   :  { %v2501_v9 = vmul.f32 %v7894_v54, %v7894_v54  ;;  %v7925_v31 = vadd.f32 %v8775_v42, %v7513_v18 }
 0x400   :  { %3564 = vadd.xlane.f32.xlu1 %v3563_v62  ;;  %3560 = vadd.xlane.f32.xlu0 %v3559_v2  ;;  %v2440_v62 = vadd.f32 %v2439_v11, %v7894_v54  ;;  %v2540_v2 = vadd.f32 %v2539_v47, %v2495_v3  ;;  %v2551_v43 = vsel %vm2402_vm1, %v2502_v27, 0.0  ;;  %v8780_v3 = vld [vmem:[#allocation3_spill] sm:$0xff] }
 0x401   :  { %v2552_v34 = vadd.f32 %v2551_v43, %v2501_v9  ;;  %8776 = vst [vmem:[#allocation29_spill] sm:$0xff] %v7925_v31  ;;  %v2436_v47 = vadd.f32 %v2435_v37, %v7925_v31  ;;  %v8783_v43 = vld [vmem:[#allocation7_spill] sm:$0xff]  ;;  %v2547_v9 = vsel %vm2402_vm1, %v2500_v24, 0.0 }
 0x402   :  { %v7941_v18 = vadd.f32 %v7759_v17, %v8783_v43 }
 0x404   :  { %2433 = vadd.xlane.f32.xlu1 %v2432_v52  ;;  %2429 = vadd.xlane.f32.xlu0 %v2428_v53  ;;  %v7911_v52 = vpop.f32.mrf.mxu1  ;;  %v3522_v53 = vmul.f32 %v7880_v0, %v7880_v0  ;;  %8784 = vst [vmem:[#allocation3_spill] sm:$0xff] %v7941_v18  ;;  %v2455_v24 = vsel %vm2402_vm1, %v7941_v18, 0.0 }
 0x406   :  { %v3567_v55 = vadd.f32 %v3566_v46, %v3522_v53  ;;  %v7931_v48 = vpop.f32.mrf.mxu1  ;;  %v2559_v46 = vsel %vm2402_vm1, %v2506_v35, 0.0  ;;  %v2499_v53 = vmul.f32 %v7925_v31, %v7925_v31  ;;  %v2510_v35 = vmul.f32 %v7941_v18, %v7941_v18 }
 0x408   :  { %2545 = vadd.xlane.f32.xlu1 %v2544_v20  ;;  %3456 = vadd.xlane.f32.xlu0 %v3455_v44  ;;  %v8777_v20 = vld [vmem:[#allocation10_spill] sm:$0xff]  ;;  %v2548_v37 = vadd.f32 %v2547_v9, %v2499_v53  ;;  %v8790_v9 = vld [vmem:[#allocation9_spill] sm:$0xff] }
 0x409   :  { %v8778_v44 = vld [vmem:[#allocation38_spill] sm:$0xff]  ;;  %v7973_v53 = vadd.f32 %v7727_v7, %v8790_v9 }
 0x40a   :  { %v7929_v27 = vadd.f32 %v8778_v44, %v8777_v20  ;;  %v8785_v20 = vld [vmem:[#allocation2_spill] sm:$0xff] }
 0x40b   :  { %v8786_v44 = vld [vmem:[#allocation34_spill] sm:$0xff]  ;;  %8791 = vst [vmem:[#allocation2_spill] sm:$0xff] %v7973_v53 }
 0x40c   :  { %2441 = vadd.xlane.f32.xlu1 %v2440_v62  ;;  %2541 = vadd.xlane.f32.xlu0 %v2540_v2  ;;  %8779 = vst [vmem:[#allocation10_spill] sm:$0xff] %v7929_v27  ;;  %v2448_v11 = vadd.f32 %v2447_v1, %v7929_v27  ;;  %v8781_v62 = vld [vmem:[#allocation36_spill] sm:$0xff]  ;;  %v8794_v9 = vld [vmem:[#allocation14_spill] sm:$0xff] }
 0x40d   :  { %v7937_v2 = vadd.f32 %v8781_v62, %v8780_v3  ;;  %v7961_v3 = vadd.f32 %v8786_v44, %v8785_v20  ;;  %v2567_v44 = vsel %vm2402_vm1, %v2510_v35, 0.0 }
 0x40f   :  { %8782 = vst [vmem:[#allocation38_spill] sm:$0xff] %v7937_v2  ;;  %v2504_v17 = vmul.f32 %v7937_v2, %v7937_v2  ;;  %v2443_v42 = vsel %vm2402_vm1, %v7937_v2, 0.0  ;;  %8787 = vst [vmem:[#allocation36_spill] sm:$0xff] %v7961_v3 }
 0x410   :  { %2553 = vadd.xlane.f32.xlu1 %v2552_v34  ;;  %3568 = vadd.xlane.f32.xlu0 %v3567_v55  ;;  %v2505_v34 = vmul.f32 %v7929_v27, %v7929_v27  ;;  %v7949_v55 = vpop.f32.mrf.mxu1 }
 0x412   :  { %v2560_v1 = vadd.f32 %v2559_v46, %v2505_v34  ;;  %v7967_v62 = vpop.f32.mrf.mxu1  ;;  %v2444_v46 = vadd.f32 %v2443_v42, %v7961_v3  ;;  %v8792_v34 = vld [vmem:[#allocation4_spill] sm:$0xff] }
 0x413   :  { %v7977_v20 = vadd.f32 %v7827_v58, %v8792_v34  ;;  %v2508_v58 = vmul.f32 %v7973_v53, %v7973_v53  ;;  %v7997_v34 = vadd.f32 %v7704_v4, %v8794_v9  ;;  %v8801_v9 = vld [vmem:[#allocation12_spill] sm:$0xff] }
 0x414   :  { %2449 = vadd.xlane.f32.xlu1 %v2448_v11  ;;  %2437 = vadd.xlane.f32.xlu0 %v2436_v47  ;;  %v8788_v11 = vld [vmem:[#allocation13_spill] sm:$0xff] }
 0x415   :  { %v7965_v47 = vadd.f32 %v7739_v51, %v8788_v11  ;;  %8793 = vst [vmem:[#allocation34_spill] sm:$0xff] %v7977_v20  ;;  %v2555_v51 = vsel %vm2402_vm1, %v2504_v17, 0.0  ;;  %v2514_v35 = vmul.f32 %v7977_v20, %v7977_v20  ;;  %v2463_v17 = vsel %vm2402_vm1, %v7977_v20, 0.0  ;;  %8795 = vst [vmem:[#allocation13_spill] sm:$0xff] %v7997_v34 }
 0x416   :  { %v2451_v11 = vsel %vm2402_vm1, %v7973_v53, 0.0  ;;  %v8800_v53 = vld [vmem:[#allocation16_spill] sm:$0xff] }
 0x417   :  { %8789 = vst [vmem:[#allocation7_spill] sm:$0xff] %v7965_v47  ;;  %v2456_v43 = vadd.f32 %v2455_v24, %v7965_v47  ;;  %v7985_v24 = vpop.f32.mrf.mxu1  ;;  %v8011_v18 = vadd.f32 %v7862_v19, %v8800_v53  ;;  %v2575_v4 = vsel %vm2402_vm1, %v2514_v35, 0.0 }
 0x418   :  { %2561 = vadd.xlane.f32.xlu1 %v2560_v1  ;;  %2549 = vadd.xlane.f32.xlu0 %v2548_v37  ;;  %v2503_v1 = vmul.f32 %v7961_v3, %v7961_v3  ;;  %v2509_v37 = vmul.f32 %v7965_v47, %v7965_v47  ;;  %v8820_v47 = vld [vmem:[#allocation28_spill] sm:$0xff] }
 0x419   :  { %v3525_v53 = vmul.f32 %v8011_v18, %v8011_v18 }
 0x41a   :  { %v2568_v7 = vadd.f32 %v2567_v44, %v2509_v37  ;;  %v2556_v42 = vadd.f32 %v2555_v51, %v2503_v1  ;;  %v3403_v44 = vpop.f32.mrf.mxu1  ;;  %v2452_v1 = vadd.f32 %v2451_v11, %v7997_v34  ;;  %v8798_v37 = vld [vmem:[#allocation5_spill] sm:$0xff] }
 0x41b   :  { %v8007_v20 = vadd.f32 %v7795_v22, %v8798_v37 }
 0x41c   :  { %2457 = vadd.xlane.f32.xlu1 %v2456_v43  ;;  %2445 = vadd.xlane.f32.xlu0 %v2444_v46  ;;  %v8796_v43 = vld [vmem:[#allocation11_spill] sm:$0xff] }
 0x41d   :  { %v8001_v46 = vadd.f32 %v7807_v59, %v8796_v43  ;;  %8799 = vst [vmem:[#allocation4_spill] sm:$0xff] %v8007_v20  ;;  %v2563_v59 = vsel %vm2402_vm1, %v2508_v58, 0.0  ;;  %v2512_v19 = vmul.f32 %v8007_v20, %v8007_v20  ;;  %v3458_v58 = vsel %vm2402_vm1, %v8011_v18, 0.0 }
 0x41e   :  { %v2459_v35 = vsel %vm2402_vm1, %v8007_v20, 0.0  ;;  %v8031_v43 = vadd.f32 %v7771_v30, %v8801_v9  ;;  %v8806_v20 = vld [vmem:[#allocation20_spill] sm:$0xff]  ;;  %v3570_v30 = vsel %vm2402_vm1, %v3525_v53, 0.0  ;;  %v8807_v53 = vld [vmem:[#allocation17_spill] sm:$0xff] }
 0x41f   :  { %8797 = vst [vmem:[#allocation9_spill] sm:$0xff] %v8001_v46  ;;  %v2464_v51 = vadd.f32 %v2463_v17, %v8001_v46  ;;  %v8019_v17 = vpop.f32.mrf.mxu1 }
 0x420   :  { %2569 = vadd.xlane.f32.xlu1 %v2568_v7  ;;  %2557 = vadd.xlane.f32.xlu0 %v2556_v42  ;;  %v2507_v7 = vmul.f32 %v7997_v34, %v7997_v34  ;;  %v2513_v42 = vmul.f32 %v8001_v46, %v8001_v46  ;;  %8802 = vst [vmem:[#allocation14_spill] sm:$0xff] %v8031_v43 }
 0x421   :  { %v3409_v37 = vpop.f32.mrf.mxu1  ;;  %v8045_v46 = vadd.f32 %v7931_v48, %v8806_v20 }
 0x422   :  { %v2576_v22 = vadd.f32 %v2575_v4, %v2513_v42  ;;  %v2564_v11 = vadd.f32 %v2563_v59, %v2507_v7  ;;  %v2460_v59 = vadd.f32 %v2459_v35, %v8031_v43  ;;  %v8804_v7 = vld [vmem:[#allocation18_spill] sm:$0xff] }
 0x423   :  { %v8041_v42 = vadd.f32 %v7896_v8, %v8804_v7  ;;  %v3529_v48 = vmul.f32 %v8045_v46, %v8045_v46  ;;  %v3466_v20 = vsel %vm2402_vm1, %v8045_v46, 0.0 }
 0x424   :  { %2465 = vadd.xlane.f32.xlu1 %v2464_v51  ;;  %2453 = vadd.xlane.f32.xlu0 %v2452_v1  ;;  %v8803_v51 = vld [vmem:[#allocation15_spill] sm:$0xff] }
 0x425   :  { %v8035_v1 = vadd.f32 %v7839_v12, %v8803_v51  ;;  %8805 = vst [vmem:[#allocation11_spill] sm:$0xff] %v8041_v42  ;;  %v2571_v12 = vsel %vm2402_vm1, %v2512_v19, 0.0  ;;  %v3527_v9 = vmul.f32 %v8041_v42, %v8041_v42  ;;  %v3462_v19 = vsel %vm2402_vm1, %v8041_v42, 0.0 }
 0x426   :  { %v8063_v51 = vadd.f32 %v7877_v6, %v8807_v53  ;;  %v3578_v6 = vsel %vm2402_vm1, %v3529_v48, 0.0  ;;  %v8814_v48 = vld [vmem:[#allocation21_spill] sm:$0xff] }
 0x427   :  { %v3459_v4 = vadd.f32 %v3458_v58, %v8035_v1  ;;  %v3413_v58 = vpop.f32.mrf.mxu1  ;;  %v3574_v53 = vsel %vm2402_vm1, %v3527_v9, 0.0 }
 0x428   :  { %2577 = vadd.xlane.f32.xlu1 %v2576_v22  ;;  %2565 = vadd.xlane.f32.xlu0 %v2564_v11  ;;  %v2511_v22 = vmul.f32 %v8031_v43, %v8031_v43  ;;  %v3524_v11 = vmul.f32 %v8035_v1, %v8035_v1  ;;  %8808 = vst [vmem:[#allocation5_spill] sm:$0xff] %v8063_v51  ;;  %v8812_v43 = vld [vmem:[#allocation24_spill] sm:$0xff] }
 0x429   :  { %v3415_v7 = vpop.f32.mrf.mxu1  ;;  %v8076_v34 = vadd.f32 %v3403_v44, %v8812_v43 }
 0x42a   :  { %v3571_v35 = vadd.f32 %v3570_v30, %v3524_v11  ;;  %v2572_v8 = vadd.f32 %v2571_v12, %v2511_v22  ;;  %v3463_v12 = vadd.f32 %v3462_v19, %v8063_v51  ;;  %v8810_v22 = vld [vmem:[#allocation22_spill] sm:$0xff] }
 0x42b   :  { %v8073_v11 = vadd.f32 %v7967_v62, %v8810_v22  ;;  %8813 = vst [vmem:[#allocation12_spill] sm:$0xff] %v8076_v34  ;;  %v3533_v44 = vmul.f32 %v8076_v34, %v8076_v34  ;;  %v3474_v43 = vsel %vm2402_vm1, %v8076_v34, 0.0 }
 0x42c   :  { %3460 = vadd.xlane.f32.xlu1 %v3459_v4  ;;  %2461 = vadd.xlane.f32.xlu0 %v2460_v59  ;;  %v8809_v4 = vld [vmem:[#allocation19_spill] sm:$0xff] }
 0x42d   :  { %v8067_v59 = vadd.f32 %v7911_v52, %v8809_v4  ;;  %8811 = vst [vmem:[#allocation16_spill] sm:$0xff] %v8073_v11  ;;  %v3526_v52 = vmul.f32 %v8063_v51, %v8063_v51  ;;  %v3531_v62 = vmul.f32 %v8073_v11, %v8073_v11  ;;  %v3470_v9 = vsel %vm2402_vm1, %v8073_v11, 0.0 }
 0x42e   :  { %v8094_v4 = vadd.f32 %v7949_v55, %v8814_v48  ;;  %v8106_v11 = vadd.f32 %v3415_v7, %v8820_v47  ;;  %v3586_v55 = vsel %vm2402_vm1, %v3533_v44, 0.0  ;;  %v8822_v44 = vld [vmem:[#allocation25_spill] sm:$0xff] }
 0x42f   :  { %v3467_v30 = vadd.f32 %v3466_v20, %v8067_v59  ;;  %v3575_v19 = vadd.f32 %v3574_v53, %v3526_v52  ;;  %v8818_v52 = vld [vmem:[#allocation26_spill] sm:$0xff]  ;;  %v3582_v48 = vsel %vm2402_vm1, %v3531_v62, 0.0 }
 0x430   :  { %3572 = vadd.xlane.f32.xlu1 %v3571_v35  ;;  %2573 = vadd.xlane.f32.xlu0 %v2572_v8  ;;  %v3528_v35 = vmul.f32 %v8067_v59, %v8067_v59  ;;  %v3419_v8 = vpop.f32.mrf.mxu1  ;;  %8815 = vst [vmem:[#allocation15_spill] sm:$0xff] %v8094_v4  ;;  %v3471_v53 = vadd.f32 %v3470_v9, %v8094_v4  ;;  %8821 = vst [vmem:[#allocation17_spill] sm:$0xff] %v8106_v11  ;;  %v3482_v7 = vsel %vm2402_vm1, %v8106_v11, 0.0 }
 0x431   :  { %v3537_v47 = vmul.f32 %v8106_v11, %v8106_v11  ;;  %v8828_v11 = vld [vmem:[#allocation33_spill] sm:$0xff] }
 0x432   :  { %v3579_v20 = vadd.f32 %v3578_v6, %v3528_v35  ;;  %v3421_v22 = vpop.f32.mrf.mxu1  ;;  %v8103_v35 = vadd.f32 %v3409_v37, %v8818_v52 }
 0x434   :  { %3468 = vadd.xlane.f32.xlu1 %v3467_v30  ;;  %3464 = vadd.xlane.f32.xlu0 %v3463_v12  ;;  %v8816_v30 = vld [vmem:[#allocation23_spill] sm:$0xff]  ;;  %8819 = vst [vmem:[#allocation20_spill] sm:$0xff] %v8103_v35  ;;  %v3535_v37 = vmul.f32 %v8103_v35, %v8103_v35  ;;  %v3478_v62 = vsel %vm2402_vm1, %v8103_v35, 0.0  ;;  %v3594_v35 = vsel %vm2402_vm1, %v3537_v47, 0.0 }
 0x435   :  { %v8098_v12 = vadd.f32 %v7985_v24, %v8816_v30  ;;  %v3530_v24 = vmul.f32 %v8094_v4, %v8094_v4  ;;  %v8124_v30 = vadd.f32 %v8019_v17, %v8822_v44 }
 0x436   :  { %v3590_v17 = vsel %vm2402_vm1, %v3535_v37, 0.0 }
 0x437   :  { %8817 = vst [vmem:[#allocation18_spill] sm:$0xff] %v8098_v12  ;;  %v3475_v6 = vadd.f32 %v3474_v43, %v8098_v12  ;;  %v3583_v9 = vadd.f32 %v3582_v48, %v3530_v24  ;;  %8823 = vst [vmem:[#allocation19_spill] sm:$0xff] %v8124_v30  ;;  %v3479_v48 = vadd.f32 %v3478_v62, %v8124_v30  ;;  %v8826_v24 = vld [vmem:[#allocation31_spill] sm:$0xff]  ;;  %v8830_v62 = vld [vmem:[#allocation30_spill] sm:$0xff] }
 0x438   :  { %3580 = vadd.xlane.f32.xlu1 %v3579_v20  ;;  %3576 = vadd.xlane.f32.xlu0 %v3575_v19  ;;  %v3532_v20 = vmul.f32 %v8098_v12, %v8098_v12  ;;  %v3425_v19 = vpop.f32.mrf.mxu1  ;;  %v8152_v44 = vadd.f32 %v3419_v8, %v8830_v62 }
 0x43a   :  { %v3587_v43 = vadd.f32 %v3586_v55, %v3532_v20  ;;  %v3427_v52 = vpop.f32.mrf.mxu1  ;;  %v8132_v20 = vadd.f32 %v3421_v22, %v8826_v24  ;;  %8831 = vst [vmem:[#allocation23_spill] sm:$0xff] %v8152_v44 }
 0x43b   :  { %v8135_v4 = vadd.f32 %v3427_v52, %v8828_v11 }
 0x43c   :  { %3476 = vadd.xlane.f32.xlu1 %v3475_v6  ;;  %3472 = vadd.xlane.f32.xlu0 %v3471_v53  ;;  %v8824_v6 = vld [vmem:[#allocation27_spill] sm:$0xff]  ;;  %8827 = vst [vmem:[#allocation24_spill] sm:$0xff] %v8132_v20  ;;  %v3539_v22 = vmul.f32 %v8132_v20, %v8132_v20  ;;  %v3486_v37 = vsel %vm2402_vm1, %v8132_v20, 0.0 }
 0x43d   :  { %v8127_v53 = vadd.f32 %v3413_v58, %v8824_v6  ;;  %8829 = vst [vmem:[#allocation21_spill] sm:$0xff] %v8135_v4  ;;  %v3534_v58 = vmul.f32 %v8124_v30, %v8124_v30  ;;  %v3541_v11 = vmul.f32 %v8135_v4, %v8135_v4  ;;  %v3490_v47 = vsel %vm2402_vm1, %v8135_v4, 0.0  ;;  %v8832_v6 = vld [vmem:[#allocation32_spill] sm:$0xff] }
 0x43e   :  { %v8155_v52 = vadd.f32 %v3425_v19, %v8832_v6  ;;  %v3598_v24 = vsel %vm2402_vm1, %v3539_v22, 0.0 }
 0x43f   :  { %8825 = vst [vmem:[#allocation22_spill] sm:$0xff] %v8127_v53  ;;  %v3483_v55 = vadd.f32 %v3482_v7, %v8127_v53  ;;  %v3591_v7 = vadd.f32 %v3590_v17, %v3534_v58  ;;  %v3538_v17 = vmul.f32 %v8152_v44, %v8152_v44 }
 0x440   :  { %3588 = vadd.xlane.f32.xlu1 %v3587_v43  ;;  %3584 = vadd.xlane.f32.xlu0 %v3583_v9  ;;  %v3536_v43 = vmul.f32 %v8127_v53, %v8127_v53  ;;  %8833 = vst [vmem:[#allocation26_spill] sm:$0xff] %v8155_v52  ;;  %v3540_v8 = vmul.f32 %v8155_v52, %v8155_v52 }
 0x441   :  { %v3599_v58 = vadd.f32 %v3598_v24, %v3538_v17 }
 0x442   :  { %v3595_v9 = vadd.f32 %v3594_v35, %v3536_v43  ;;  %v3491_v35 = vadd.f32 %v3490_v47, %v8155_v52  ;;  %v2406_v43 = vpop.xlane.xlu1 %2405 }
 0x444   :  { %3484 = vadd.xlane.f32.xlu1 %v3483_v55  ;;  %3480 = vadd.xlane.f32.xlu0 %v3479_v48  ;;  %v3487_v55 = vadd.f32 %v3486_v37, %v8152_v44  ;;  %v3602_v48 = vsel %vm2402_vm1, %v3541_v11, 0.0 }
 0x445   :  { %v3603_v19 = vadd.f32 %v3602_v48, %v3540_v8 }
 0x448   :  { %3596 = vadd.xlane.f32.xlu1 %v3595_v9  ;;  %3592 = vadd.xlane.f32.xlu0 %v3591_v7 }
 0x44c   :  { %3492 = vadd.xlane.f32.xlu1 %v3491_v35  ;;  %3488 = vadd.xlane.f32.xlu0 %v3487_v55 }
 0x450   :  { %3604 = vadd.xlane.f32.xlu1 %v3603_v19  ;;  %3600 = vadd.xlane.f32.xlu0 %v3599_v58 }
 0x45d   :  { %v3433_v9 = vpop.xlane.xlu0 %3432 }
 0x45e   :  { %v3494_v7 = vadd.f32 %v3433_v9, %v2406_v43 }
 0x460   :  { %v3622_v11 = vmul.f32 0.0025510204, %v3494_v7 }
 0x461   :  { %v2518_v47 = vpop.xlane.xlu0 %2517  ;;  %v3437_v37 = vpop.xlane.xlu1 %3436 }
 0x462   :  { %v3654_v20 = vmul.f32 %v3622_v11, %v3622_v11 }
 0x465   :  { %v3545_v62 = vpop.xlane.xlu0 %3544  ;;  %v2522_v22 = vpop.xlane.xlu1 %2521 }
 0x466   :  { %v3606_v6 = vadd.f32 %v3545_v62, %v2518_v47 }
 0x468   :  { %v3638_v44 = vmul.f32 0.0025510204, %v3606_v6 }
 0x469   :  { %v2410_v4 = vpop.xlane.xlu0 %2409  ;;  %v3549_v30 = vpop.xlane.xlu1 %3548 }
 0x46a   :  { %v3670_v52 = vsub.f32 %v3638_v44, %v3654_v20  ;;  %v3495_v35 = vadd.f32 %v3437_v37, %v2410_v4  ;;  %v3607_v55 = vadd.f32 %v3549_v30, %v2522_v22  ;;  %v3686_v44 = vld [vmem:[%s8653_s5] sm:$0xff] }
 0x46c   :  { %v3702_v48 = vadd.f32 0.001, %v3670_v52  ;;  %v3623_v24 = vmul.f32 0.0025510204, %v3495_v35  ;;  %v3639_v58 = vmul.f32 0.0025510204, %v3607_v55 }
 0x46d   :  { %v2414_v17 = vpop.xlane.xlu0 %2413  ;;  %v2418_v8 = vpop.xlane.xlu1 %2417 }
 0x46e   :  { %4963 = vrsqrt.f32 %v3702_v48  ;;  %v3655_v19 = vmul.f32 %v3623_v24, %v3623_v24 }
 0x470   :  { %v3671_v43 = vsub.f32 %v3639_v58, %v3655_v19 }
 0x471   :  { %v3441_v9 = vpop.xlane.xlu0 %3440  ;;  %v3445_v7 = vpop.xlane.xlu1 %3444 }
 0x472   :  { %v3703_v53 = vadd.f32 0.001, %v3671_v43  ;;  %v3496_v2 = vadd.f32 %v3441_v9, %v2414_v17  ;;  %v3497_v47 = vadd.f32 %v3445_v7, %v2418_v8  ;;  %v3687_v43 = vld [vmem:[%s8653_s5 + $0x8] sm:$0xff] }
 0x474   :  { %4965 = vrsqrt.f32 %v3703_v53  ;;  %v8165_v3 = vmul.f32 0.0025510204, %v3496_v2  ;;  %v8167_v4 = vmul.f32 0.0025510204, %v3497_v47 }
 0x475   :  { %v2526_v62 = vpop.xlane.xlu0 %2525  ;;  %v2530_v6 = vpop.xlane.xlu1 %2529 }
 0x476   :  { %v3656_v35 = vmul.f32 %v8165_v3, %v8165_v3  ;;  %v3657_v53 = vmul.f32 %v8167_v4, %v8167_v4 }
 0x479   :  { %v3553_v30 = vpop.xlane.xlu0 %3552  ;;  %v3557_v20 = vpop.xlane.xlu1 %3556 }
 0x47a   :  { %v3608_v52 = vadd.f32 %v3553_v30, %v2526_v62  ;;  %v3609_v37 = vadd.f32 %v3557_v20, %v2530_v6 }
 0x47b   :  { %v4964_v22 = vpop.eup %4963 }
 0x47c   :  { %v3640_v55 = vmul.f32 0.0025510204, %v3608_v52  ;;  %v3641_v2 = vmul.f32 0.0025510204, %v3609_v37  ;;  %v3734_v48 = vmul.f32 %v4964_v22, %v3686_v44  ;;  %v3750_v44 = vld [vmem:[%s8654_s6] sm:$0xff]  ;;  %v3751_v52 = vld [vmem:[%s8654_s6 + $0x8] sm:$0xff] }
 0x47d   :  { %v2422_v17 = vpop.xlane.xlu0 %2421  ;;  %v2426_v8 = vpop.xlane.xlu1 %2425 }
 0x47e   :  { %v3672_v19 = vsub.f32 %v3640_v55, %v3656_v35  ;;  %v3673_v58 = vsub.f32 %v3641_v2, %v3657_v53  ;;  %3800 = vperm.xlu0 %4705, %v3734_v48   ;;  %v3766_v20 = vmul.f32 %v3734_v48, %v3622_v11 }
 0x480   :  { %v3704_v9 = vadd.f32 0.001, %v3672_v19  ;;  %v3705_v7 = vadd.f32 0.001, %v3673_v58  ;;  %v3782_v2 = vsub.f32 %v3750_v44, %v3766_v20 }
 0x481   :  { %v4966_v47 = vpop.eup %4965  ;;  %v3449_v62 = vpop.xlane.xlu0 %3448 }
 0x482   :  { %v3453_v6 = vpop.xlane.xlu1 %3452  ;;  %4967 = vrsqrt.f32 %v3704_v9  ;;  %v3735_v30 = vmul.f32 %v4966_v47, %v3687_v43  ;;  %v3498_v37 = vadd.f32 %v3449_v62, %v2422_v17 }
 0x483   :  { %4969 = vrsqrt.f32 %v3705_v7  ;;  %v3499_v22 = vadd.f32 %v3453_v6, %v2426_v8 }
 0x484   :  { %3805 = vperm.xlu1 %4706, %v3735_v30   ;;  %v3767_v35 = vmul.f32 %v3735_v30, %v3623_v24  ;;  %v8185_v58 = vmul.f32 0.0025510204, %v3498_v37  ;;  %v3688_v30 = vld [vmem:[%s8653_s5 + $0x10] sm:$0xff] }
 0x485   :  { %v2534_v53 = vpop.xlane.xlu0 %2533  ;;  %v3627_v11 = vmul.f32 0.0025510204, %v3499_v22 }
 0x486   :  { %v2538_v55 = vpop.xlane.xlu1 %2537  ;;  %v3783_v19 = vsub.f32 %v3751_v52, %v3767_v35  ;;  %v3658_v47 = vmul.f32 %v8185_v58, %v8185_v58  ;;  %v3689_v52 = vld [vmem:[%s8653_s5 + $0x18] sm:$0xff] }
 0x487   :  { %v3659_v17 = vmul.f32 %v3627_v11, %v3627_v11 }
 0x488   :  { %3912 = vperm.xlu1 %4706, %v3782_v2   ;;  %3917 = vperm.xlu0 %4705, %v3783_v19  }
 0x489   :  { %v3561_v48 = vpop.xlane.xlu0 %3560 }
 0x48a   :  { %v3565_v43 = vpop.xlane.xlu1 %3564  ;;  %v3610_v9 = vadd.f32 %v3561_v48, %v2534_v53 }
 0x48b   :  { %v3611_v7 = vadd.f32 %v3565_v43, %v2538_v55  ;;  %v3753_v43 = vld [vmem:[%s8654_s6 + $0x18] sm:$0xff] }
 0x48c   :  { %v3642_v8 = vmul.f32 0.0025510204, %v3610_v9 }
 0x48d   :  { %v3643_v62 = vmul.f32 0.0025510204, %v3611_v7  ;;  %v2430_v24 = vpop.xlane.xlu0 %2429 }
 0x48e   :  { %v8189_v6 = vpop.xlane.xlu1 %2433  ;;  %v3674_v20 = vsub.f32 %v3642_v8, %v3658_v47 }
 0x48f   :  { %v3675_v44 = vsub.f32 %v3643_v62, %v3659_v17  ;;  %v4968_v37 = vpop.eup %4967 }
 0x490   :  { %v4970_v22 = vpop.eup %4969  ;;  %v3706_v35 = vadd.f32 0.001, %v3674_v20  ;;  %v3736_v55 = vmul.f32 %v4968_v37, %v3688_v30  ;;  %v3752_v30 = vld [vmem:[%s8654_s6 + $0x10] sm:$0xff] }
 0x491   :  { %v3707_v53 = vadd.f32 0.001, %v3675_v44  ;;  %v3457_v2 = vpop.xlane.xlu0 %3456  ;;  %v3737_v48 = vmul.f32 %v4970_v22, %v3689_v52 }
 0x492   :  { %v8197_v19 = vpop.xlane.xlu1 %2545  ;;  %4971 = vrsqrt.f32 %v3706_v35  ;;  %3810 = vperm.xlu1 %4706, %v3736_v55   ;;  %v3500_v7 = vadd.f32 %v3457_v2, %v2430_v24  ;;  %v3768_v47 = vmul.f32 %v3736_v55, %v8165_v3  ;;  %v3691_v2 = vld [vmem:[%s8653_s5 + $0x28] sm:$0xff] }
 0x493   :  { %4973 = vrsqrt.f32 %v3707_v53  ;;  %v3769_v9 = vmul.f32 %v3737_v48, %v8167_v4  ;;  %v3690_v53 = vld [vmem:[%s8653_s5 + $0x20] sm:$0xff] }
 0x494   :  { %v3628_v20 = vmul.f32 0.0025510204, %v3500_v7  ;;  %v3784_v44 = vsub.f32 %v3752_v30, %v3768_v47  ;;  %v3755_v30 = vld [vmem:[%s8654_s6 + $0x28] sm:$0xff] }
 0x495   :  { %v2542_v17 = vpop.xlane.xlu0 %2541  ;;  %v3785_v62 = vsub.f32 %v3753_v43, %v3769_v9 }
 0x496   :  { %v8204_v8 = vpop.xlane.xlu1 %2441  ;;  %3815 = vperm.xlu1 %4706, %v3737_v48   ;;  %v3660_v4 = vmul.f32 %v3628_v20, %v3628_v20 }
 0x497   :  { %3927 = vperm.xlu0 %4705, %v3785_v62  }
 0x499   :  { %v3569_v52 = vpop.xlane.xlu0 %3568 }
 0x49a   :  { %v8209_v37 = vpop.xlane.xlu1 %2553  ;;  %v3612_v22 = vadd.f32 %v3569_v52, %v2542_v17  ;;  %3922 = vperm.xlu1 %4706, %v3784_v44  }
 0x49c   :  { %v3644_v24 = vmul.f32 0.0025510204, %v3612_v22 }
 0x49d   :  { %v2438_v3 = vpop.xlane.xlu0 %2437 }
 0x49e   :  { %v8211_v35 = vpop.xlane.xlu1 %2449  ;;  %v3676_v55 = vsub.f32 %v3644_v24, %v3660_v4 }
 0x49f   :  { %v4972_v48 = vpop.eup %4971 }
 0x4a0   :  { %v4974_v43 = vpop.eup %4973  ;;  %v3708_v9 = vadd.f32 0.001, %v3676_v55  ;;  %v3738_v7 = vmul.f32 %v4972_v48, %v3690_v53  ;;  %v3754_v53 = vld [vmem:[%s8654_s6 + $0x20] sm:$0xff] }
 0x4a1   :  { %v2550_v47 = vpop.xlane.xlu0 %2549  ;;  %v3739_v62 = vmul.f32 %v4974_v43, %v3691_v2 }
 0x4a2   :  { %v8219_v17 = vpop.xlane.xlu1 %2561  ;;  %4975 = vrsqrt.f32 %v3708_v9  ;;  %3820 = vperm.xlu1 %4706, %v3738_v7   ;;  %v3770_v52 = vmul.f32 %v3738_v7, %v8185_v58  ;;  %v3692_v58 = vld [vmem:[%s8653_s5 + $0x30] sm:$0xff] }
 0x4a3   :  { %v3771_v44 = vmul.f32 %v3739_v62, %v3627_v11 }
 0x4a4   :  { %v3786_v55 = vsub.f32 %v3754_v53, %v3770_v52 }
 0x4a5   :  { %v2446_v22 = vpop.xlane.xlu0 %2445  ;;  %v3787_v24 = vsub.f32 %v3755_v30, %v3771_v44 }
 0x4a6   :  { %v8225_v4 = vpop.xlane.xlu1 %2457  ;;  %3825 = vperm.xlu1 %4706, %v3739_v62   ;;  %v3756_v62 = vld [vmem:[%s8654_s6 + $0x30] sm:$0xff] }
 0x4a7   :  { %3937 = vperm.xlu0 %4705, %v3787_v24  }
 0x4a9   :  { %v2558_v2 = vpop.xlane.xlu0 %2557 }
 0x4aa   :  { %v8230_v48 = vpop.xlane.xlu1 %2569  ;;  %3932 = vperm.xlu1 %4706, %v3786_v55  }
 0x4ad   :  { %v2454_v43 = vpop.xlane.xlu0 %2453 }
 0x4ae   :  { %v8232_v9 = vpop.xlane.xlu1 %2465 }
 0x4af   :  { %v4976_v11 = vpop.eup %4975 }
 0x4b0   :  { %v3740_v7 = vmul.f32 %v4976_v11, %v3692_v58 }
 0x4b1   :  { %v8237_v30 = vpop.xlane.xlu0 %2565 }
 0x4b2   :  { %v8239_v44 = vpop.xlane.xlu1 %2577  ;;  %3830 = vperm.xlu1 %4706, %v3740_v7   ;;  %v3772_v52 = vmul.f32 %v3740_v7, %v3628_v20 }
 0x4b4   :  { %v3788_v24 = vsub.f32 %v3756_v62, %v3772_v52 }
 0x4b5   :  { %v8244_v53 = vpop.xlane.xlu0 %2461 }
 0x4b6   :  { %v3461_v55 = vpop.xlane.xlu1 %3460  ;;  %3942 = vperm.xlu1 %4706, %v3788_v24  }
 0x4b7   :  { %v3501_v34 = vadd.f32 %v3461_v55, %v8189_v6 }
 0x4b9   :  { %v8247_v12 = vmul.f32 0.0025510204, %v3501_v34  ;;  %v8249_v58 = vpop.xlane.xlu0 %2573 }
 0x4ba   :  { %v3573_v11 = vpop.xlane.xlu1 %3572 }
 0x4bb   :  { %v3613_v36 = vadd.f32 %v3573_v11, %v8197_v19  ;;  %v3661_v27 = vmul.f32 %v8247_v12, %v8247_v12 }
 0x4bd   :  { %v3645_v42 = vmul.f32 0.0025510204, %v3613_v36  ;;  %v3465_v51 = vpop.xlane.xlu0 %3464 }
 0x4be   :  { %v3469_v20 = vpop.xlane.xlu1 %3468  ;;  %v3502_v62 = vadd.f32 %v3465_v51, %v2438_v3 }
 0x4bf   :  { %v3677_v7 = vsub.f32 %v3645_v42, %v3661_v27  ;;  %v3503_v52 = vadd.f32 %v3469_v20, %v8204_v8 }
 0x4c0   :  { %v8255_v6 = vmul.f32 0.0025510204, %v3502_v62 }
 0x4c1   :  { %v3709_v56 = vadd.f32 0.001, %v3677_v7  ;;  %v8257_v34 = vmul.f32 0.0025510204, %v3503_v52  ;;  %v3577_v24 = vpop.xlane.xlu0 %3576 }
 0x4c2   :  { %v3581_v55 = vpop.xlane.xlu1 %3580  ;;  %v3614_v31 = vadd.f32 %v3577_v24, %v2550_v47  ;;  %v3662_v36 = vmul.f32 %v8255_v6, %v8255_v6 }
 0x4c3   :  { %4977 = vrsqrt.f32 %v3709_v56  ;;  %v3615_v19 = vadd.f32 %v3581_v55, %v8209_v37  ;;  %v3663_v27 = vmul.f32 %v8257_v34, %v8257_v34 }
 0x4c4   :  { %v3646_v11 = vmul.f32 0.0025510204, %v3614_v31 }
 0x4c5   :  { %v3647_v42 = vmul.f32 0.0025510204, %v3615_v19  ;;  %v3473_v51 = vpop.xlane.xlu0 %3472 }
 0x4c6   :  { %v3477_v8 = vpop.xlane.xlu1 %3476  ;;  %v3678_v3 = vsub.f32 %v3646_v11, %v3662_v36  ;;  %v3504_v20 = vadd.f32 %v3473_v51, %v2446_v22  ;;  %v3693_v51 = vld [vmem:[%s8653_s5 + $0x38] sm:$0xff] }
 0x4c7   :  { %v3505_v7 = vadd.f32 %v3477_v8, %v8211_v35  ;;  %v3679_v62 = vsub.f32 %v3647_v42, %v3663_v27 }
 0x4c8   :  { %v3710_v52 = vadd.f32 0.001, %v3678_v3  ;;  %v8265_v56 = vmul.f32 0.0025510204, %v3504_v20 }
 0x4c9   :  { %v3711_v47 = vadd.f32 0.001, %v3679_v62  ;;  %v8267_v37 = vmul.f32 0.0025510204, %v3505_v7  ;;  %v3585_v24 = vpop.xlane.xlu0 %3584 }
 0x4ca   :  { %v3589_v55 = vpop.xlane.xlu1 %3588  ;;  %4979 = vrsqrt.f32 %v3710_v52  ;;  %v3616_v31 = vadd.f32 %v3585_v24, %v2558_v2  ;;  %v3664_v36 = vmul.f32 %v8265_v56, %v8265_v56 }
 0x4cb   :  { %4981 = vrsqrt.f32 %v3711_v47  ;;  %v3617_v19 = vadd.f32 %v3589_v55, %v8219_v17  ;;  %v3665_v35 = vmul.f32 %v8267_v37, %v8267_v37 }
 0x4cc   :  { %v3648_v22 = vmul.f32 0.0025510204, %v3616_v31 }
 0x4cd   :  { %v3649_v11 = vmul.f32 0.0025510204, %v3617_v19  ;;  %v3481_v27 = vpop.xlane.xlu0 %3480 }
 0x4ce   :  { %v3485_v42 = vpop.xlane.xlu1 %3484  ;;  %v3680_v8 = vsub.f32 %v3648_v22, %v3664_v36  ;;  %v3506_v3 = vadd.f32 %v3481_v27, %v2454_v43  ;;  %v3757_v43 = vld [vmem:[%s8654_s6 + $0x38] sm:$0xff] }
 0x4cf   :  { %v3507_v2 = vadd.f32 %v3485_v42, %v8225_v4  ;;  %v3681_v17 = vsub.f32 %v3649_v11, %v3665_v35 }
 0x4d0   :  { %v4978_v20 = vpop.eup %4977  ;;  %v3712_v7 = vadd.f32 0.001, %v3680_v8  ;;  %v8278_v62 = vmul.f32 0.0025510204, %v3506_v3  ;;  %v3694_v8 = vld [vmem:[%s8653_s5 + $0x40] sm:$0xff] }
 0x4d1   :  { %v3741_v52 = vmul.f32 %v4978_v20, %v3693_v51  ;;  %v3713_v47 = vadd.f32 0.001, %v3681_v17  ;;  %v8280_v24 = vmul.f32 0.0025510204, %v3507_v2  ;;  %v3593_v55 = vpop.xlane.xlu0 %3592  ;;  %v3695_v2 = vld [vmem:[%s8653_s5 + $0x48] sm:$0xff] }
 0x4d2   :  { %v3597_v31 = vpop.xlane.xlu1 %3596  ;;  %4983 = vrsqrt.f32 %v3712_v7  ;;  %v3618_v19 = vadd.f32 %v3593_v55, %v8237_v30  ;;  %v3666_v22 = vmul.f32 %v8278_v62, %v8278_v62 }
 0x4d3   :  { %3835 = vperm.xlu1 %4706, %v3741_v52   ;;  %4985 = vrsqrt.f32 %v3713_v47  ;;  %v3619_v4 = vadd.f32 %v3597_v31, %v8230_v48  ;;  %v3773_v36 = vmul.f32 %v3741_v52, %v8247_v12  ;;  %v3667_v11 = vmul.f32 %v8280_v24, %v8280_v24 }
 0x4d4   :  { %v3650_v35 = vmul.f32 0.0025510204, %v3618_v19 }
 0x4d5   :  { %v3651_v27 = vmul.f32 0.0025510204, %v3619_v4  ;;  %v3489_v42 = vpop.xlane.xlu0 %3488  ;;  %v3789_v51 = vsub.f32 %v3757_v43, %v3773_v36  ;;  %v3758_v36 = vld [vmem:[%s8654_s6 + $0x40] sm:$0xff] }
 0x4d6   :  { %v3493_v30 = vpop.xlane.xlu1 %3492  ;;  %v3682_v3 = vsub.f32 %v3650_v35, %v3666_v22  ;;  %v3508_v48 = vadd.f32 %v3489_v42, %v8244_v53  ;;  %v3759_v22 = vld [vmem:[%s8654_s6 + $0x48] sm:$0xff] }
 0x4d7   :  { %v3509_v12 = vadd.f32 %v3493_v30, %v8232_v9  ;;  %v4980_v20 = vpop.eup %4979  ;;  %v3683_v17 = vsub.f32 %v3651_v27, %v3667_v11  ;;  %3947 = vperm.xlu0 %4705, %v3789_v51  }
 0x4d8   :  { %v4982_v7 = vpop.eup %4981  ;;  %v3714_v52 = vadd.f32 0.001, %v3682_v3  ;;  %v8300_v47 = vmul.f32 0.0025510204, %v3508_v48  ;;  %v3742_v55 = vmul.f32 %v4980_v20, %v3694_v8  ;;  %v3696_v48 = vld [vmem:[%s8653_s5 + $0x50] sm:$0xff] }
 0x4d9   :  { %v3715_v31 = vadd.f32 0.001, %v3683_v17  ;;  %v8302_v19 = vmul.f32 0.0025510204, %v3509_v12  ;;  %v3601_v43 = vpop.xlane.xlu0 %3600  ;;  %v3743_v53 = vmul.f32 %v4982_v7, %v3695_v2 }
 0x4da   :  { %v3605_v4 = vpop.xlane.xlu1 %3604  ;;  %4987 = vrsqrt.f32 %v3714_v52  ;;  %v3620_v9 = vadd.f32 %v3601_v43, %v8249_v58  ;;  %3840 = vperm.xlu1 %4706, %v3742_v55   ;;  %v3774_v11 = vmul.f32 %v3742_v55, %v8255_v6  ;;  %v3668_v58 = vmul.f32 %v8300_v47, %v8300_v47  ;;  %v3697_v6 = vld [vmem:[%s8653_s5 + $0x58] sm:$0xff]  ;;  %v3760_v55 = vld [vmem:[%s8654_s6 + $0x50] sm:$0xff] }
 0x4db   :  { %4989 = vrsqrt.f32 %v3715_v31  ;;  %v3621_v35 = vadd.f32 %v3605_v4, %v8239_v44  ;;  %3845 = vperm.xlu0 %4705, %v3743_v53   ;;  %v3775_v27 = vmul.f32 %v3743_v53, %v8257_v34  ;;  %v3669_v30 = vmul.f32 %v8302_v19, %v8302_v19  ;;  %v3761_v43 = vld [vmem:[%s8654_s6 + $0x58] sm:$0xff] }
 0x4dc   :  { %v3652_v42 = vmul.f32 0.0025510204, %v3620_v9  ;;  %v3790_v8 = vsub.f32 %v3758_v36, %v3774_v11  ;;  %v3698_v36 = vld [vmem:[%s8653_s5 + $0x60] sm:$0xff] }
 0x4dd   :  { %v3653_v51 = vmul.f32 0.0025510204, %v3621_v35  ;;  %v3791_v3 = vsub.f32 %v3759_v22, %v3775_v27  ;;  %v3699_v22 = vld [vmem:[%s8653_s5 + $0x68] sm:$0xff] }
 0x4de   :  { %v3684_v44 = vsub.f32 %v3652_v42, %v3668_v58  ;;  %3952 = vperm.xlu1 %4706, %v3790_v8   ;;  %v3763_v42 = vld [vmem:[%s8654_s6 + $0x68] sm:$0xff] }
 0x4df   :  { %v4984_v34 = vpop.eup %4983  ;;  %v3685_v12 = vsub.f32 %v3653_v51, %v3669_v30  ;;  %3957 = vperm.xlu0 %4705, %v3791_v3   ;;  %v3700_v3 = vld [vmem:[%s8653_s5 + $0x70] sm:$0xff] }
 0x4e0   :  { %v4986_v2 = vpop.eup %4985  ;;  %v3716_v20 = vadd.f32 0.001, %v3684_v44  ;;  %v3744_v17 = vmul.f32 %v4984_v34, %v3696_v48  ;;  %v3701_v48 = vld [vmem:[%s8653_s5 + $0x78] sm:$0xff] }
 0x4e1   :  { %v3717_v7 = vadd.f32 0.001, %v3685_v12  ;;  %v3745_v52 = vmul.f32 %v4986_v2, %v3697_v6  ;;  %v3765_v2 = vld [vmem:[%s8654_s6 + $0x78] sm:$0xff] }
 0x4e2   :  { %4991 = vrsqrt.f32 %v3716_v20  ;;  %v3776_v31 = vmul.f32 %v3744_v17, %v8265_v56  ;;  %3850 = vperm.xlu1 %4706, %v3744_v17  }
 0x4e3   :  { %4993 = vrsqrt.f32 %v3717_v7  ;;  %3855 = vperm.xlu0 %4705, %v3745_v52   ;;  %v3777_v4 = vmul.f32 %v3745_v52, %v8267_v37  ;;  %v3762_v37 = vld [vmem:[%s8654_s6 + $0x60] sm:$0xff] }
 0x4e4   :  { %v3792_v53 = vsub.f32 %v3760_v55, %v3776_v31 }
 0x4e5   :  { %v3793_v9 = vsub.f32 %v3761_v43, %v3777_v4  ;;  %v8834_v4 = vld [vmem:[#allocation37_spill] sm:$0xff] }
 0x4e6   :  { %3962 = vperm.xlu1 %4706, %v3792_v53  }
 0x4e7   :  { %v4988_v56 = vpop.eup %4987  ;;  %3967 = vperm.xlu0 %4705, %v3793_v9   ;;  %v8835_v9 = vld [vmem:[#allocation6_spill] sm:$0xff] }
 0x4e8   :  { %v4990_v35 = vpop.eup %4989  ;;  %v3746_v11 = vmul.f32 %v4988_v56, %v3698_v36 }
 0x4e9   :  { %v3747_v27 = vmul.f32 %v4990_v35, %v3699_v22  ;;  %v8836_v22 = vld [vmem:[#allocation8_spill] sm:$0xff]  ;;  %v8837_v35 = vld [vmem:[#allocation35_spill] sm:$0xff] }
 0x4ea   :  { %v3778_v58 = vmul.f32 %v3746_v11, %v8278_v62  ;;  %3860 = vperm.xlu1 %4706, %v3746_v11  }
 0x4eb   :  { %3865 = vperm.xlu0 %4705, %v3747_v27   ;;  %v3779_v30 = vmul.f32 %v3747_v27, %v8280_v24  ;;  %v3764_v24 = vld [vmem:[%s8654_s6 + $0x70] sm:$0xff] }
 0x4ec   :  { %v3794_v51 = vsub.f32 %v3762_v37, %v3778_v58 }
 0x4ed   :  { %v3795_v8 = vsub.f32 %v3763_v42, %v3779_v30 }
 0x4ee   :  { %3972 = vperm.xlu1 %4706, %v3794_v51  }
 0x4ef   :  { %v4992_v44 = vpop.eup %4991  ;;  %3977 = vperm.xlu0 %4705, %v3795_v8  }
 0x4f0   :  { %v4994_v62 = vpop.eup %4993  ;;  %v3748_v6 = vmul.f32 %v4992_v44, %v3700_v3 }
 0x4f1   :  { %v3749_v34 = vmul.f32 %v4994_v62, %v3701_v48 }
 0x4f2   :  { %v3780_v12 = vmul.f32 %v3748_v6, %v8300_v47  ;;  %3870 = vperm.xlu1 %4706, %v3748_v6  }
 0x4f3   :  { %3875 = vperm.xlu0 %4705, %v3749_v34   ;;  %v3781_v20 = vmul.f32 %v3749_v34, %v8302_v19 }
 0x4f4   :  { %v3796_v17 = vsub.f32 %v3764_v24, %v3780_v12 }
 0x4f5   :  { %v3797_v7 = vsub.f32 %v3765_v2, %v3781_v20  ;;  %v8838_v2 = vld [vmem:[#allocation39_spill] sm:$0xff] }
 0x4f6   :  { %3982 = vperm.xlu1 %4706, %v3796_v17  }
 0x4f7   :  { %3987 = vperm.xlu0 %4705, %v3797_v7  }
 0x4f9   :  { %v3801_v52 = vpop.permute.xlu0 %3800 }
 0x4fa   :  { %v3878_v36 = vmul.f32 %v3801_v52, %v8835_v9  ;;  %v3879_v56 = vmul.f32 %v3801_v52, %v8836_v22  ;;  %v4054_v19 = vmul.f32 %v3801_v52, %v7658_v25  ;;  %v4055_v11 = vmul.f32 %v3801_v52, %v8837_v35 }
 0x4ff   :  { %v3806_v55 = vpop.permute.xlu1 %3805 }
 0x500   :  { %v3880_v31 = vmul.f32 %v3806_v55, %v7673_v15  ;;  %v3881_v43 = vmul.f32 %v3806_v55, %v7653_v41  ;;  %v4056_v47 = vmul.f32 %v3806_v55, %v7678_v14  ;;  %v4057_v53 = vmul.f32 %v3806_v55, %v8834_v4 }
 0x503   :  { %v3918_v27 = vpop.permute.xlu0 %3917  ;;  %v3913_v37 = vpop.permute.xlu1 %3912 }
 0x504   :  { %v3992_v58 = vadd.f32 %v3918_v27, %v3880_v31  ;;  %v3993_v42 = vadd.f32 %v3918_v27, %v3881_v43  ;;  %v4088_v30 = vadd.f32 %v4056_v47, %v3918_v27  ;;  %v4089_v15 = vadd.f32 %v4057_v53, %v3918_v27 }
 0x505   :  { %v3990_v51 = vadd.f32 %v3913_v37, %v3878_v36  ;;  %v3991_v41 = vadd.f32 %v3913_v37, %v3879_v56  ;;  %v4086_v8 = vadd.f32 %v4054_v19, %v3913_v37  ;;  %v4087_v14 = vadd.f32 %v4055_v11, %v3913_v37 }
 0x506   :  { %4024 = vst [vmem:[%s8655_s7 + $0x10] sm:$0xff] %v3992_v58  ;;  %4025 = vst.msk [vmem:[%s8655_s7 + $0x18] sm:$0xff] %vm2402_vm1, %v3993_v42 }
 0x507   :  { %4413 = vst [vmem:[%s8655_s7 + $0x110] sm:$0xff] %v4088_v30  ;;  %4414 = vst.msk [vmem:[%s8655_s7 + $0x118] sm:$0xff] %vm2402_vm1, %v4089_v15 }
 0x508   :  { %4022 = vst [vmem:[%s8655_s7] sm:$0xff] %v3990_v51  ;;  %4023 = vst.msk [vmem:[%s8655_s7 + $0x8] sm:$0xff] %vm2402_vm1, %v3991_v41 }
 0x509   :  { %4411 = vst [vmem:[%s8655_s7 + $0x100] sm:$0xff] %v4086_v8  ;;  %4412 = vst.msk [vmem:[%s8655_s7 + $0x108] sm:$0xff] %vm2402_vm1, %v4087_v14 }
 0x50d   :  { %v3811_v25 = vpop.permute.xlu1 %3810 }
 0x50e   :  { %v3882_v34 = vmul.f32 %v3811_v25, %v7721_v50  ;;  %v3883_v24 = vmul.f32 %v3811_v25, %v7695_v39  ;;  %v4058_v12 = vmul.f32 %v3811_v25, %v7742_v13  ;;  %v4059_v20 = vmul.f32 %v3811_v25, %v8838_v2  ;;  %v8840_v2 = vld [vmem:[#allocation40_spill] sm:$0xff] }
 0x511   :  { %v3816_v3 = vpop.permute.xlu1 %3815 }
 0x512   :  { %v3884_v48 = vmul.f32 %v3816_v3, %v7725_v57  ;;  %v3885_v44 = vmul.f32 %v3816_v3, %v7699_v26  ;;  %v4060_v62 = vmul.f32 %v3816_v3, %v7745_v61  ;;  %v4061_v6 = vmul.f32 %v3816_v3, %v7713_v32  ;;  %v3928_v17 = vpop.permute.xlu0 %3927 }
 0x514   :  { %v3996_v7 = vadd.f32 %v3928_v17, %v3884_v48  ;;  %v3997_v52 = vadd.f32 %v3928_v17, %v3885_v44  ;;  %v4092_v55 = vadd.f32 %v4060_v62, %v3928_v17  ;;  %v4093_v31 = vadd.f32 %v4061_v6, %v3928_v17  ;;  %v8841_v17 = vld [vmem:[#allocation5_spill] sm:$0xff] }
 0x515   :  { %v3923_v57 = vpop.permute.xlu1 %3922 }
 0x516   :  { %4028 = vst [vmem:[%s8655_s7 + $0x30] sm:$0xff] %v3996_v7  ;;  %4029 = vst.msk [vmem:[%s8655_s7 + $0x38] sm:$0xff] %vm2402_vm1, %v3997_v52  ;;  %v3994_v39 = vadd.f32 %v3923_v57, %v3882_v34  ;;  %v3995_v26 = vadd.f32 %v3923_v57, %v3883_v24  ;;  %v4090_v32 = vadd.f32 %v4058_v12, %v3923_v57  ;;  %v8839_v24 = vld [vmem:[#allocation29_spill] sm:$0xff]  ;;  %v8842_v52 = vld [vmem:[#allocation11_spill] sm:$0xff] }
 0x517   :  { %4417 = vst [vmem:[%s8655_s7 + $0x130] sm:$0xff] %v4092_v55  ;;  %4418 = vst.msk [vmem:[%s8655_s7 + $0x138] sm:$0xff] %vm2402_vm1, %v4093_v31  ;;  %v4091_v50 = vadd.f32 %v4059_v20, %v3923_v57 }
 0x518   :  { %4026 = vst [vmem:[%s8655_s7 + $0x20] sm:$0xff] %v3994_v39  ;;  %4027 = vst.msk [vmem:[%s8655_s7 + $0x28] sm:$0xff] %vm2402_vm1, %v3995_v26 }
 0x519   :  { %4415 = vst [vmem:[%s8655_s7 + $0x120] sm:$0xff] %v4090_v32  ;;  %4416 = vst.msk [vmem:[%s8655_s7 + $0x128] sm:$0xff] %vm2402_vm1, %v4091_v50 }
 0x51d   :  { %v3821_v13 = vpop.permute.xlu1 %3820 }
 0x51e   :  { %v3886_v9 = vmul.f32 %v3821_v13, %v7789_v63  ;;  %v3887_v36 = vmul.f32 %v3821_v13, %v7763_v33  ;;  %v4062_v22 = vmul.f32 %v3821_v13, %v7810_v29  ;;  %v4063_v56 = vmul.f32 %v3821_v13, %v7778_v40 }
 0x521   :  { %v3826_v61 = vpop.permute.xlu1 %3825 }
 0x522   :  { %v3888_v43 = vmul.f32 %v3826_v61, %v7793_v23  ;;  %v3889_v47 = vmul.f32 %v3826_v61, %v7767_v49  ;;  %v4064_v4 = vmul.f32 %v3826_v61, %v7813_v5  ;;  %v4065_v53 = vmul.f32 %v3826_v61, %v7781_v21  ;;  %v3938_v19 = vpop.permute.xlu0 %3937 }
 0x524   :  { %v4000_v35 = vadd.f32 %v3938_v19, %v3888_v43  ;;  %v4001_v11 = vadd.f32 %v3938_v19, %v3889_v47  ;;  %v4096_v27 = vadd.f32 %v4064_v4, %v3938_v19  ;;  %v4097_v37 = vadd.f32 %v4065_v53, %v3938_v19  ;;  %v8843_v43 = vld [vmem:[#allocation10_spill] sm:$0xff]  ;;  %v8844_v4 = vld [vmem:[#allocation41_spill] sm:$0xff]  ;;  %v8847_v19 = vld [vmem:[#allocation36_spill] sm:$0xff] }
 0x525   :  { %v3933_v23 = vpop.permute.xlu1 %3932 }
 0x526   :  { %4032 = vst [vmem:[%s8655_s7 + $0x50] sm:$0xff] %v4000_v35  ;;  %4033 = vst.msk [vmem:[%s8655_s7 + $0x58] sm:$0xff] %vm2402_vm1, %v4001_v11  ;;  %v3998_v33 = vadd.f32 %v3933_v23, %v3886_v9  ;;  %v3999_v49 = vadd.f32 %v3933_v23, %v3887_v36  ;;  %v4094_v40 = vadd.f32 %v4062_v22, %v3933_v23  ;;  %v8845_v9 = vld [vmem:[#allocation18_spill] sm:$0xff]  ;;  %v8846_v22 = vld [vmem:[#allocation12_spill] sm:$0xff] }
 0x527   :  { %4421 = vst [vmem:[%s8655_s7 + $0x150] sm:$0xff] %v4096_v27  ;;  %4422 = vst.msk [vmem:[%s8655_s7 + $0x158] sm:$0xff] %vm2402_vm1, %v4097_v37  ;;  %v4095_v21 = vadd.f32 %v4063_v56, %v3933_v23  ;;  %v8848_v11 = vld [vmem:[#allocation38_spill] sm:$0xff]  ;;  %v8849_v37 = vld [vmem:[#allocation15_spill] sm:$0xff] }
 0x528   :  { %4030 = vst [vmem:[%s8655_s7 + $0x40] sm:$0xff] %v3998_v33  ;;  %4031 = vst.msk [vmem:[%s8655_s7 + $0x48] sm:$0xff] %vm2402_vm1, %v3999_v49  ;;  %v8850_v33 = vld [vmem:[#allocation16_spill] sm:$0xff] }
 0x529   :  { %4419 = vst [vmem:[%s8655_s7 + $0x140] sm:$0xff] %v4094_v40  ;;  %4420 = vst.msk [vmem:[%s8655_s7 + $0x148] sm:$0xff] %vm2402_vm1, %v4095_v21 }
 0x52d   :  { %v3831_v63 = vpop.permute.xlu1 %3830 }
 0x52e   :  { %v3890_v29 = vmul.f32 %v3831_v63, %v7856_v10  ;;  %v3891_v5 = vmul.f32 %v3831_v63, %v7831_v28  ;;  %v4066_v58 = vmul.f32 %v3831_v63, %v7880_v0  ;;  %v4067_v42 = vmul.f32 %v3831_v63, %v7848_v45 }
 0x531   :  { %v3943_v30 = vpop.permute.xlu1 %3942 }
 0x532   :  { %v4002_v15 = vadd.f32 %v3943_v30, %v3890_v29  ;;  %v4003_v51 = vadd.f32 %v3943_v30, %v3891_v5  ;;  %v4098_v41 = vadd.f32 %v4066_v58, %v3943_v30  ;;  %v4099_v8 = vadd.f32 %v4067_v42, %v3943_v30 }
 0x534   :  { %4034 = vst [vmem:[%s8655_s7 + $0x60] sm:$0xff] %v4002_v15  ;;  %4035 = vst.msk [vmem:[%s8655_s7 + $0x68] sm:$0xff] %vm2402_vm1, %v4003_v51 }
 0x535   :  { %4423 = vst [vmem:[%s8655_s7 + $0x160] sm:$0xff] %v4098_v41  ;;  %4424 = vst.msk [vmem:[%s8655_s7 + $0x168] sm:$0xff] %vm2402_vm1, %v4099_v8 }
 0x54e   :  { %v3836_v28 = vpop.permute.xlu1 %3835 }
 0x54f   :  { %v3892_v45 = vmul.f32 %v3836_v28, %v7860_v60  ;;  %v3893_v10 = vmul.f32 %v3836_v28, %v7835_v16  ;;  %v4068_v0 = vmul.f32 %v3836_v28, %v8035_v1  ;;  %v4069_v14 = vmul.f32 %v3836_v28, %v8011_v18  ;;  %v8851_v28 = vld [vmem:[#allocation7_spill] sm:$0xff] }
 0x552   :  { %v3948_v25 = vpop.permute.xlu0 %3947 }
 0x553   :  { %v4004_v3 = vadd.f32 %v3948_v25, %v3892_v45  ;;  %v4005_v48 = vadd.f32 %v3948_v25, %v3893_v10  ;;  %v4100_v44 = vadd.f32 %v4068_v0, %v3948_v25  ;;  %v4101_v62 = vadd.f32 %v4069_v14, %v3948_v25  ;;  %v8852_v10 = vld [vmem:[#allocation3_spill] sm:$0xff]  ;;  %v8853_v14 = vld [vmem:[#allocation22_spill] sm:$0xff] }
 0x555   :  { %4036 = vst [vmem:[%s8655_s7 + $0x70] sm:$0xff] %v4004_v3  ;;  %4037 = vst.msk [vmem:[%s8655_s7 + $0x78] sm:$0xff] %vm2402_vm1, %v4005_v48  ;;  %v3841_v16 = vpop.permute.xlu1 %3840  ;;  %v8854_v3 = vld [vmem:[#allocation17_spill] sm:$0xff] }
 0x556   :  { %4425 = vst [vmem:[%s8655_s7 + $0x170] sm:$0xff] %v4100_v44  ;;  %4426 = vst.msk [vmem:[%s8655_s7 + $0x178] sm:$0xff] %vm2402_vm1, %v4101_v62  ;;  %v3846_v60 = vpop.permute.xlu0 %3845  ;;  %v3894_v12 = vmul.f32 %v3841_v16, %v8839_v24  ;;  %v3895_v20 = vmul.f32 %v3841_v16, %v8840_v2  ;;  %v4070_v7 = vmul.f32 %v3841_v16, %v8841_v17  ;;  %v8855_v44 = vld [vmem:[#allocation13_spill] sm:$0xff] }
 0x557   :  { %v3896_v18 = vmul.f32 %v3846_v60, %v7894_v54  ;;  %v3897_v1 = vmul.f32 %v3846_v60, %v7870_v38  ;;  %v4072_v6 = vmul.f32 %v3846_v60, %v8067_v59  ;;  %v4073_v34 = vmul.f32 %v3846_v60, %v8045_v46 }
 0x558   :  { %v4071_v55 = vmul.f32 %v3841_v16, %v8842_v52  ;;  %v8856_v16 = vld [vmem:[#allocation2_spill] sm:$0xff] }
 0x559   :  { %v3953_v57 = vpop.permute.xlu1 %3952 }
 0x55a   :  { %v3958_v31 = vpop.permute.xlu0 %3957  ;;  %v4006_v50 = vadd.f32 %v3953_v57, %v3894_v12  ;;  %v4007_v38 = vadd.f32 %v3953_v57, %v3895_v20  ;;  %v4102_v13 = vadd.f32 %v4070_v7, %v3953_v57  ;;  %v4103_v59 = vadd.f32 %v4071_v55, %v3953_v57 }
 0x55b   :  { %v4008_v39 = vadd.f32 %v3958_v31, %v3896_v18  ;;  %v4009_v26 = vadd.f32 %v3958_v31, %v3897_v1  ;;  %v4104_v32 = vadd.f32 %v4072_v6, %v3958_v31  ;;  %v4105_v54 = vadd.f32 %v4073_v34, %v3958_v31  ;;  %v8857_v18 = vld [vmem:[#allocation19_spill] sm:$0xff]  ;;  %v8858_v6 = vld [vmem:[#allocation20_spill] sm:$0xff] }
 0x55c   :  { %4038 = vst [vmem:[%s8655_s7 + $0x80] sm:$0xff] %v4006_v50  ;;  %4039 = vst.msk [vmem:[%s8655_s7 + $0x88] sm:$0xff] %vm2402_vm1, %v4007_v38  ;;  %v8860_v50 = vld [vmem:[#allocation34_spill] sm:$0xff] }
 0x55d   :  { %4040 = vst [vmem:[%s8655_s7 + $0x90] sm:$0xff] %v4008_v39  ;;  %4041 = vst.msk [vmem:[%s8655_s7 + $0x98] sm:$0xff] %vm2402_vm1, %v4009_v26  ;;  %v3851_v61 = vpop.permute.xlu1 %3850 }
 0x55e   :  { %4429 = vst [vmem:[%s8655_s7 + $0x190] sm:$0xff] %v4104_v32  ;;  %4430 = vst.msk [vmem:[%s8655_s7 + $0x198] sm:$0xff] %vm2402_vm1, %v4105_v54  ;;  %v3856_v46 = vpop.permute.xlu0 %3855  ;;  %v3898_v35 = vmul.f32 %v3851_v61, %v8847_v19  ;;  %v3899_v27 = vmul.f32 %v3851_v61, %v8848_v11  ;;  %v4074_v23 = vmul.f32 %v3851_v61, %v8849_v37  ;;  %v8859_v32 = vld [vmem:[#allocation9_spill] sm:$0xff] }
 0x55f   :  { %4427 = vst [vmem:[%s8655_s7 + $0x180] sm:$0xff] %v4102_v13  ;;  %4428 = vst.msk [vmem:[%s8655_s7 + $0x188] sm:$0xff] %vm2402_vm1, %v4103_v59  ;;  %v3900_v47 = vmul.f32 %v3856_v46, %v8843_v43  ;;  %v3901_v53 = vmul.f32 %v3856_v46, %v8844_v4  ;;  %v4076_v36 = vmul.f32 %v3856_v46, %v8845_v9  ;;  %v8861_v13 = vld [vmem:[#allocation26_spill] sm:$0xff] }
 0x560   :  { %v4077_v56 = vmul.f32 %v3856_v46, %v8846_v22  ;;  %v4075_v49 = vmul.f32 %v3851_v61, %v8850_v33  ;;  %v8862_v46 = vld [vmem:[#allocation21_spill] sm:$0xff] }
 0x561   :  { %v3963_v21 = vpop.permute.xlu1 %3962 }
 0x562   :  { %v3968_v40 = vpop.permute.xlu0 %3967  ;;  %v4010_v42 = vadd.f32 %v3963_v21, %v3898_v35  ;;  %v4011_v30 = vadd.f32 %v3963_v21, %v3899_v27  ;;  %v4106_v15 = vadd.f32 %v4074_v23, %v3963_v21  ;;  %v4107_v51 = vadd.f32 %v4075_v49, %v3963_v21 }
 0x563   :  { %v4012_v63 = vadd.f32 %v3968_v40, %v3900_v47  ;;  %v4013_v29 = vadd.f32 %v3968_v40, %v3901_v53  ;;  %v4108_v5 = vadd.f32 %v4076_v36, %v3968_v40  ;;  %v4109_v58 = vadd.f32 %v4077_v56, %v3968_v40  ;;  %v8863_v47 = vld [vmem:[#allocation14_spill] sm:$0xff]  ;;  %v8864_v53 = vld [vmem:[#allocation4_spill] sm:$0xff]  ;;  %v8865_v36 = vld [vmem:[#allocation23_spill] sm:$0xff] }
 0x564   :  { %4042 = vst [vmem:[%s8655_s7 + $0xa0] sm:$0xff] %v4010_v42  ;;  %4043 = vst.msk [vmem:[%s8655_s7 + $0xa8] sm:$0xff] %vm2402_vm1, %v4011_v30  ;;  %v8866_v56 = vld [vmem:[#allocation24_spill] sm:$0xff] }
 0x565   :  { %4044 = vst [vmem:[%s8655_s7 + $0xb0] sm:$0xff] %v4012_v63  ;;  %4045 = vst.msk [vmem:[%s8655_s7 + $0xb8] sm:$0xff] %vm2402_vm1, %v4013_v29  ;;  %v3861_v8 = vpop.permute.xlu1 %3860 }
 0x566   :  { %4433 = vst [vmem:[%s8655_s7 + $0x1b0] sm:$0xff] %v4108_v5  ;;  %4434 = vst.msk [vmem:[%s8655_s7 + $0x1b8] sm:$0xff] %vm2402_vm1, %v4109_v58  ;;  %v3866_v41 = vpop.permute.xlu0 %3865  ;;  %v3902_v62 = vmul.f32 %v3861_v8, %v8855_v44  ;;  %v3903_v60 = vmul.f32 %v3861_v8, %v8856_v16  ;;  %v4078_v1 = vmul.f32 %v3861_v8, %v8857_v18 }
 0x567   :  { %4431 = vst [vmem:[%s8655_s7 + $0x1a0] sm:$0xff] %v4106_v15  ;;  %4432 = vst.msk [vmem:[%s8655_s7 + $0x1a8] sm:$0xff] %vm2402_vm1, %v4107_v51  ;;  %v3904_v45 = vmul.f32 %v3866_v41, %v8851_v28  ;;  %v3905_v0 = vmul.f32 %v3866_v41, %v8852_v10  ;;  %v4080_v25 = vmul.f32 %v3866_v41, %v8853_v14 }
 0x568   :  { %v4081_v48 = vmul.f32 %v3866_v41, %v8854_v3  ;;  %v4079_v34 = vmul.f32 %v3861_v8, %v8858_v6 }
 0x569   :  { %v3973_v12 = vpop.permute.xlu1 %3972 }
 0x56a   :  { %v3978_v24 = vpop.permute.xlu0 %3977  ;;  %v4014_v52 = vadd.f32 %v3973_v12, %v3902_v62  ;;  %v4015_v55 = vadd.f32 %v3973_v12, %v3903_v60  ;;  %v4110_v31 = vadd.f32 %v4078_v1, %v3973_v12  ;;  %v4111_v57 = vadd.f32 %v4079_v34, %v3973_v12 }
 0x56b   :  { %v4016_v2 = vadd.f32 %v3978_v24, %v3904_v45  ;;  %v4017_v20 = vadd.f32 %v3978_v24, %v3905_v0  ;;  %v4112_v17 = vadd.f32 %v4080_v25, %v3978_v24  ;;  %v4113_v7 = vadd.f32 %v4081_v48, %v3978_v24 }
 0x56c   :  { %4046 = vst [vmem:[%s8655_s7 + $0xc0] sm:$0xff] %v4014_v52  ;;  %4047 = vst.msk [vmem:[%s8655_s7 + $0xc8] sm:$0xff] %vm2402_vm1, %v4015_v55 }
 0x56d   :  { %4048 = vst [vmem:[%s8655_s7 + $0xd0] sm:$0xff] %v4016_v2  ;;  %4049 = vst.msk [vmem:[%s8655_s7 + $0xd8] sm:$0xff] %vm2402_vm1, %v4017_v20  ;;  %v3871_v26 = vpop.permute.xlu1 %3870 }
 0x56e   :  { %4437 = vst [vmem:[%s8655_s7 + $0x1d0] sm:$0xff] %v4112_v17  ;;  %4438 = vst.msk [vmem:[%s8655_s7 + $0x1d8] sm:$0xff] %vm2402_vm1, %v4113_v7  ;;  %v3876_v39 = vpop.permute.xlu0 %3875  ;;  %v3906_v4 = vmul.f32 %v3871_v26, %v8863_v47  ;;  %v3907_v9 = vmul.f32 %v3871_v26, %v8864_v53  ;;  %v4082_v22 = vmul.f32 %v3871_v26, %v8865_v36 }
 0x56f   :  { %4435 = vst [vmem:[%s8655_s7 + $0x1c0] sm:$0xff] %v4110_v31  ;;  %4436 = vst.msk [vmem:[%s8655_s7 + $0x1c8] sm:$0xff] %vm2402_vm1, %v4111_v57  ;;  %v3908_v54 = vmul.f32 %v3876_v39, %v8859_v32  ;;  %v3909_v38 = vmul.f32 %v3876_v39, %v8860_v50  ;;  %v4084_v59 = vmul.f32 %v3876_v39, %v8861_v13 }
 0x570   :  { %v4085_v61 = vmul.f32 %v3876_v39, %v8862_v46  ;;  %v4083_v19 = vmul.f32 %v3871_v26, %v8866_v56 }
 0x571   :  { %v3983_v35 = vpop.permute.xlu1 %3982 }
 0x572   :  { %v3988_v43 = vpop.permute.xlu0 %3987  ;;  %v4018_v33 = vadd.f32 %v3983_v35, %v3906_v4  ;;  %v4019_v49 = vadd.f32 %v3983_v35, %v3907_v9  ;;  %v4114_v40 = vadd.f32 %v4082_v22, %v3983_v35  ;;  %v4115_v21 = vadd.f32 %v4083_v19, %v3983_v35 }
 0x573   :  { %v4020_v11 = vadd.f32 %v3988_v43, %v3908_v54  ;;  %v4021_v27 = vadd.f32 %v3988_v43, %v3909_v38  ;;  %v4116_v37 = vadd.f32 %v4084_v59, %v3988_v43  ;;  %v4117_v23 = vadd.f32 %v4085_v61, %v3988_v43 }
 0x574   :  { %4050 = vst [vmem:[%s8655_s7 + $0xe0] sm:$0xff] %v4018_v33  ;;  %4051 = vst.msk [vmem:[%s8655_s7 + $0xe8] sm:$0xff] %vm2402_vm1, %v4019_v49 }
 0x575   :  { %4052 = vst [vmem:[%s8655_s7 + $0xf0] sm:$0xff] %v4020_v11  ;;  %4053 = vst.msk [vmem:[%s8655_s7 + $0xf8] sm:$0xff] %vm2402_vm1, %v4021_v27 }
 0x576   :  { %4441 = vst [vmem:[%s8655_s7 + $0x1f0] sm:$0xff] %v4116_v37  ;;  %4442 = vst.msk [vmem:[%s8655_s7 + $0x1f8] sm:$0xff] %vm2402_vm1, %v4117_v23 }
 0x577   :  { %4439 = vst [vmem:[%s8655_s7 + $0x1e0] sm:$0xff] %v4114_v40  ;;  %4440 = vst.msk [vmem:[%s8655_s7 + $0x1e8] sm:$0xff] %vm2402_vm1, %v4115_v21 }

</bundles_post_ra>
